<compile_context>
chip_gen: v6e
topology: v6e:2x2x1
jax: 0.10.0
libtpu: 0.0.40
codegen_flags: <defaults>
</compile_context>

<pallas_src>
import functools

import jax
import jax.numpy as jnp
from jax.experimental import pallas as pl
from jax.experimental.pallas import tpu as pltpu


def _self_attention_kernel(x_ref, w_ref, b_ref, gamma_ref, o_ref, proj_ref, *,
                           Cq, k_tile, mxu_dtype):
    """Grid = (batch, K-chunk of the contraction/N axis).

    x_ref    : (C, k_tile)  f32  -- k-th column chunk of x[b] (C, N), untransposed
    w_ref    : (O, k_tile)  mxu  -- k-th column chunk of [Wq; Wk; Wv]
    b_ref    : (O, 1)       f32  -- [bq; bk; bv]
    gamma_ref: (1, 1)       f32  in SMEM (scalar path)
    o_ref    : (N, C)       out  -- resident across the K axis (accumulator)
    proj_ref : (O, C)       f32  VMEM scratch, fused Q/K/V projection accumulator
    """
    k_idx = pl.program_id(1)

    xs = x_ref[...]                                    # (C, k_tile), exact f32

    # Residual rows for this chunk: o[k*tk:(k+1)*tk, :] = rows of x[b]^T.
    # Transposing chunk-wise on the XLU inside the kernel replaces the
    # wrapper-side transpose (a full extra HBM round trip of x); the residual
    # is taken from the exact f32 input, so `+ x` stays exact.
    row0 = pl.multiple_of(k_idx * k_tile, k_tile)
    o_ref[pl.ds(row0, k_tile), :] = xs.T.astype(o_ref.dtype)

    # Fused Q/K/V projection, tiled over the contraction (N) axis:
    #   proj[o, c] += sum_n w[o, n] * x[b][c, n]   (== [Wq; Wk; Wv] @ x[b]^T)
    # MXU operands in bf16 (mxu_dtype), accumulation in f32.
    @pl.when(k_idx == 0)
    def _():
        proj_ref[...] = jnp.zeros_like(proj_ref)

    proj_ref[...] += jax.lax.dot_general(
        w_ref[...], xs.astype(mxu_dtype), (((1,), (1,)), ((), ())),
        preferred_element_type=jnp.float32)

    # Attention epilogue once the projection is complete (last K chunk).
    @pl.when(k_idx == pl.num_programs(1) - 1)
    def _():
        gamma = gamma_ref[0, 0]                         # scalar read from SMEM
        q = proj_ref[0:Cq, :] + b_ref[0:Cq, :]          # (Cq, C) f32
        k = proj_ref[Cq:2 * Cq, :] + b_ref[Cq:2 * Cq, :]

        # s^T[d, c] = sum_o k[o, d] * q[o, c] -- contract the Cq axis directly
        # (no explicit transpose of q).  Tiny matmul; kept in f32 for accuracy.
        sT = jax.lax.dot_general(k, q, (((0,), (0,)), ((), ())),
                                 preferred_element_type=jnp.float32)   # (C, C)

        # torch softmax(dim=1) over the first C axis of s == softmax over the
        # LAST (lane) axis of s^T; 1/denominator goes to the otherwise-idle EUP.
        sT = sT - jnp.max(sT, axis=-1, keepdims=True)
        p = jnp.exp(sT)
        betaT = p * pl.reciprocal(jnp.sum(p, axis=-1, keepdims=True), approx=True)

        # o[n, d] = gamma * sum_c v[n, c] * beta[c, d] + x[b]^T[n, d].
        # The value bias bv folds out of the matmul because softmax(dim=1)
        # columns sum to one:  sum_c (v0[n,c] + bv[n]) * beta[c,d]
        #                        = (v0 @ beta)[n,d] + bv[n].
        attn = jax.lax.dot_general(
            proj_ref[2 * Cq:, :].astype(mxu_dtype), betaT.astype(mxu_dtype),
            (((1,), (1,)), ((), ())), preferred_element_type=jnp.float32)  # (N, C)
        attn = attn + b_ref[2 * Cq:, :]
        o_ref[...] = (o_ref[...] + gamma * attn).astype(o_ref.dtype)


def _pick_k_tile(N, O, mxu_bytes, budget_bytes=8 << 20):
    """Contraction-axis tile: keep the stacked weight resident when it fits
    comfortably in VMEM, otherwise stream it in multiple-of-128 chunks
    (required by the (8, 128) block-shape rule)."""
    if O * N * mxu_bytes <= budget_bytes:
        return N
    for tk in (2048, 1024, 512, 256, 128):
        if tk < N and N % tk == 0:
            return tk
    return N


def _vmem_limit_bytes(O, N, C, k_tile, nk, mxu_bytes):
    """Scoped-VMEM budget: weight + bias + double-buffered x/out blocks +
    projection scratch + epilogue temporaries, with headroom.  The defaults
    (16 MiB v5e / 32 MiB v6e, v7x) are exceeded long before physical VMEM at
    production N; capped at v7x's 64 MiB so the setting is safe everywhere."""
    need = (O * k_tile * mxu_bytes * (1 if nk == 1 else 2)   # weight block(s)
            + O * 4                                          # bias
            + 2 * C * k_tile * 4                             # x block, double-buffered
            + 2 * N * C * 4                                  # out block, double-buffered
            + O * C * 4                                      # projection scratch
            + (4 * C * C + 3 * N * C) * 4)                   # epilogue temporaries
    return min(64 << 20, max(16 << 20, int(1.5 * need) + (2 << 20)))


def self_attention_forward(x, wq, bq, wk, bk, wv, bv, gamma, *,
                           k_tile=None, mxu_dtype=jnp.bfloat16):
    """Pallas reproduction of SelfAttention.forward for NCHW input x.

    mxu_dtype: operand dtype for the two large MXU matmuls; accumulation and
    all element-wise / softmax math stay in f32.  Use jnp.float32 to disable
    the bf16 operand cast.
    """
    B, C, H, W = x.shape
    N = H * W
    n_channels = wq.shape[1]
    assert N == n_channels, "module requires H*W == n_channels (Conv1d channel axis)"
    Cq = wq.shape[0]
    O = 2 * Cq + N
    mxu_bytes = jnp.dtype(mxu_dtype).itemsize

    if k_tile is None:
        k_tile = _pick_k_tile(N, O, mxu_bytes)
    assert N % k_tile == 0, "k_tile must divide N (= H*W)"
    nk = N // k_tile

    # x.view(B, C, N) is a free row-major reshape; the (N, C) transpose the
    # module needs is done chunk-wise INSIDE the kernel (no extra HBM pass).
    x3 = x.reshape(B, C, N)

    # Stack the three 1x1-conv weights/biases so the kernel issues ONE fused
    # projection matmul; cast the weight to the MXU operand dtype once here
    # (halves its HBM DMA and resident VMEM).  In a real module both would be
    # done once at init time.  Bias stays f32 (added post-accumulation).
    w_all = jnp.concatenate([wq, wk, wv], axis=0).astype(mxu_dtype)    # (O, N)
    b_all = jnp.concatenate([bq, bk, bv], axis=0).astype(jnp.float32)  # (O, 1)
    gamma_s = jnp.reshape(gamma, (1, 1)).astype(jnp.float32)

    kernel = functools.partial(_self_attention_kernel, Cq=Cq, k_tile=k_tile,
                               mxu_dtype=mxu_dtype)
    out_shape = jax.ShapeDtypeStruct((B, N, C), x.dtype)
    # NOTE: with C a multiple of 128 (demo) the (N, C) output block stores are
    # lane-dense (unmasked vst); for other C, pad C in out_shape and slice in
    # the wrapper rather than reshaping inside the kernel.

    def build(single_buffer_consts):
        # Constant-index blocks (weight when resident, bias always) need no
        # double buffer -> halve their VMEM footprint with pl.Buffered(1).
        w_mode = pl.Buffered(1) if (single_buffer_consts and nk == 1) else None
        b_mode = pl.Buffered(1) if single_buffer_consts else None
        return pl.pallas_call(
            kernel,
            out_shape=out_shape,
            grid=(B, nk),                                   # reduction axis last
            in_specs=[
                pl.BlockSpec((None, C, k_tile), lambda b, k: (b, 0, k)),   # x[b] chunk
                pl.BlockSpec((O, k_tile), lambda b, k: (0, k),
                             pipeline_mode=w_mode),                        # [Wq;Wk;Wv]
                pl.BlockSpec((O, 1), lambda b, k: (0, 0),
                             pipeline_mode=b_mode),                        # [bq;bk;bv]
                pl.BlockSpec(memory_space=pltpu.MemorySpace.SMEM),         # gamma
            ],
            out_specs=pl.BlockSpec((None, N, C), lambda b, k: (b, 0, 0)),
            scratch_shapes=[pltpu.VMEM((O, C), jnp.float32)],
            compiler_params=pltpu.CompilerParams(
                dimension_semantics=("parallel", "arbitrary"),
                vmem_limit_bytes=_vmem_limit_bytes(O, N, C, k_tile, nk, mxu_bytes)),
        )

    try:
        o = jax.block_until_ready(build(True)(x3, w_all, b_all, gamma_s))
    except Exception:
        # pipeline_mode=pl.Buffered support varies across JAX versions; fall
        # back to default double buffering (identical numerics).
        o = build(False)(x3, w_all, b_all, gamma_s)

    # o.view(*size) in PyTorch is a plain row-major reshape of the (B, N, C)
    # result back to (B, C, H, W) -- NOT a transpose back.
    return o.reshape(B, C, H, W)


def _reference_forward(x, wq, bq, wk, bk, wv, bv, gamma, mxu_dtype=jnp.float32):
    """Pure-JAX reference mirroring the PyTorch code line by line.  With
    mxu_dtype=bfloat16 it also emulates the kernel's operand-only casts
    (f32 accumulation), giving a tight correctness target for the bf16 kernel."""
    B, C, H, W = x.shape
    N = H * W
    hi = jax.lax.Precision.HIGHEST
    xt = jnp.transpose(x.reshape(B, C, N), (0, 2, 1)).astype(jnp.float32)  # (B, N, C)

    def conv1x1(w, b):
        return jnp.einsum('on,bnc->boc', w.astype(mxu_dtype), xt.astype(mxu_dtype),
                          precision=hi, preferred_element_type=jnp.float32) + b[None]

    q, k, v = conv1x1(wq, bq), conv1x1(wk, bk), conv1x1(wv, bv)
    s = jnp.einsum('boc,bod->bcd', q, k, precision=hi,
                   preferred_element_type=jnp.float32)                     # (B, C, C)
    beta = jax.nn.softmax(s, axis=1)
    o = (jnp.reshape(gamma, ()) *
         jnp.einsum('bnc,bcd->bnd', v.astype(mxu_dtype), beta.astype(mxu_dtype),
                    precision=hi, preferred_element_type=jnp.float32) + xt)
    return o.reshape(B, C, H, W)


if __name__ == "__main__":
    def run_case(case_key, B, C, H, W, k_tile):
        N = H * W
        n_channels = N                        # required: Conv1d channel axis is H*W
        Cq = n_channels // 8
        ks = jax.random.split(case_key, 7)
        scale = 0.05
        x = jax.random.normal(ks[0], (B, C, H, W), jnp.float32)
        wq = scale * jax.random.normal(ks[1], (Cq, n_channels), jnp.float32)
        bq = scale * jax.random.normal(ks[2], (Cq, 1), jnp.float32)
        wk = scale * jax.random.normal(ks[3], (Cq, n_channels), jnp.float32)
        bk = scale * jax.random.normal(ks[4], (Cq, 1), jnp.float32)
        wv = scale * jax.random.normal(ks[5], (n_channels, n_channels), jnp.float32)
        bv = scale * jax.random.normal(ks[6], (n_channels, 1), jnp.float32)
        # Module init sets gamma = 0.0; use a nonzero value so the attention
        # path is actually exercised.
        gamma = jnp.array([0.5], jnp.float32)

        out = self_attention_forward(x, wq, bq, wk, bk, wv, bv, gamma, k_tile=k_tile)
        out = jax.block_until_ready(out)
        assert out.shape == (B, C, H, W)

        # Tight check vs. a reference that emulates the kernel's bf16 operand
        # casts; loose sanity check vs. the exact f32 reference.
        ref_emu = _reference_forward(x, wq, bq, wk, bk, wv, bv, gamma,
                                     mxu_dtype=jnp.bfloat16)
        ref_f32 = _reference_forward(x, wq, bq, wk, bk, wv, bv, gamma,
                                     mxu_dtype=jnp.float32)
        err_emu = float(jnp.max(jnp.abs(out - ref_emu)))
        err_f32 = float(jnp.max(jnp.abs(out - ref_f32)))
        assert jnp.allclose(out, ref_emu, atol=2e-2, rtol=2e-2), \
            f"mismatch vs bf16-emulating reference: {err_emu}"
        assert jnp.allclose(out, ref_f32, atol=6e-2, rtol=6e-2), \
            f"mismatch vs f32 reference: {err_f32}"

    key = jax.random.PRNGKey(0)
    k1, k2 = jax.random.split(key)
    # Case 1: stacked weight stays resident (k_tile == N); single-buffered
    # constant blocks (pl.Buffered(1) path).
    run_case(k1, B=2, C=128, H=16, W=16, k_tile=None)
    # Case 2: K-tiled projection (k_tile < N), exercising the scratch
    # accumulator + incremental-residual path used when the weight is streamed.
    run_case(k2, B=3, C=128, H=16, W=16, k_tile=128)
    print("KERNEL_OK")
</pallas_src>

<mosaic_0001>
module attributes {stable_mosaic.version = 11 : i64} {
  func.func @_self_attention_kernel(%arg0: i32, %arg1: i32, %arg2: memref<1x128x256xf32, #tpu.memory_space<vmem>>, %arg3: memref<320x256xbf16, #tpu.memory_space<vmem>>, %arg4: memref<320x1xf32, #tpu.memory_space<vmem>>, %arg5: memref<1x1xf32, #tpu.memory_space<smem>>, %arg6: memref<1x256x128xf32, #tpu.memory_space<vmem>>, %arg7: memref<320x128xf32, #tpu.memory_space<vmem>>) attributes {dimension_semantics = [#tpu.dimension_semantics<parallel>, #tpu.dimension_semantics<arbitrary>], iteration_bounds = array<i64: 2, 1>, scalar_prefetch = 0 : i64, scratch_operands = 1 : i64, tpu.core_type = #tpu.core_type<tc>, window_params = [{transform_indices = @transform_0, window_bounds = array<i64: 1, 128, 256>}, {pipeline_mode = #tpu.pipeline_mode<synchronous>, transform_indices = @transform_1, window_bounds = array<i64: 320, 256>}, {pipeline_mode = #tpu.pipeline_mode<synchronous>, transform_indices = @transform_2, window_bounds = array<i64: 320, 1>}, {transform_indices = @transform_3, window_bounds = array<i64: 1, 1>}, {transform_indices = @transform_4, window_bounds = array<i64: 1, 256, 128>}]} {
    %c0 = arith.constant 0 : index
    %c0_0 = arith.constant 0 : index
    %c0_1 = arith.constant 0 : index
    %0 = vector.load %arg2[%c0, %c0_0, %c0_1] : memref<1x128x256xf32, #tpu.memory_space<vmem>>, vector<1x128x256xf32>
    %1 = vector.shape_cast %0 : vector<1x128x256xf32> to vector<128x256xf32>
    %c256_i32 = arith.constant 256 : i32
    %2 = arith.muli %arg1, %c256_i32 : i32
    %3 = tpu.assume_multiple %2, 256 : i32
    %4 = tpu.transpose %1, [1, 0] : vector<128x256xf32> -> vector<256x128xf32>
    %c0_2 = arith.constant 0 : index
    %5 = arith.index_cast %3 : i32 to index
    %c0_3 = arith.constant 0 : index
    %6 = vector.load %arg6[%c0_2, %5, %c0_3] : memref<1x256x128xf32, #tpu.memory_space<vmem>>, vector<1x256x128xf32>
    %7 = vector.shape_cast %6 : vector<1x256x128xf32> to vector<256x128xf32>
    %8 = vector.shape_cast %4 : vector<256x128xf32> to vector<1x256x128xf32>
    tpu.vector_store %arg6[%c0_2, %5, %c0_3], %8 {strides = array<i32>} : memref<1x256x128xf32, #tpu.memory_space<vmem>>, vector<1x256x128xf32>,
    %c0_i32 = arith.constant 0 : i32
    %9 = arith.cmpi eq, %arg1, %c0_i32 : i32
    %10 = arith.extui %9 : i1 to i32
    %c0_i32_4 = arith.constant 0 : i32
    %11 = arith.cmpi ne, %10, %c0_i32_4 : i32
    scf.if %11 {
      %cst_13 = arith.constant 0.000000e+00 : f32
      %21 = vector.broadcast %cst_13 : f32 to vector<320x128xf32>
      %c0_14 = arith.constant 0 : index
      %c0_15 = arith.constant 0 : index
      %22 = vector.load %arg7[%c0_14, %c0_15] : memref<320x128xf32, #tpu.memory_space<vmem>>, vector<320x128xf32>
      tpu.vector_store %arg7[%c0_14, %c0_15], %21 {strides = array<i32>} : memref<320x128xf32, #tpu.memory_space<vmem>>, vector<320x128xf32>,
    } else {
    }
    %c0_5 = arith.constant 0 : index
    %c0_6 = arith.constant 0 : index
    %12 = vector.load %arg7[%c0_5, %c0_6] : memref<320x128xf32, #tpu.memory_space<vmem>>, vector<320x128xf32>
    %c0_7 = arith.constant 0 : index
    %c0_8 = arith.constant 0 : index
    %13 = vector.load %arg3[%c0_7, %c0_8] : memref<320x256xbf16, #tpu.memory_space<vmem>>, vector<320x256xbf16>
    %14 = arith.truncf %1 : vector<128x256xf32> to vector<128x256xbf16>
    %cst = arith.constant dense<0.000000e+00> : vector<320x128xf32>
    %15 = tpu.matmul %13, %14, %cst {dimension_numbers = #tpu.dot_dimension_numbers<[1], [1], [0], [0], [0, 0, 1, 0], [], []>} : vector<320x256xbf16>, vector<128x256xbf16>, vector<320x128xf32> -> vector<320x128xf32>
    %16 = arith.addf %12, %15 : vector<320x128xf32>
    %c0_9 = arith.constant 0 : index
    %c0_10 = arith.constant 0 : index
    %17 = vector.load %arg7[%c0_9, %c0_10] : memref<320x128xf32, #tpu.memory_space<vmem>>, vector<320x128xf32>
    tpu.vector_store %arg7[%c0_9, %c0_10], %16 {strides = array<i32>} : memref<320x128xf32, #tpu.memory_space<vmem>>, vector<320x128xf32>,
    %c0_i32_11 = arith.constant 0 : i32
    %18 = arith.cmpi eq, %arg1, %c0_i32_11 : i32
    %19 = arith.extui %18 : i1 to i32
    %c0_i32_12 = arith.constant 0 : i32
    %20 = arith.cmpi ne, %19, %c0_i32_12 : i32
    scf.if %20 {
      %c0_13 = arith.constant 0 : index
      %c0_14 = arith.constant 0 : index
      %21 = memref.load %arg5[%c0_13, %c0_14] : memref<1x1xf32, #tpu.memory_space<smem>>
      %c0_15 = arith.constant 0 : index
      %c0_16 = arith.constant 0 : index
      %22 = vector.load %arg7[%c0_15, %c0_16] : memref<320x128xf32, #tpu.memory_space<vmem>>, vector<32x128xf32>
      %c0_17 = arith.constant 0 : index
      %c0_18 = arith.constant 0 : index
      %23 = vector.load %arg4[%c0_17, %c0_18] : memref<320x1xf32, #tpu.memory_space<vmem>>, vector<32x1xf32>
      %24 = vector.broadcast %23 : vector<32x1xf32> to vector<32x128xf32>
      %25 = arith.addf %22, %24 : vector<32x128xf32>
      %c32 = arith.constant 32 : index
      %c0_19 = arith.constant 0 : index
      %26 = vector.load %arg7[%c32, %c0_19] : memref<320x128xf32, #tpu.memory_space<vmem>>, vector<32x128xf32>
      %c32_20 = arith.constant 32 : index
      %c0_21 = arith.constant 0 : index
      %27 = vector.load %arg4[%c32_20, %c0_21] : memref<320x1xf32, #tpu.memory_space<vmem>>, vector<32x1xf32>
      %28 = vector.broadcast %27 : vector<32x1xf32> to vector<32x128xf32>
      %29 = arith.addf %26, %28 : vector<32x128xf32>
      %cst_22 = arith.constant dense<0.000000e+00> : vector<128x128xf32>
      %30 = tpu.matmul %29, %25, %cst_22 {dimension_numbers = #tpu.dot_dimension_numbers<[0], [0], [1], [1], [0, 1, 1, 1], [], []>} : vector<32x128xf32>, vector<32x128xf32>, vector<128x128xf32> -> vector<128x128xf32>
      %cst_23 = arith.constant dense<0xFF800000> : vector<128xf32>
      %31 = vector.multi_reduction <maximumf>, %30, %cst_23 [1] : vector<128x128xf32> to vector<128xf32>
      %32 = vector.shape_cast %31 : vector<128xf32> to vector<128x1xf32>
      %33 = vector.broadcast %32 : vector<128x1xf32> to vector<128x128xf32>
      %34 = arith.subf %30, %33 : vector<128x128xf32>
      %35 = math.exp %34 : vector<128x128xf32>
      %cst_24 = arith.constant dense<0.000000e+00> : vector<128xf32>
      %36 = vector.multi_reduction <add>, %35, %cst_24 [1] : vector<128x128xf32> to vector<128xf32>
      %37 = vector.shape_cast %36 : vector<128xf32> to vector<128x1xf32>
      %38 = tpu.reciprocal %37 {approx = true} : vector<128x1xf32> -> vector<128x1xf32>
      %39 = vector.broadcast %38 : vector<128x1xf32> to vector<128x128xf32>
      %40 = arith.mulf %35, %39 : vector<128x128xf32>
      %c64 = arith.constant 64 : index
      %c0_25 = arith.constant 0 : index
      %41 = vector.load %arg7[%c64, %c0_25] : memref<320x128xf32, #tpu.memory_space<vmem>>, vector<256x128xf32>
      %42 = arith.truncf %41 : vector<256x128xf32> to vector<256x128xbf16>
      %43 = arith.truncf %40 : vector<128x128xf32> to vector<128x128xbf16>
      %cst_26 = arith.constant dense<0.000000e+00> : vector<256x128xf32>
      %44 = tpu.matmul %42, %43, %cst_26 {dimension_numbers = #tpu.dot_dimension_numbers<[1], [1], [0], [0], [0, 0, 1, 0], [], []>} : vector<256x128xbf16>, vector<128x128xbf16>, vector<256x128xf32> -> vector<256x128xf32>
      %c64_27 = arith.constant 64 : index
      %c0_28 = arith.constant 0 : index
      %45 = vector.load %arg4[%c64_27, %c0_28] : memref<320x1xf32, #tpu.memory_space<vmem>>, vector<256x1xf32>
      %46 = vector.broadcast %45 : vector<256x1xf32> to vector<256x128xf32>
      %47 = arith.addf %44, %46 : vector<256x128xf32>
      %c0_29 = arith.constant 0 : index
      %c0_30 = arith.constant 0 : index
      %c0_31 = arith.constant 0 : index
      %48 = vector.load %arg6[%c0_29, %c0_30, %c0_31] : memref<1x256x128xf32, #tpu.memory_space<vmem>>, vector<1x256x128xf32>
      %49 = vector.shape_cast %48 : vector<1x256x128xf32> to vector<256x128xf32>
      %50 = vector.broadcast %21 : f32 to vector<256x128xf32>
      %51 = arith.mulf %50, %47 : vector<256x128xf32>
      %52 = arith.addf %49, %51 : vector<256x128xf32>
      %c0_32 = arith.constant 0 : index
      %c0_33 = arith.constant 0 : index
      %c0_34 = arith.constant 0 : index
      %53 = vector.load %arg6[%c0_32, %c0_33, %c0_34] : memref<1x256x128xf32, #tpu.memory_space<vmem>>, vector<1x256x128xf32>
      %54 = vector.shape_cast %53 : vector<1x256x128xf32> to vector<256x128xf32>
      %55 = vector.shape_cast %52 : vector<256x128xf32> to vector<1x256x128xf32>
      tpu.vector_store %arg6[%c0_32, %c0_33, %c0_34], %55 {strides = array<i32>} : memref<1x256x128xf32, #tpu.memory_space<vmem>>, vector<1x256x128xf32>,
    } else {
    }
    return
  }
  func.func @transform_0(%arg0: i32, %arg1: i32) -> (i32, i32, i32) {
    %c0_i32 = arith.constant 0 : i32
    %c0_i32_0 = arith.constant 0 : i32
    return %arg0, %c0_i32, %arg1 : i32, i32, i32
  }
  func.func @transform_1(%arg0: i32, %arg1: i32) -> (i32, i32) {
    %c0_i32 = arith.constant 0 : i32
    %c0_i32_0 = arith.constant 0 : i32
    return %c0_i32, %arg1 : i32, i32
  }
  func.func @transform_2(%arg0: i32, %arg1: i32) -> (i32, i32) {
    %c0_i32 = arith.constant 0 : i32
    %c0_i32_0 = arith.constant 0 : i32
    %c0_i32_1 = arith.constant 0 : i32
    return %c0_i32, %c0_i32_0 : i32, i32
  }
  func.func @transform_3(%arg0: i32, %arg1: i32) -> (i32, i32) {
    %c0_i32 = arith.constant 0 : i32
    %c0_i32_0 = arith.constant 0 : i32
    %c0_i32_1 = arith.constant 0 : i32
    return %c0_i32, %c0_i32_0 : i32, i32
  }
  func.func @transform_4(%arg0: i32, %arg1: i32) -> (i32, i32, i32) {
    %c0_i32 = arith.constant 0 : i32
    %c0_i32_0 = arith.constant 0 : i32
    %c0_i32_1 = arith.constant 0 : i32
    return %arg0, %c0_i32, %c0_i32_0 : i32, i32, i32
  }
}

module attributes {stable_mosaic.version = 11 : i64} {
  func.func @_self_attention_kernel(%arg0: i32, %arg1: i32, %arg2: memref<1x128x256xf32, #tpu.memory_space<vmem>>, %arg3: memref<320x256xbf16, #tpu.memory_space<vmem>>, %arg4: memref<320x1xf32, #tpu.memory_space<vmem>>, %arg5: memref<1x1xf32, #tpu.memory_space<smem>>, %arg6: memref<1x256x128xf32, #tpu.memory_space<vmem>>, %arg7: memref<320x128xf32, #tpu.memory_space<vmem>>) attributes {dimension_semantics = [#tpu.dimension_semantics<parallel>, #tpu.dimension_semantics<arbitrary>], iteration_bounds = array<i64: 2, 1>, scalar_prefetch = 0 : i64, scratch_operands = 1 : i64, tpu.core_type = #tpu.core_type<tc>, window_params = [{transform_indices = @transform_0, window_bounds = array<i64: 1, 128, 256>}, {transform_indices = @transform_1, window_bounds = array<i64: 320, 256>}, {pipeline_mode = #tpu.pipeline_mode<synchronous>, transform_indices = @transform_2, window_bounds = array<i64: 320, 1>}, {transform_indices = @transform_3, window_bounds = array<i64: 1, 1>}, {transform_indices = @transform_4, window_bounds = array<i64: 1, 256, 128>}]} {
    %c0 = arith.constant 0 : index
    %c0_0 = arith.constant 0 : index
    %c0_1 = arith.constant 0 : index
    %0 = vector.load %arg2[%c0, %c0_0, %c0_1] : memref<1x128x256xf32, #tpu.memory_space<vmem>>, vector<1x128x256xf32>
    %1 = vector.shape_cast %0 : vector<1x128x256xf32> to vector<128x256xf32>
    %c256_i32 = arith.constant 256 : i32
    %2 = arith.muli %arg1, %c256_i32 : i32
    %3 = tpu.assume_multiple %2, 256 : i32
    %4 = tpu.transpose %1, [1, 0] : vector<128x256xf32> -> vector<256x128xf32>
    %c0_2 = arith.constant 0 : index
    %5 = arith.index_cast %3 : i32 to index
    %c0_3 = arith.constant 0 : index
    %6 = vector.load %arg6[%c0_2, %5, %c0_3] : memref<1x256x128xf32, #tpu.memory_space<vmem>>, vector<1x256x128xf32>
    %7 = vector.shape_cast %6 : vector<1x256x128xf32> to vector<256x128xf32>
    %8 = vector.shape_cast %4 : vector<256x128xf32> to vector<1x256x128xf32>
    tpu.vector_store %arg6[%c0_2, %5, %c0_3], %8 {strides = array<i32>} : memref<1x256x128xf32, #tpu.memory_space<vmem>>, vector<1x256x128xf32>,
    %c0_i32 = arith.constant 0 : i32
    %9 = arith.cmpi eq, %arg1, %c0_i32 : i32
    %10 = arith.extui %9 : i1 to i32
    %c0_i32_4 = arith.constant 0 : i32
    %11 = arith.cmpi ne, %10, %c0_i32_4 : i32
    scf.if %11 {
      %cst_13 = arith.constant 0.000000e+00 : f32
      %21 = vector.broadcast %cst_13 : f32 to vector<320x128xf32>
      %c0_14 = arith.constant 0 : index
      %c0_15 = arith.constant 0 : index
      %22 = vector.load %arg7[%c0_14, %c0_15] : memref<320x128xf32, #tpu.memory_space<vmem>>, vector<320x128xf32>
      tpu.vector_store %arg7[%c0_14, %c0_15], %21 {strides = array<i32>} : memref<320x128xf32, #tpu.memory_space<vmem>>, vector<320x128xf32>,
    } else {
    }
    %c0_5 = arith.constant 0 : index
    %c0_6 = arith.constant 0 : index
    %12 = vector.load %arg7[%c0_5, %c0_6] : memref<320x128xf32, #tpu.memory_space<vmem>>, vector<320x128xf32>
    %c0_7 = arith.constant 0 : index
    %c0_8 = arith.constant 0 : index
    %13 = vector.load %arg3[%c0_7, %c0_8] : memref<320x256xbf16, #tpu.memory_space<vmem>>, vector<320x256xbf16>
    %14 = arith.truncf %1 : vector<128x256xf32> to vector<128x256xbf16>
    %cst = arith.constant dense<0.000000e+00> : vector<320x128xf32>
    %15 = tpu.matmul %13, %14, %cst {dimension_numbers = #tpu.dot_dimension_numbers<[1], [1], [0], [0], [0, 0, 1, 0], [], []>} : vector<320x256xbf16>, vector<128x256xbf16>, vector<320x128xf32> -> vector<320x128xf32>
    %16 = arith.addf %12, %15 : vector<320x128xf32>
    %c0_9 = arith.constant 0 : index
    %c0_10 = arith.constant 0 : index
    %17 = vector.load %arg7[%c0_9, %c0_10] : memref<320x128xf32, #tpu.memory_space<vmem>>, vector<320x128xf32>
    tpu.vector_store %arg7[%c0_9, %c0_10], %16 {strides = array<i32>} : memref<320x128xf32, #tpu.memory_space<vmem>>, vector<320x128xf32>,
    %c0_i32_11 = arith.constant 0 : i32
    %18 = arith.cmpi eq, %arg1, %c0_i32_11 : i32
    %19 = arith.extui %18 : i1 to i32
    %c0_i32_12 = arith.constant 0 : i32
    %20 = arith.cmpi ne, %19, %c0_i32_12 : i32
    scf.if %20 {
      %c0_13 = arith.constant 0 : index
      %c0_14 = arith.constant 0 : index
      %21 = memref.load %arg5[%c0_13, %c0_14] : memref<1x1xf32, #tpu.memory_space<smem>>
      %c0_15 = arith.constant 0 : index
      %c0_16 = arith.constant 0 : index
      %22 = vector.load %arg7[%c0_15, %c0_16] : memref<320x128xf32, #tpu.memory_space<vmem>>, vector<32x128xf32>
      %c0_17 = arith.constant 0 : index
      %c0_18 = arith.constant 0 : index
      %23 = vector.load %arg4[%c0_17, %c0_18] : memref<320x1xf32, #tpu.memory_space<vmem>>, vector<32x1xf32>
      %24 = vector.broadcast %23 : vector<32x1xf32> to vector<32x128xf32>
      %25 = arith.addf %22, %24 : vector<32x128xf32>
      %c32 = arith.constant 32 : index
      %c0_19 = arith.constant 0 : index
      %26 = vector.load %arg7[%c32, %c0_19] : memref<320x128xf32, #tpu.memory_space<vmem>>, vector<32x128xf32>
      %c32_20 = arith.constant 32 : index
      %c0_21 = arith.constant 0 : index
      %27 = vector.load %arg4[%c32_20, %c0_21] : memref<320x1xf32, #tpu.memory_space<vmem>>, vector<32x1xf32>
      %28 = vector.broadcast %27 : vector<32x1xf32> to vector<32x128xf32>
      %29 = arith.addf %26, %28 : vector<32x128xf32>
      %cst_22 = arith.constant dense<0.000000e+00> : vector<128x128xf32>
      %30 = tpu.matmul %29, %25, %cst_22 {dimension_numbers = #tpu.dot_dimension_numbers<[0], [0], [1], [1], [0, 1, 1, 1], [], []>} : vector<32x128xf32>, vector<32x128xf32>, vector<128x128xf32> -> vector<128x128xf32>
      %cst_23 = arith.constant dense<0xFF800000> : vector<128xf32>
      %31 = vector.multi_reduction <maximumf>, %30, %cst_23 [1] : vector<128x128xf32> to vector<128xf32>
      %32 = vector.shape_cast %31 : vector<128xf32> to vector<128x1xf32>
      %33 = vector.broadcast %32 : vector<128x1xf32> to vector<128x128xf32>
      %34 = arith.subf %30, %33 : vector<128x128xf32>
      %35 = math.exp %34 : vector<128x128xf32>
      %cst_24 = arith.constant dense<0.000000e+00> : vector<128xf32>
      %36 = vector.multi_reduction <add>, %35, %cst_24 [1] : vector<128x128xf32> to vector<128xf32>
      %37 = vector.shape_cast %36 : vector<128xf32> to vector<128x1xf32>
      %38 = tpu.reciprocal %37 {approx = true} : vector<128x1xf32> -> vector<128x1xf32>
      %39 = vector.broadcast %38 : vector<128x1xf32> to vector<128x128xf32>
      %40 = arith.mulf %35, %39 : vector<128x128xf32>
      %c64 = arith.constant 64 : index
      %c0_25 = arith.constant 0 : index
      %41 = vector.load %arg7[%c64, %c0_25] : memref<320x128xf32, #tpu.memory_space<vmem>>, vector<256x128xf32>
      %42 = arith.truncf %41 : vector<256x128xf32> to vector<256x128xbf16>
      %43 = arith.truncf %40 : vector<128x128xf32> to vector<128x128xbf16>
      %cst_26 = arith.constant dense<0.000000e+00> : vector<256x128xf32>
      %44 = tpu.matmul %42, %43, %cst_26 {dimension_numbers = #tpu.dot_dimension_numbers<[1], [1], [0], [0], [0, 0, 1, 0], [], []>} : vector<256x128xbf16>, vector<128x128xbf16>, vector<256x128xf32> -> vector<256x128xf32>
      %c64_27 = arith.constant 64 : index
      %c0_28 = arith.constant 0 : index
      %45 = vector.load %arg4[%c64_27, %c0_28] : memref<320x1xf32, #tpu.memory_space<vmem>>, vector<256x1xf32>
      %46 = vector.broadcast %45 : vector<256x1xf32> to vector<256x128xf32>
      %47 = arith.addf %44, %46 : vector<256x128xf32>
      %c0_29 = arith.constant 0 : index
      %c0_30 = arith.constant 0 : index
      %c0_31 = arith.constant 0 : index
      %48 = vector.load %arg6[%c0_29, %c0_30, %c0_31] : memref<1x256x128xf32, #tpu.memory_space<vmem>>, vector<1x256x128xf32>
      %49 = vector.shape_cast %48 : vector<1x256x128xf32> to vector<256x128xf32>
      %50 = vector.broadcast %21 : f32 to vector<256x128xf32>
      %51 = arith.mulf %50, %47 : vector<256x128xf32>
      %52 = arith.addf %49, %51 : vector<256x128xf32>
      %c0_32 = arith.constant 0 : index
      %c0_33 = arith.constant 0 : index
      %c0_34 = arith.constant 0 : index
      %53 = vector.load %arg6[%c0_32, %c0_33, %c0_34] : memref<1x256x128xf32, #tpu.memory_space<vmem>>, vector<1x256x128xf32>
      %54 = vector.shape_cast %53 : vector<1x256x128xf32> to vector<256x128xf32>
      %55 = vector.shape_cast %52 : vector<256x128xf32> to vector<1x256x128xf32>
      tpu.vector_store %arg6[%c0_32, %c0_33, %c0_34], %55 {strides = array<i32>} : memref<1x256x128xf32, #tpu.memory_space<vmem>>, vector<1x256x128xf32>,
    } else {
    }
    return
  }
  func.func @transform_0(%arg0: i32, %arg1: i32) -> (i32, i32, i32) {
    %c0_i32 = arith.constant 0 : i32
    %c0_i32_0 = arith.constant 0 : i32
    return %arg0, %c0_i32, %arg1 : i32, i32, i32
  }
  func.func @transform_1(%arg0: i32, %arg1: i32) -> (i32, i32) {
    %c0_i32 = arith.constant 0 : i32
    %c0_i32_0 = arith.constant 0 : i32
    return %c0_i32, %arg1 : i32, i32
  }
  func.func @transform_2(%arg0: i32, %arg1: i32) -> (i32, i32) {
    %c0_i32 = arith.constant 0 : i32
    %c0_i32_0 = arith.constant 0 : i32
    %c0_i32_1 = arith.constant 0 : i32
    return %c0_i32, %c0_i32_0 : i32, i32
  }
  func.func @transform_3(%arg0: i32, %arg1: i32) -> (i32, i32) {
    %c0_i32 = arith.constant 0 : i32
    %c0_i32_0 = arith.constant 0 : i32
    %c0_i32_1 = arith.constant 0 : i32
    return %c0_i32, %c0_i32_0 : i32, i32
  }
  func.func @transform_4(%arg0: i32, %arg1: i32) -> (i32, i32, i32) {
    %c0_i32 = arith.constant 0 : i32
    %c0_i32_0 = arith.constant 0 : i32
    %c0_i32_1 = arith.constant 0 : i32
    return %arg0, %c0_i32, %c0_i32_0 : i32, i32, i32
  }
}

</mosaic_0001>

<bundles_post_ra>
// kernel: tpu_custom_call.1
= control target key start
LH: loop header
LB: loop body
LE: loop exit
PB: predicated region body
PF: predicated region fallthrough
CT: control target
= control target key end

     0   :  { %s3624_s0 = inlined_call_operand.hbm [shape: f32[2,128,256], index: 0, kind: input, shape index: {}]   ;;  %s3625_s1 = inlined_call_operand.vmem [shape: bf16[320,256], index: 1, kind: input, shape index: {}]   ;;  %s3626_s2 = inlined_call_operand.vmem [shape: f32[320,1], index: 2, kind: input, shape index: {}]   ;;  %s3627_s3 = inlined_call_operand.<no memory space> [shape: f32[1,1], index: 3, kind: input, shape index: {}]   ;;  %s3628_s4 = inlined_call_operand.hbm [shape: f32[2,256,128], index: 4, kind: output, shape index: {}]  }
   0x1   :  { %9 = sst [smem:[#allocation3]] %s3627_s3 }
   0x2   :  { %10 = vsyncpa [#allocation5], 0 }
   0x3   :  { %12 = vsyncpa [#allocation5 + $0x1], 0 }
   0x4   :  { %13 = vsyncpa [#allocation6], 0 }
   0x5   :  { %15 = vsyncpa [#allocation6 + $0x1], 0  ;;  %s2652_s17 = smov 0   ;;  %s2654_s18 = smov 0  }
   0x6   :  { %s2656_s19 = smov 0   ;;  %s2658_s20 = smov 0  }
   0x7   :  { %s2660_s21 = smov 0   ;;  %s2662_s22 = smov 0  }
   0x8 LB: > { %s2091_s3 = sadd.s32 4294967295, %s2615_s22   ;;  %s2092_s23 = sadd.s32 4294967294, %s2615_s22   ;;  %s2615_s22 = sphi %s2662_s22, %s21_s22   ;;  %s2611_s21 = sphi %s2660_s21, %s3657_s21   ;;  %s2607_s20 = sphi %s2658_s20, %s3656_s20   ;;  %s2603_s19 = sphi %s2656_s19, %s3655_s19   ;;  %s2599_s18 = sphi %s2654_s18, %s3654_s18   ;;  %s2595_s17 = sphi %s2652_s17, %s3653_s17  }
   0x9   : > { %s33_s24 = sadd.s32 1, %s2611_s21  ;;  %s42_s25 = sadd.s32 1, %s2603_s19 }
   0xa   : > { %p35_p0 = scmp.ge.s32.totalorder %s33_s24, 2  ;;  %p49_p1 = scmp.ne.s32.totalorder %s2603_s19, %s2599_s18 }
   0xb   : > { %p50_p2 = scmp.eq.s32.totalorder %s2615_s22, 0  ;;  %p55_p3 = scmp.ne.s32.totalorder %s2599_s18, %s2595_s17 }
   0xc   : > { %s3659_s24 = smov (%p35_p0, %s33_s24), 0  ;;  %p56_p5 = scmp.eq.s32.totalorder %s2091_s3, 0 }
   0xd   : > { %p2693_p4 = por %p50_p2, %p49_p1  ;;  %s37_s27 = ssub.s32 %s2611_s21, %s3659_s24 }
   0xe   : > { %p147_p6 = scmp.eq.s32.totalorder %s2091_s3, 1  ;;  %p40_p7 = scmp.eq.s32.totalorder %s37_s27, 0 }
   0xf   : > { %p2699_p8 = por %p56_p5, %p55_p3  ;;  %p153_p10 = scmp.eq.s32.totalorder %s2092_s23, 1 }
  0x10   : > { %p2703_p9 = por %p147_p6, %p49_p1  ;;  %p2317_p13 = scmp.lt.s32.totalorder %s2615_s22, 2 }
  0x11   : > { %s2708_s30 = scalar_select %p40_p7, %s2603_s19, %s42_s25  }
  0x12   : > { %p2710_p11 = por %p153_p10, %p55_p3  ;;  %s188_s6 = sand.u32 1, %s2603_s19  }
  0x13   : > { %s2096_s7 = sshll.u32 %s188_s6, 8  ;;  %s2163_s8 = sshll.u32 %s2611_s21, 12 }
  0x14   : > { %s200_s11 = scalar_lea.hbm %s3624_s0, %s2163_s8  ;;  %s192_s12 = scalar_lea.vmem [#allocation4], %s2096_s7 }
  0x15   : > { %s201_s13 = sshll.u32 %s192_s12, 4  ;;  %p2723_p0 = pnand %p2317_p13, %p2693_p4  ;;  %s202_s13 = int_to_ptr.vmem [resolvable:$true] %s201_s13 }
  0x16   : > { %p2099_p1 = scmp.ge.s32.totalorder %s2615_s22, 1  ;;  %s189_s15 = scalar_lea.sflag [#allocation5], %s188_s6 }
  0x17   : > { %p2509_p2 = pneg %p2723_p0  ;;  %s2520_s16 = scalar_lea.vmem %s202_s13, 4096 }
  0x18   : > { %p2521_p3 = scmp.ne.s32.totalorder %s202_s13, %s2520_s16  ;;  %s2617_s3 = smov [#allocation4]  }
  0x19   : > { %s2525_s23 = sshll.u32 %s2617_s3, 4  ;;  %s2526_s23 = int_to_ptr.vmem [resolvable:$false] %s2525_s23 }
  0x1a   : > { %p2523_p5 = pnand %p2521_p3, %p2509_p2  ;;  %s2527_s25 = scalar_lea.vmem %s2526_s23, 8192 }
  0x1b   : > { %p2528_p7 = scmp.lt.s32.totalorder %s202_s13, %s2526_s23  ;;  %p2529_p10 = scmp.lt.s32.totalorder %s2527_s25, %s2520_s16 }
  0x1c   : > { %p2524_p6 = pneg %p2523_p5 }
  0x1d   : > { %p2530_p12 = por %p2529_p10, %p2528_p7 }
  0x1f   : > { %p2531_p4 = pnand %p2530_p12, %p2524_p6 }
  0x21   : > { %2534 = shalt.err (!%p2531_p4)
}
  0x22   : > { %s2618_s26 = smov 256   ;;  %s2619_s27 = smov 16  }
  0x23   : > { %2312 = dma.hbm_to_vmem [thread:$0]  (!%p2723_p0), %s200_s11, 4096, %s202_s13, %s189_s15, %s2618_s26, %s2618_s26, %s2619_s27  }
  0x24   : > { %p209_p13 = scmp.lt.s32.totalorder %s2615_s22, 3 }
  0x26   : > { %p210_p2 = pnand %p2099_p1, %p209_p13 }
  0x28   : > { %213 = sbr.rel (%p210_p2) target bundleno = 1366 (0x556), region = 36 }
  0x2d   : > { %s2736_s6 = sand.u32 1, %s2599_s18  }
  0x2e   : > { %s2100_s7 = sshll.u32 %s2736_s6, 8  ;;  %s216_s8 = scalar_lea.sflag [#allocation5], %s2736_s6 }
  0x2f   : > { %s2742_s9 = scalar_lea.vmem [#allocation4], %s2100_s7 }
  0x30   : > { %2586 = dma.done.wait (%p2699_p8), %s216_s8, 4096  }
  0x31   : > { %2588 = vsyncadd (%p2699_p8), %s216_s8, 4294963200  ;;  %v2620_v0 = vmov 0   ;;  %v286_v1 = vld [vmem:[%s2742_s9 + $0xe8] sm:$0xff]  ;;  %v288_v2 = vld [vmem:[%s2742_s9 + $0xf8] sm:$0xff]  ;;  %vm1100_vm0 = vcmask 261120   ;;  %s1003_s10 = sld [smem:[#allocation3]] }
  0x32   : > { %2374 = vset.pattern.permute.xlu1 %v2620_v0  ;;  %2373 = vset.pattern.permute.xlu0 %v2620_v0  ;;  %v285_v3 = vld [vmem:[%s2742_s9 + $0xe0] sm:$0xff]  ;;  %v526_v4 = vpack.c.bf16 %v288_v2, %v286_v1  ;;  %v287_v5 = vld [vmem:[%s2742_s9 + $0xf0] sm:$0xff]  ;;  %v282_v6 = vld [vmem:[%s2742_s9 + $0xc8] sm:$0xff]  ;;  %s3473_s11 = scalar_lea.vmem [#allocation7], %s2100_s7  ;;  %s2164_s7 = sshll.u32 %s2607_s20, 12 }
  0x33   : > { %v284_v7 = vld [vmem:[%s2742_s9 + $0xd8] sm:$0xff]  ;;  %v525_v8 = vpack.c.bf16 %v287_v5, %v285_v3  ;;  %v281_v10 = vld [vmem:[%s2742_s9 + $0xc0] sm:$0xff]  ;;  %v283_v11 = vld [vmem:[%s2742_s9 + $0xd0] sm:$0xff]  ;;  %s1990_s12 = sshll.u32 %s3473_s11, 4  ;;  %s3571_s15 = scalar_lea.hbm %s3628_s4, %s2164_s7  ;;  %s3573_s12 = int_to_ptr.vmem [resolvable:$true] %s1990_s12 }
  0x34   : > { %v524_v9 = vpack.c.bf16 %v284_v7, %v282_v6  ;;  %727 = vmatprep.subr.bf16.mxu0 %v526_v4  ;;  %2289 = vmatprep.subr.bf16.mxu1 %v526_v4  ;;  %v2757_v12 = vld [vmem:[%s2742_s9 + $0xa8] sm:$0xff]  ;;  %v2760_v13 = vld [vmem:[%s2742_s9 + $0xb8] sm:$0xff]  ;;  %v523_v14 = vpack.c.bf16 %v283_v11, %v281_v10  ;;  %v2768_v17 = vld [vmem:[%s2742_s9 + $0xa0] sm:$0xff]  ;;  %s1977_s20 = scalar_lea.sflag [#allocation6], %s2736_s6  ;;  %s2535_s16 = scalar_lea.vmem %s3573_s12, 4096 }
  0x35   : > { %728 = vmatpush1.bf16.xpose.msra.mxu0 %v525_v8  ;;  %2297 = vmatpush1.bf16.xpose.msra.mxu1 %v525_v8  ;;  %v522_v15 = vpack.c.bf16 %v2760_v13, %v2757_v12  ;;  %v2377_v16 = vld [vmem:[%s3625_s1 + $0x4] ss:$8 sps:$4 sm:$0xff]   ;;  %v2771_v18 = vld [vmem:[%s2742_s9 + $0xb0] sm:$0xff]  ;;  %v2777_v20 = vld [vmem:[%s2742_s9 + $0x98] sm:$0xff]  ;;  %p2536_p8 = scmp.ne.s32.totalorder %s3573_s12, %s2535_s16  ;;  %s2621_s3 = smov [#allocation7]  }
  0x36   : > { %729 = vmatprep.subr.bf16.mxu0 %v524_v9  ;;  %2290 = vmatprep.subr.bf16.mxu1 %v524_v9  ;;  %v2774_v19 = vld [vmem:[%s2742_s9 + $0x88] sm:$0xff]  ;;  %v521_v21 = vpack.c.bf16 %v2771_v18, %v2768_v17  ;;  %v1042_v22 = vld [vmem:[%s3626_s2 + $0x30] sm:$0xff]  ;;  %v1040_v23 = vld [vmem:[%s3626_s2 + $0x20] sm:$0xff]  ;;  %s2539_s23 = sshll.u32 %s2621_s3, 4  ;;  %s2540_s23 = int_to_ptr.vmem [resolvable:$false] %s2539_s23 }
  0x37   : > { %759 = vmatprep.mubr.bf16.mxu0 %v2377_v16  ;;  %v520_v24 = vpack.c.bf16 %v2777_v20, %v2774_v19  ;;  %1056 = vperm.xlu1 %2374, %v1042_v22   ;;  %v1043_v25 = vld [vmem:[%s3626_s2 + $0x38] sm:$0xff]  ;;  %v1041_v26 = vld [vmem:[%s3626_s2 + $0x28] sm:$0xff]  ;;  %v2796_v27 = vld [vmem:[%s2742_s9 + $0x80] sm:$0xff]  ;;  %p2537_p12 = pnand %p2536_p8, %p2703_p9  ;;  %s2541_s25 = scalar_lea.vmem %s2540_s23, 8192 }
  0x38   : > { %1046 = vperm.xlu0 %2373, %v1040_v23   ;;  %v2799_v28 = vld [vmem:[%s2742_s9 + $0x90] sm:$0xff]  ;;  %v2802_v29 = vld [vmem:[%s2742_s9 + $0x68] sm:$0xff]  ;;  %v2805_v30 = vld [vmem:[%s2742_s9 + $0x78] sm:$0xff]  ;;  %p2542_p1 = scmp.lt.s32.totalorder %s3573_s12, %s2540_s23  ;;  %p2543_p3 = scmp.lt.s32.totalorder %s2541_s25, %s2535_s16 }
  0x39   : > { %v1010_v31 = vld [vmem:[%s3626_s2 + $0x10] sm:$0xff]  ;;  %v1011_v32 = vld [vmem:[%s3626_s2 + $0x18] sm:$0xff]  ;;  %v519_v33 = vpack.c.bf16 %v2799_v28, %v2796_v27  ;;  %v1008_v34 = vld [vmem:[%s3626_s2] sm:$0xff]  ;;  %v518_v35 = vpack.c.bf16 %v2805_v30, %v2802_v29  ;;  %p2538_p0 = pneg %p2537_p12 }
  0x3a   : > { %v1009_v36 = vld [vmem:[%s3626_s2 + $0x8] sm:$0xff]  ;;  %v2824_v37 = vld [vmem:[%s2742_s9 + $0x60] sm:$0xff]  ;;  %v2827_v38 = vld [vmem:[%s2742_s9 + $0x70] sm:$0xff]  ;;  %p2544_p5 = por %p2543_p3, %p2542_p1 }
  0x3b   : > { %1061 = vperm.xlu1 %2374, %v1043_v25   ;;  %v2830_v39 = vld [vmem:[%s2742_s9 + $0x48] sm:$0xff]  ;;  %v2833_v40 = vld [vmem:[%s2742_s9 + $0x58] sm:$0xff]  ;;  %v517_v41 = vpack.c.bf16 %v2827_v38, %v2824_v37  ;;  %v2840_v43 = vld [vmem:[%s2742_s9 + $0x40] sm:$0xff] }
  0x3c   : > { %1051 = vperm.xlu0 %2373, %v1041_v26   ;;  %v516_v42 = vpack.c.bf16 %v2833_v40, %v2830_v39  ;;  %v2843_v44 = vld [vmem:[%s2742_s9 + $0x50] sm:$0xff]  ;;  %v2846_v45 = vld [vmem:[%s2742_s9 + $0x28] sm:$0xff]  ;;  %v2849_v46 = vld [vmem:[%s2742_s9 + $0x38] sm:$0xff]  ;;  %p2545_p6 = pnand %p2544_p5, %p2538_p0 }
  0x3d   : > { %730 = vmatpush1.bf16.xpose.msra.mxu0 %v523_v14  ;;  %2298 = vmatpush1.bf16.xpose.msra.mxu1 %v523_v14  ;;  %v515_v47 = vpack.c.bf16 %v2843_v44, %v2840_v43  ;;  %v514_v48 = vpack.c.bf16 %v2849_v46, %v2846_v45  ;;  %v2856_v49 = vld [vmem:[%s2742_s9 + $0x20] sm:$0xff]  ;;  %v2859_v50 = vld [vmem:[%s2742_s9 + $0x30] sm:$0xff]  ;;  %v2862_v51 = vld [vmem:[%s2742_s9 + $0x8] sm:$0xff] }
  0x3e   : > { %731 = vmatprep.subr.bf16.mxu0 %v522_v15  ;;  %2291 = vmatprep.subr.bf16.mxu1 %v522_v15  ;;  %v2865_v52 = vld [vmem:[%s2742_s9 + $0x18] sm:$0xff]  ;;  %v513_v53 = vpack.c.bf16 %v2859_v50, %v2856_v49  ;;  %v2872_v55 = vld [vmem:[%s2742_s9] sm:$0xff]  ;;  %v2875_v56 = vld [vmem:[%s2742_s9 + $0x10] sm:$0xff] }
  0x3f   : > { %1024 = vperm.xlu1 %2374, %v1010_v31   ;;  %v512_v54 = vpack.c.bf16 %v2865_v52, %v2862_v51  ;;  %v511_v57 = vpack.c.bf16 %v2875_v56, %v2872_v55  ;;  %v2375_v58 = vld [vmem:[%s3625_s1] ss:$8 sps:$4 sm:$0xff]   ;;  %v2378_v59 = vld [vmem:[%s3625_s1 + $0x14] ss:$8 sps:$4 sm:$0xff]   ;;  %v2380_v60 = vld [vmem:[%s3625_s1 + $0x10] ss:$8 sps:$4 sm:$0xff]  }
  0x40   : > { %1029 = vperm.xlu0 %2373, %v1011_v32   ;;  %v2381_v61 = vld [vmem:[%s3625_s1 + $0x24] ss:$8 sps:$4 sm:$0xff]   ;;  %v2383_v62 = vld [vmem:[%s3625_s1 + $0x20] ss:$8 sps:$4 sm:$0xff]   ;;  %v2384_v63 = vld [vmem:[%s3625_s1 + $0x34] ss:$8 sps:$4 sm:$0xff]  }
  0x41   : > { %v2386_v0 = vld [vmem:[%s3625_s1 + $0x30] ss:$8 sps:$4 sm:$0xff]   ;;  %v2389_v1 = vld [vmem:[%s3625_s1 + $0x124] ss:$8 sps:$4 sm:$0xff]   ;;  %v2387_v2 = vld [vmem:[%s3625_s1 + $0x120] ss:$8 sps:$4 sm:$0xff]  }
  0x42   : > { %903 = vmatprep.mubr.bf16.mxu1 %v2389_v1  ;;  %v2390_v3 = vld [vmem:[%s3625_s1 + $0x134] ss:$8 sps:$4 sm:$0xff]   ;;  %v2392_v4 = vld [vmem:[%s3625_s1 + $0x130] ss:$8 sps:$4 sm:$0xff]  }
  0x43   : > { %1014 = vperm.xlu1 %2374, %v1008_v34  }
  0x44   : > { %1019 = vperm.xlu0 %2373, %v1009_v36  }
  0x45   : > { %732 = vmatpush1.bf16.xpose.msra.mxu0 %v521_v21  ;;  %2299 = vmatpush1.bf16.xpose.msra.mxu1 %v521_v21 }
  0x46   : > { %733 = vmatprep.subr.bf16.mxu0 %v520_v24  ;;  %2292 = vmatprep.subr.bf16.mxu1 %v520_v24 }
  0x4d   : > { %734 = vmatpush1.bf16.xpose.msra.mxu0 %v519_v33  ;;  %2300 = vmatpush1.bf16.xpose.msra.mxu1 %v519_v33 }
  0x4e   : > { %735 = vmatprep.subr.bf16.mxu0 %v518_v35  ;;  %2293 = vmatprep.subr.bf16.mxu1 %v518_v35 }
  0x55   : > { %736 = vmatpush1.bf16.xpose.msra.mxu0 %v517_v41  ;;  %2301 = vmatpush1.bf16.xpose.msra.mxu1 %v517_v41 }
  0x56   : > { %737 = vmatprep.subr.bf16.mxu0 %v516_v42  ;;  %2294 = vmatprep.subr.bf16.mxu1 %v516_v42 }
  0x5d   : > { %738 = vmatpush1.bf16.xpose.msra.mxu0 %v515_v47  ;;  %2302 = vmatpush1.bf16.xpose.msra.mxu1 %v515_v47 }
  0x5e   : > { %739 = vmatprep.subr.bf16.mxu0 %v514_v48  ;;  %2295 = vmatprep.subr.bf16.mxu1 %v514_v48 }
  0x65   : > { %740 = vmatpush1.bf16.xpose.msra.mxu0 %v513_v53  ;;  %2303 = vmatpush1.bf16.xpose.msra.mxu1 %v513_v53 }
  0x66   : > { %741 = vmatprep.subr.bf16.mxu0 %v512_v54  ;;  %2296 = vmatprep.subr.bf16.mxu1 %v512_v54 }
  0x6d   : > { %742 = vmatpush1.bf16.xpose.msra.mxu0 %v511_v57  ;;  %2304 = vmatpush1.bf16.xpose.msra.mxu1 %v511_v57 }
  0x74   : > { %760 = vmatmul.mubr.bf16.vlgmr.msra.gmra.mxu0 %v2375_v58  ;;  %904 = vmatmul.mubr.bf16.vlgmr.msra.gmra.mxu1 %v2387_v2 }
  0x75   : > { %767 = vmatprep.mubr.bf16.mxu0 %v2378_v59  ;;  %911 = vmatprep.mubr.bf16.mxu1 %v2390_v3 }
  0x7c   : > { %768 = vmatmul.mubr.bf16.gmra.mxu0 %v2380_v60  ;;  %912 = vmatmul.mubr.bf16.gmra.mxu1 %v2392_v4 }
  0x7d   : > { %775 = vmatprep.mubr.bf16.mxu0 %v2381_v61 }
  0x84   : > { %776 = vmatmul.mubr.bf16.gmra.mxu0 %v2383_v62 }
  0x85   : > { %783 = vmatprep.mubr.bf16.mxu0 %v2384_v63 }
  0x8c   : > { %784 = vmatmul.mubr.bf16.gmra.mxu0 %v2386_v0 }
  0xb2   : > { %v1057_v6 = vpop.permute.xlu1 %1056 }
  0xb3   : > { %v1047_v5 = vpop.permute.xlu0 %1046 }
  0xb6   : > { %v1062_v10 = vpop.permute.xlu1 %1061 }
  0xb7   : > { %v1052_v8 = vpop.permute.xlu0 %1051 }
  0xba   : > { %v1025_v21 = vpop.permute.xlu1 %1024 }
  0xbb   : > { %v1030_v15 = vpop.permute.xlu0 %1029 }
  0xbe   : > { %v1015_v32 = vpop.permute.xlu1 %1014 }
  0xbf   : > { %v1020_v25 = vpop.permute.xlu0 %1019 }
 0x134   : > { %v761_v7 = vpop.f32.mrf.mxu0  ;;  %v2912_v61 = vpop.f32.mrf.mxu1 }
 0x135   : > { %v1032_v41 = vadd.f32 %v1015_v32, %v761_v7  ;;  %3637 = vst [vmem:[#allocation10_spill] sm:$0xff] %v2912_v61 }
 0x136   : > { %v763_v9 = vpop.f32.mrf.mxu0  ;;  %v907_v62 = vpop.f32.mrf.mxu1 }
 0x138   : > { %v764_v11 = vpop.f32.mrf.mxu0  ;;  %v2914_v63 = vpop.f32.mrf.mxu1 }
 0x139   : > { %v1033_v34 = vadd.f32 %v1020_v25, %v764_v11 }
 0x13a   : > { %v766_v14 = vpop.f32.mrf.mxu0  ;;  %v910_v1 = vpop.f32.mrf.mxu1 }
 0x13c   : > { %v769_v16 = vpop.f32.mrf.mxu0  ;;  %v2918_v2 = vpop.f32.mrf.mxu1 }
 0x13d   : > { %v1034_v31 = vadd.f32 %v1025_v21, %v769_v16  ;;  %3638 = vst [vmem:[#allocation11_spill] sm:$0xff] %v2918_v2 }
 0x13e   : > { %v771_v22 = vpop.f32.mrf.mxu0  ;;  %v915_v3 = vpop.f32.mrf.mxu1 }
 0x140   : > { %v772_v23 = vpop.f32.mrf.mxu0  ;;  %v2920_v4 = vpop.f32.mrf.mxu1 }
 0x141   : > { %v1035_v24 = vadd.f32 %v1030_v15, %v772_v23  ;;  %3639 = vst [vmem:[#allocation12_spill] sm:$0xff] %v2920_v4 }
 0x142   : > { %v774_v26 = vpop.f32.mrf.mxu0 }
 0x143   : > { %2209 = vmatprep.subr.mxu1 %v1035_v24 }
 0x144   : > { %v777_v33 = vpop.f32.mrf.mxu0  ;;  %2210 = vmatpush3.msra.mxu1 %v1035_v24 }
 0x145   : > { %v1064_v35 = vadd.f32 %v1047_v5, %v777_v33  ;;  %2211 = vmatprep.subr.mxu1 %v1034_v31  ;;  %v2393_v33 = vld [vmem:[%s3625_s1 + $0x44] ss:$8 sps:$4 sm:$0xff]  }
 0x146   : > { %v779_v36 = vpop.f32.mrf.mxu0  ;;  %2212 = vmatpush3.msra.mxu1 %v1034_v31  ;;  %791 = vmatprep.mubr.bf16.mxu0 %v2393_v33  ;;  %v2420_v33 = vld [vmem:[%s3625_s1 + $0xd4] ss:$8 sps:$4 sm:$0xff]  }
 0x147   : > { %2213 = vmatprep.subr.mxu1 %v1033_v34  ;;  %1068 = vxpose.xlu0.b32.start [1/4] (short) %v1064_v35, 128 }
 0x148   : > { %v780_v42 = vpop.f32.mrf.mxu0  ;;  %2214 = vmatpush3.msra.mxu1 %v1033_v34  ;;  %v2395_v34 = vld [vmem:[%s3625_s1 + $0x40] ss:$8 sps:$4 sm:$0xff]  }
 0x149   : > { %v1065_v47 = vadd.f32 %v1052_v8, %v780_v42  ;;  %2215 = vmatprep.subr.mxu1 %v1032_v41  ;;  %792 = vmatmul.mubr.bf16.gmra.mxu0 %v2395_v34  ;;  %v2422_v34 = vld [vmem:[%s3625_s1 + $0xd0] ss:$8 sps:$4 sm:$0xff]  }
 0x14a   : > { %v782_v48 = vpop.f32.mrf.mxu0  ;;  %2216 = vmatpush3.msra.mxu1 %v1032_v41 }
 0x14b   : > { %1069 = vxpose.xlu0.b32.cont [2/4] (short) %v1065_v47, 128 }
 0x14c   : > { %v785_v53 = vpop.f32.mrf.mxu0 }
 0x14d   : > { %v1066_v54 = vadd.f32 %v1057_v6, %v785_v53  ;;  %v918_v6 = vpop.f32.mrf.mxu1 }
 0x14e   : > { %v787_v57 = vpop.f32.mrf.mxu0 }
 0x14f   : > { %1070 = vxpose.xlu0.b32.cont [3/4] (short) %v1066_v54, 128 }
 0x150   : > { %v788_v58 = vpop.f32.mrf.mxu0 }
 0x151   : > { %v1067_v59 = vadd.f32 %v1062_v10, %v788_v58 }
 0x152   : > { %v790_v60 = vpop.f32.mrf.mxu0 }
 0x153   : > { %1071 = vxpose.xlu0.b32.end [4/4] (short) %v1067_v59, 128 }
 0x1c3   : > { %v1084_v7 = vpop.trf.xlu0 }
 0x1c4   : > { %2217 = vmatprep.mubr.msk.f32.mxu1 %vm1100_vm0, %v1084_v7  ;;  %v2396_v7 = vld [vmem:[%s3625_s1 + $0x54] ss:$8 sps:$4 sm:$0xff]  }
 0x1c5   : > { %799 = vmatprep.mubr.bf16.mxu0 %v2396_v7  ;;  %v2423_v7 = vld [vmem:[%s3625_s1 + $0xe4] ss:$8 sps:$4 sm:$0xff]  }
 0x1c7   : > { %v1085_v8 = vpop.trf.xlu0 }
 0x1c8   : > { %2218 = vmatmul.mubr.msk.f32.vlgmr.msra.gmra.mxu1 %vm1100_vm0, %v1085_v8  ;;  %v2398_v8 = vld [vmem:[%s3625_s1 + $0x50] ss:$8 sps:$4 sm:$0xff]  }
 0x1c9   : > { %800 = vmatmul.mubr.bf16.gmra.mxu0 %v2398_v8  ;;  %v2425_v8 = vld [vmem:[%s3625_s1 + $0xe0] ss:$8 sps:$4 sm:$0xff]  }
 0x1cb   : > { %v1086_v9 = vpop.trf.xlu0 }
 0x1cc   : > { %2220 = vmatprep.mubr.msk.f32.mxu1 %vm1100_vm0, %v1086_v9  ;;  %v2399_v9 = vld [vmem:[%s3625_s1 + $0x64] ss:$8 sps:$4 sm:$0xff]  }
 0x1cd   : > { %807 = vmatprep.mubr.bf16.mxu0 %v2399_v9  ;;  %v2426_v9 = vld [vmem:[%s3625_s1 + $0xf4] ss:$8 sps:$4 sm:$0xff]  }
 0x1cf   : > { %v1087_v10 = vpop.trf.xlu0 }
 0x1d0   : > { %2221 = vmatmul.mubr.msk.f32.gmra.mxu1 %vm1100_vm0, %v1087_v10  ;;  %v2401_v10 = vld [vmem:[%s3625_s1 + $0x60] ss:$8 sps:$4 sm:$0xff]  }
 0x1d1   : > { %808 = vmatmul.mubr.bf16.gmra.mxu0 %v2401_v10  ;;  %v2428_v10 = vld [vmem:[%s3625_s1 + $0xf0] ss:$8 sps:$4 sm:$0xff]  }
 0x1d3   : > { %v1088_v11 = vpop.trf.xlu0 }
 0x1d4   : > { %2223 = vmatprep.mubr.msk.f32.mxu1 %vm1100_vm0, %v1088_v11  ;;  %v2402_v11 = vld [vmem:[%s3625_s1 + $0x74] ss:$8 sps:$4 sm:$0xff]  }
 0x1d5   : > { %815 = vmatprep.mubr.bf16.mxu0 %v2402_v11  ;;  %v2429_v11 = vld [vmem:[%s3625_s1 + $0x104] ss:$8 sps:$4 sm:$0xff]  }
 0x1d7   : > { %v1089_v14 = vpop.trf.xlu0 }
 0x1d8   : > { %2224 = vmatmul.mubr.msk.f32.gmra.mxu1 %vm1100_vm0, %v1089_v14  ;;  %v2404_v14 = vld [vmem:[%s3625_s1 + $0x70] ss:$8 sps:$4 sm:$0xff]  }
 0x1d9   : > { %816 = vmatmul.mubr.bf16.gmra.mxu0 %v2404_v14  ;;  %v2431_v14 = vld [vmem:[%s3625_s1 + $0x100] ss:$8 sps:$4 sm:$0xff]  }
 0x1db   : > { %v1090_v15 = vpop.trf.xlu0 }
 0x1dc   : > { %2226 = vmatprep.mubr.msk.f32.mxu1 %vm1100_vm0, %v1090_v15  ;;  %v2405_v15 = vld [vmem:[%s3625_s1 + $0x84] ss:$8 sps:$4 sm:$0xff]  }
 0x1dd   : > { %823 = vmatprep.mubr.bf16.mxu0 %v2405_v15  ;;  %v2432_v15 = vld [vmem:[%s3625_s1 + $0x114] ss:$8 sps:$4 sm:$0xff]  }
 0x1df   : > { %v1091_v16 = vpop.trf.xlu0 }
 0x1e0   : > { %2227 = vmatmul.mubr.msk.f32.gmra.mxu1 %vm1100_vm0, %v1091_v16  ;;  %v2407_v16 = vld [vmem:[%s3625_s1 + $0x80] ss:$8 sps:$4 sm:$0xff]  }
 0x1e1   : > { %824 = vmatmul.mubr.bf16.gmra.mxu0 %v2407_v16  ;;  %v2434_v16 = vld [vmem:[%s3625_s1 + $0x110] ss:$8 sps:$4 sm:$0xff]  }
 0x1e3   : > { %v1092_v21 = vpop.trf.xlu0 }
 0x1e4   : > { %2229 = vmatprep.mubr.msk.f32.mxu1 %vm1100_vm0, %v1092_v21  ;;  %v2408_v21 = vld [vmem:[%s3625_s1 + $0x94] ss:$8 sps:$4 sm:$0xff]  }
 0x1e5   : > { %831 = vmatprep.mubr.bf16.mxu0 %v2408_v21 }
 0x1e7   : > { %v1093_v22 = vpop.trf.xlu0 }
 0x1e8   : > { %2230 = vmatmul.mubr.msk.f32.gmra.mxu1 %vm1100_vm0, %v1093_v22  ;;  %v2410_v22 = vld [vmem:[%s3625_s1 + $0x90] ss:$8 sps:$4 sm:$0xff]  }
 0x1e9   : > { %832 = vmatmul.mubr.bf16.gmra.mxu0 %v2410_v22 }
 0x1eb   : > { %v1094_v23 = vpop.trf.xlu0 }
 0x1ec   : > { %2232 = vmatprep.mubr.msk.f32.mxu1 %vm1100_vm0, %v1094_v23  ;;  %v2411_v23 = vld [vmem:[%s3625_s1 + $0xa4] ss:$8 sps:$4 sm:$0xff]  }
 0x1ed   : > { %839 = vmatprep.mubr.bf16.mxu0 %v2411_v23 }
 0x1ef   : > { %v1095_v24 = vpop.trf.xlu0 }
 0x1f0   : > { %2233 = vmatmul.mubr.msk.f32.gmra.mxu1 %vm1100_vm0, %v1095_v24  ;;  %v2413_v24 = vld [vmem:[%s3625_s1 + $0xa0] ss:$8 sps:$4 sm:$0xff]  }
 0x1f1   : > { %840 = vmatmul.mubr.bf16.gmra.mxu0 %v2413_v24 }
 0x1f3   : > { %v1096_v25 = vpop.trf.xlu0 }
 0x1f4   : > { %2235 = vmatprep.mubr.msk.f32.mxu1 %vm1100_vm0, %v1096_v25  ;;  %v2414_v25 = vld [vmem:[%s3625_s1 + $0xb4] ss:$8 sps:$4 sm:$0xff]  }
 0x1f5   : > { %847 = vmatprep.mubr.bf16.mxu0 %v2414_v25 }
 0x1f7   : > { %v1097_v26 = vpop.trf.xlu0 }
 0x1f8   : > { %2236 = vmatmul.mubr.msk.f32.gmra.mxu1 %vm1100_vm0, %v1097_v26  ;;  %v2416_v26 = vld [vmem:[%s3625_s1 + $0xb0] ss:$8 sps:$4 sm:$0xff]  }
 0x1f9   : > { %848 = vmatmul.mubr.bf16.gmra.mxu0 %v2416_v26 }
 0x1fb   : > { %v1098_v31 = vpop.trf.xlu0 }
 0x1fc   : > { %2238 = vmatprep.mubr.msk.f32.mxu1 %vm1100_vm0, %v1098_v31  ;;  %v2417_v31 = vld [vmem:[%s3625_s1 + $0xc4] ss:$8 sps:$4 sm:$0xff]  }
 0x1fd   : > { %855 = vmatprep.mubr.bf16.mxu0 %v2417_v31 }
 0x1ff   : > { %v1099_v32 = vpop.trf.xlu0 }
 0x200   : > { %2239 = vmatmul.mubr.msk.f32.gmra.mxu1 %vm1100_vm0, %v1099_v32  ;;  %v2419_v32 = vld [vmem:[%s3625_s1 + $0xc0] ss:$8 sps:$4 sm:$0xff]  }
 0x201   : > { %856 = vmatmul.mubr.bf16.gmra.mxu0 %v2419_v32 }
 0x202   : > { %863 = vmatprep.mubr.bf16.mxu0 %v2420_v33 }
 0x209   : > { %864 = vmatmul.mubr.bf16.gmra.mxu0 %v2422_v34 }
 0x20a   : > { %871 = vmatprep.mubr.bf16.mxu0 %v2423_v7 }
 0x211   : > { %872 = vmatmul.mubr.bf16.gmra.mxu0 %v2425_v8 }
 0x212   : > { %879 = vmatprep.mubr.bf16.mxu0 %v2426_v9 }
 0x219   : > { %880 = vmatmul.mubr.bf16.gmra.mxu0 %v2428_v10 }
 0x21a   : > { %887 = vmatprep.mubr.bf16.mxu0 %v2429_v11 }
 0x221   : > { %888 = vmatmul.mubr.bf16.gmra.mxu0 %v2431_v14 }
 0x222   : > { %895 = vmatprep.mubr.bf16.mxu0 %v2432_v15 }
 0x229   : > { %896 = vmatmul.mubr.bf16.gmra.mxu0 %v2434_v16 }
 0x288   : > { %v2946_v35 = vpop.f32.mrf.mxu1 }
 0x28a   : > { %v2948_v36 = vpop.f32.mrf.mxu1 }
 0x290   : > { %v2950_v41 = vpop.f32.mrf.mxu1 }
 0x292   : > { %v2952_v42 = vpop.f32.mrf.mxu1 }
 0x298   : > { %v2954_v47 = vpop.f32.mrf.mxu1 }
 0x29a   : > { %v2956_v48 = vpop.f32.mrf.mxu1 }
 0x2a0   : > { %v2958_v53 = vpop.f32.mrf.mxu1 }
 0x2a2   : > { %v2960_v54 = vpop.f32.mrf.mxu1 }
 0x2a8   : > { %v2962_v57 = vpop.f32.mrf.mxu1 }
 0x2aa   : > { %v2964_v58 = vpop.f32.mrf.mxu1 }
 0x2b0   : > { %v2966_v59 = vpop.f32.mrf.mxu1 }
 0x2b2   : > { %v2968_v60 = vpop.f32.mrf.mxu1 }
 0x2b8   : > { %v2970_v62 = vpop.f32.mrf.mxu1 }
 0x2b9   : > { %1320 = vmax.xlane.f32.xlu0 %v2970_v62 }
 0x2ba   : > { %v2973_v1 = vpop.f32.mrf.mxu1 }
 0x2c0   : > { %v2975_v3 = vpop.f32.mrf.mxu1 }
 0x2c2   : > { %v2977_v6 = vpop.f32.mrf.mxu1 }
 0x2c3   : > { %1322 = vmax.xlane.f32.xlu1 %v2977_v6 }
 0x2c7   : > { %1324 = vmax.xlane.f32.xlu1 %v2975_v3 }
 0x2cb   : > { %1318 = vmax.xlane.f32.xlu1 %v2973_v1 }
 0x2cf   : > { %1314 = vmax.xlane.f32.xlu1 %v2968_v60 }
 0x2d3   : > { %1316 = vmax.xlane.f32.xlu1 %v2966_v59 }
 0x2d7   : > { %1310 = vmax.xlane.f32.xlu1 %v2964_v58 }
 0x2db   : > { %1312 = vmax.xlane.f32.xlu1 %v2962_v57 }
 0x2df   : > { %1306 = vmax.xlane.f32.xlu1 %v2960_v54 }
 0x2e3   : > { %1308 = vmax.xlane.f32.xlu1 %v2958_v53 }
 0x2e7   : > { %1302 = vmax.xlane.f32.xlu1 %v2956_v48 }
 0x2eb   : > { %1304 = vmax.xlane.f32.xlu1 %v2954_v47 }
 0x2ef   : > { %1298 = vmax.xlane.f32.xlu1 %v2952_v42 }
 0x2f3   : > { %1300 = vmax.xlane.f32.xlu1 %v2950_v41 }
 0x2f7   : > { %1294 = vmax.xlane.f32.xlu1 %v2948_v36 }
 0x2fb   : > { %1296 = vmax.xlane.f32.xlu1 %v2946_v35 }
 0x342   : > { %v1321_v33 = vpop.xlane.xlu0 %1320 }
 0x343   : > { %v1339_v7 = vsub.f32 %v2970_v62, %v1321_v33 }
 0x345   : > { %v1368_v10 = vmul.f32 1.442695, %v1339_v7 }
 0x34c   : > { %v1323_v21 = vpop.xlane.xlu1 %1322 }
 0x34d   : > { %v1340_v23 = vsub.f32 %v2977_v6, %v1323_v21 }
 0x34f   : > { %v1370_v31 = vmul.f32 1.442695, %v1340_v23 }
 0x350   : > { %v1325_v22 = vpop.xlane.xlu1 %1324 }
 0x351   : > { %v1341_v24 = vsub.f32 %v2975_v3, %v1325_v22 }
 0x353   : > { %v1372_v25 = vmul.f32 1.442695, %v1341_v24 }
 0x354   : > { %v1319_v26 = vpop.xlane.xlu1 %1318 }
 0x355   : > { %2435 = vpow2.f32 %v1372_v25  ;;  %v1338_v32 = vsub.f32 %v2973_v1, %v1319_v26 }
 0x356   : > { %2437 = vpow2.f32 %v1370_v31 }
 0x357   : > { %v1366_v8 = vmul.f32 1.442695, %v1338_v32 }
 0x358   : > { %v1315_v34 = vpop.xlane.xlu1 %1314 }
 0x359   : > { %2439 = vpow2.f32 %v1366_v8  ;;  %v1336_v11 = vsub.f32 %v2968_v60, %v1315_v34 }
 0x35a   : > { %2441 = vpow2.f32 %v1368_v10 }
 0x35b   : > { %v1362_v3 = vmul.f32 1.442695, %v1336_v11 }
 0x35c   : > { %v1317_v9 = vpop.xlane.xlu1 %1316 }
 0x35d   : > { %v1337_v14 = vsub.f32 %v2966_v59, %v1317_v9  ;;  %2443 = vpow2.f32 %v1362_v3 }
 0x35f   : > { %v1364_v16 = vmul.f32 1.442695, %v1337_v14 }
 0x360   : > { %v1311_v6 = vpop.xlane.xlu1 %1310 }
 0x361   : > { %v1334_v62 = vsub.f32 %v2964_v58, %v1311_v6  ;;  %2445 = vpow2.f32 %v1364_v16  ;;  %v793_v16 = vpop.f32.mrf.mxu0 }
 0x362   : > { %v3078_v15 = vpop.eup %2435 }
 0x363   : > { %1404 = vadd.xlane.f32.xlu1 %v3078_v15  ;;  %v3082_v21 = vpop.eup %2437  ;;  %v1358_v60 = vmul.f32 1.442695, %v1334_v62 }
 0x364   : > { %v1313_v1 = vpop.xlane.xlu1 %1312 }
 0x365   : > { %v1335_v23 = vsub.f32 %v2962_v57, %v1313_v1  ;;  %2447 = vpow2.f32 %v1358_v60  ;;  %v795_v60 = vpop.f32.mrf.mxu0 }
 0x366   : > { %v3086_v24 = vpop.eup %2439 }
 0x367   : > { %1402 = vadd.xlane.f32.xlu1 %v3082_v21  ;;  %v1360_v25 = vmul.f32 1.442695, %v1335_v23  ;;  %v3090_v31 = vpop.eup %2441 }
 0x368   : > { %v1307_v22 = vpop.xlane.xlu1 %1306 }
 0x369   : > { %v1332_v26 = vsub.f32 %v2960_v54, %v1307_v22  ;;  %2449 = vpow2.f32 %v1360_v25 }
 0x36a   : > { %v3094_v34 = vpop.eup %2443 }
 0x36b   : > { %1398 = vadd.xlane.f32.xlu1 %v3086_v24  ;;  %v1354_v33 = vmul.f32 1.442695, %v1332_v26 }
 0x36c   : > { %v1309_v59 = vpop.xlane.xlu1 %1308 }
 0x36d   : > { %v1333_v58 = vsub.f32 %v2958_v53, %v1309_v59  ;;  %2451 = vpow2.f32 %v1354_v33  ;;  %v796_v59 = vpop.f32.mrf.mxu0 }
 0x36e   : > { %v3099_v9 = vpop.eup %2445  ;;  %v1470_v26 = vpack.c.bf16 %v796_v59, %v793_v16 }
 0x36f   : > { %1400 = vadd.xlane.f32.xlu1 %v3090_v31  ;;  %v1356_v57 = vmul.f32 1.442695, %v1333_v58  ;;  %v798_v58 = vpop.f32.mrf.mxu0 }
 0x370   : > { %v1303_v32 = vpop.xlane.xlu1 %1302  ;;  %2257 = vmatprep.mubr.bf16.mxu1 %v1470_v26 }
 0x371   : > { %v1330_v8 = vsub.f32 %v2956_v48, %v1303_v32  ;;  %2453 = vpow2.f32 %v1356_v57 }
 0x372   : > { %v3103_v3 = vpop.eup %2447 }
 0x373   : > { %1394 = vadd.xlane.f32.xlu1 %v3094_v34  ;;  %v1350_v11 = vmul.f32 1.442695, %v1330_v8 }
 0x374   : > { %v1305_v7 = vpop.xlane.xlu1 %1304 }
 0x375   : > { %v1331_v54 = vsub.f32 %v2954_v47, %v1305_v7  ;;  %v3119_v7 = vpop.f32.mrf.mxu0 }
 0x376   : > { %v3107_v48 = vpop.eup %2449 }
 0x377   : > { %v1352_v10 = vmul.f32 1.442695, %v1331_v54  ;;  %1396 = vadd.xlane.f32.xlu1 %v3099_v9  ;;  %v803_v8 = vpop.f32.mrf.mxu0 }
 0x378   : > { %v1299_v53 = vpop.xlane.xlu1 %1298 }
 0x379   : > { %2455 = vpow2.f32 %v1352_v10  ;;  %v1328_v6 = vsub.f32 %v2952_v42, %v1299_v53  ;;  %v3125_v10 = vpop.f32.mrf.mxu0 }
 0x37a   : > { %2457 = vpow2.f32 %v1350_v11  ;;  %v3111_v23 = vpop.eup %2451 }
 0x37b   : > { %1390 = vadd.xlane.f32.xlu1 %v3103_v3  ;;  %v1346_v14 = vmul.f32 1.442695, %v1328_v6  ;;  %v806_v53 = vpop.f32.mrf.mxu0 }
 0x37c   : > { %v1301_v1 = vpop.xlane.xlu1 %1300 }
 0x37d   : > { %v1329_v47 = vsub.f32 %v2950_v41, %v1301_v1  ;;  %2459 = vpow2.f32 %v1346_v14  ;;  %v3134_v14 = vpop.f32.mrf.mxu0 }
 0x37e   : > { %v3114_v32 = vpop.eup %2453 }
 0x37f   : > { %v1348_v62 = vmul.f32 1.442695, %v1329_v47  ;;  %1392 = vadd.xlane.f32.xlu1 %v3107_v48  ;;  %v811_v1 = vpop.f32.mrf.mxu0 }
 0x380   : > { %v1295_v22 = vpop.xlane.xlu1 %1294 }
 0x381   : > { %2461 = vpow2.f32 %v1348_v62  ;;  %v1326_v42 = vsub.f32 %v2948_v36, %v1295_v22  ;;  %v3140_v16 = vpop.f32.mrf.mxu0 }
 0x383   : > { %v1342_v25 = vmul.f32 1.442695, %v1326_v42  ;;  %1386 = vadd.xlane.f32.xlu1 %v3111_v23  ;;  %v814_v22 = vpop.f32.mrf.mxu0 }
 0x384   : > { %v1297_v41 = vpop.xlane.xlu1 %1296 }
 0x385   : > { %2463 = vpow2.f32 %v1342_v25  ;;  %v1327_v33 = vsub.f32 %v2946_v35, %v1297_v41  ;;  %v3147_v42 = vpop.f32.mrf.mxu0 }
 0x386   : > { %v3117_v57 = vpop.eup %2455 }
 0x387   : > { %v1344_v36 = vmul.f32 1.442695, %v1327_v33  ;;  %1384 = vadd.xlane.f32.xlu0 %v3117_v57  ;;  %1388 = vadd.xlane.f32.xlu1 %v3114_v32  ;;  %v3123_v54 = vpop.eup %2457  ;;  %v819_v59 = vpop.f32.mrf.mxu0 }
 0x389   : > { %2465 = vpow2.f32 %v1344_v36  ;;  %v3150_v25 = vpop.f32.mrf.mxu0 }
 0x38a   : > { %v3130_v11 = vpop.eup %2459 }
 0x38b   : > { %1382 = vadd.xlane.f32.xlu1 %v3123_v54  ;;  %v822_v41 = vpop.f32.mrf.mxu0 }
 0x38d   : > { %v3154_v58 = vpop.f32.mrf.mxu0 }
 0x38e   : > { %v3132_v6 = vpop.eup %2461 }
 0x38f   : > { %1380 = vadd.xlane.f32.xlu0 %v3132_v6  ;;  %1378 = vadd.xlane.f32.xlu1 %v3130_v11  ;;  %v827_v33 = vpop.f32.mrf.mxu0 }
 0x391   : > { %v3156_v36 = vpop.f32.mrf.mxu0 }
 0x392   : > { %v3138_v47 = vpop.eup %2463 }
 0x393   : > { %1374 = vadd.xlane.f32.xlu1 %v3138_v47  ;;  %v830_v53 = vpop.f32.mrf.mxu0 }
 0x395   : > { %v3160_v1 = vpop.f32.mrf.mxu0 }
 0x396   : > { %v3145_v60 = vpop.eup %2465 }
 0x397   : > { %1376 = vadd.xlane.f32.xlu0 %v3145_v60  ;;  %v835_v22 = vpop.f32.mrf.mxu0 }
 0x399   : > { %v3162_v5 = vpop.f32.mrf.mxu0 }
 0x39b   : > { %v838_v0 = vpop.f32.mrf.mxu0 }
 0x39d   : > { %v3166_v26 = vpop.f32.mrf.mxu0 }
 0x39f   : > { %v843_v41 = vpop.f32.mrf.mxu0 }
 0x3a1   : > { %v3168_v62 = vpop.f32.mrf.mxu0 }
 0x3a3   : > { %v846_v35 = vpop.f32.mrf.mxu0 }
 0x3a5   : > { %v3172_v8 = vpop.f32.mrf.mxu0 }
 0x3a7   : > { %v851_v53 = vpop.f32.mrf.mxu0 }
 0x3a9   : > { %v3174_v2 = vpop.f32.mrf.mxu0 }
 0x3aa   : > { %v1477_v22 = vpack.c.bf16 %v3174_v2, %v3172_v8  ;;  %v3649_v8 = vld [vmem:[#allocation12_spill] sm:$0xff] }
 0x3ab   : > { %v854_v4 = vpop.f32.mrf.mxu0 }
 0x3ad   : > { %v3178_v59 = vpop.f32.mrf.mxu0 }
 0x3af   : > { %v859_v0 = vpop.f32.mrf.mxu0 }
 0x3b1   : > { %v3180_v61 = vpop.f32.mrf.mxu0 }
 0x3b3   : > { %v862_v35 = vpop.f32.mrf.mxu0 }
 0x3b5   : > { %v3186_v53 = vpop.f32.mrf.mxu0 }
 0x3b7   : > { %v867_v33 = vpop.f32.mrf.mxu0 }
 0x3b9   : > { %v3190_v4 = vpop.f32.mrf.mxu0 }
 0x3ba   : > { %v1479_v0 = vpack.c.bf16 %v3190_v4, %v3186_v53 }
 0x3bb   : > { %v870_v41 = vpop.f32.mrf.mxu0 }
 0x3c4   : > { %322 = vxpose.xlu0.b32.start [1/16] %v2862_v51, 128  ;;  %v3196_v51 = vpop.f32.mrf.mxu0 }
 0x3c6   : > { %290 = vxpose.xlu1.b32.start [1/16] %v2872_v55, 128  ;;  %v875_v55 = vpop.f32.mrf.mxu0 }
 0x3c8   : > { %323 = vxpose.xlu0.b32.cont [2/16] %v2865_v52, 128  ;;  %v3200_v52 = vpop.f32.mrf.mxu0 }
 0x3ca   : > { %291 = vxpose.xlu1.b32.cont [2/16] %v2875_v56, 128  ;;  %v1480_v56 = vpack.c.bf16 %v3200_v52, %v3196_v51  ;;  %v878_v33 = vpop.f32.mrf.mxu0 }
 0x3cb   : > { %v2500_v33 = vld [vmem:[%s2742_s9 + $0xc0] sm:$0xff] }
 0x3cc   : > { %324 = vxpose.xlu0.b32.cont [3/16] %v2846_v45, 128  ;;  %v3206_v45 = vpop.f32.mrf.mxu0 }
 0x3ce   : > { %292 = vxpose.xlu1.b32.cont [3/16] %v2856_v49, 128  ;;  %v883_v49 = vpop.f32.mrf.mxu0 }
 0x3cf   : > { %v2502_v49 = vld [vmem:[%s2742_s9 + $0xd0] sm:$0xff] }
 0x3d0   : > { %325 = vxpose.xlu0.b32.cont [4/16] %v2849_v46, 128  ;;  %v3210_v46 = vpop.f32.mrf.mxu0 }
 0x3d2   : > { %293 = vxpose.xlu1.b32.cont [4/16] %v2859_v50, 128  ;;  %v1481_v50 = vpack.c.bf16 %v3210_v46, %v3206_v45  ;;  %v886_v41 = vpop.f32.mrf.mxu0 }
 0x3d3   : > { %v2503_v41 = vld [vmem:[%s2742_s9 + $0xe8] sm:$0xff] }
 0x3d4   : > { %326 = vxpose.xlu0.b32.cont [5/16] %v2830_v39, 128  ;;  %v3216_v39 = vpop.f32.mrf.mxu0 }
 0x3d6   : > { %294 = vxpose.xlu1.b32.cont [5/16] %v2840_v43, 128  ;;  %v891_v43 = vpop.f32.mrf.mxu0 }
 0x3d8   : > { %327 = vxpose.xlu0.b32.cont [6/16] %v2833_v40, 128  ;;  %v3220_v40 = vpop.f32.mrf.mxu0 }
 0x3da   : > { %295 = vxpose.xlu1.b32.cont [6/16] %v2843_v44, 128  ;;  %v1482_v44 = vpack.c.bf16 %v3220_v40, %v3216_v39  ;;  %v894_v35 = vpop.f32.mrf.mxu0 }
 0x3db   : > { %v2504_v35 = vld [vmem:[%s2742_s9 + $0xe0] sm:$0xff] }
 0x3dc   : > { %328 = vxpose.xlu0.b32.cont [7/16] %v2802_v29, 128  ;;  %v3226_v29 = vpop.f32.mrf.mxu0 }
 0x3de   : > { %296 = vxpose.xlu1.b32.cont [7/16] %v2824_v37, 128  ;;  %v899_v37 = vpop.f32.mrf.mxu0 }
 0x3e0   : > { %329 = vxpose.xlu0.b32.cont [8/16] %v2805_v30, 128  ;;  %v3230_v30 = vpop.f32.mrf.mxu0 }
 0x3e2   : > { %297 = vxpose.xlu1.b32.cont [8/16] %v2827_v38, 128  ;;  %v1483_v38 = vpack.c.bf16 %v3230_v30, %v3226_v29  ;;  %v902_v55 = vpop.f32.mrf.mxu0 }
 0x3e3   : > { %v2505_v55 = vld [vmem:[%s2742_s9 + $0xf8] sm:$0xff] }
 0x3e4   : > { %330 = vxpose.xlu0.b32.cont [9/16] %v2774_v19, 128 }
 0x3e6   : > { %298 = vxpose.xlu1.b32.cont [9/16] %v2796_v27, 128  ;;  %v2499_v27 = vld [vmem:[%s2742_s9 + $0xc8] sm:$0xff] }
 0x3e8   : > { %331 = vxpose.xlu0.b32.cont [10/16] %v2777_v20, 128 }
 0x3ea   : > { %299 = vxpose.xlu1.b32.cont [10/16] %v2799_v28, 128 }
 0x3ec   : > { %332 = vxpose.xlu0.b32.cont [11/16] %v2757_v12, 128  ;;  %v1405_v19 = vpop.xlane.xlu1 %1404  ;;  %v2501_v12 = vld [vmem:[%s2742_s9 + $0xd8] sm:$0xff] }
 0x3ed   : > { %2467 = vrcp.f32 %v1405_v19 }
 0x3ee   : > { %300 = vxpose.xlu1.b32.cont [11/16] %v2768_v17, 128 }
 0x3f0   : > { %333 = vxpose.xlu0.b32.cont [12/16] %v2760_v13, 128  ;;  %v1403_v20 = vpop.xlane.xlu1 %1402 }
 0x3f1   : > { %2469 = vrcp.f32 %v1403_v20 }
 0x3f2   : > { %301 = vxpose.xlu1.b32.cont [12/16] %v2771_v18, 128 }
 0x3f4   : > { %334 = vxpose.xlu0.b32.cont [13/16] %v2499_v27, 128  ;;  %v1399_v28 = vpop.xlane.xlu1 %1398 }
 0x3f5   : > { %2471 = vrcp.f32 %v1399_v28  ;;  %v2506_v28 = vld [vmem:[%s2742_s9 + $0xf0] sm:$0xff] }
 0x3f6   : > { %302 = vxpose.xlu1.b32.cont [13/16] %v2500_v33, 128 }
 0x3f8   : > { %335 = vxpose.xlu0.b32.cont [14/16] %v2501_v12, 128  ;;  %v1401_v17 = vpop.xlane.xlu1 %1400 }
 0x3f9   : > { %2473 = vrcp.f32 %v1401_v17 }
 0x3fa   : > { %303 = vxpose.xlu1.b32.cont [14/16] %v2502_v49, 128  ;;  %v2468_v13 = vpop.eup %2467 }
 0x3fb   : > { %v1437_v19 = vmul.f32 %v2468_v13, %v3078_v15 }
 0x3fc   : > { %336 = vxpose.xlu0.b32.cont [15/16] %v2503_v41, 128  ;;  %v1395_v43 = vpop.xlane.xlu1 %1394 }
 0x3fd   : > { %2475 = vrcp.f32 %v1395_v43 }
 0x3fe   : > { %v2470_v18 = vpop.eup %2469  ;;  %304 = vxpose.xlu1.b32.cont [15/16] %v2504_v35, 128 }
 0x3ff   : > { %v1436_v37 = vmul.f32 %v2470_v18, %v3082_v21 }
 0x400   : > { %337 = vxpose.xlu0.b32.end [16/16] %v2505_v55, 128  ;;  %v1397_v20 = vpop.xlane.xlu1 %1396 }
 0x401   : > { %2477 = vrcp.f32 %v1397_v20  ;;  %v1493_v27 = vpack.c.bf16 %v1437_v19, %v1436_v37 }
 0x402   : > { %305 = vxpose.xlu1.b32.end [16/16] %v2506_v28, 128  ;;  %v2472_v33 = vpop.eup %2471 }
 0x403   : > { %2241 = vmatprep.subr.bf16.mxu1 %v1493_v27  ;;  %v1434_v49 = vmul.f32 %v2472_v33, %v3086_v24 }
 0x404   : > { %2242 = vmatpush3.bf16.xpose.msra.mxu1 %v1493_v27  ;;  %v1391_v12 = vpop.xlane.xlu1 %1390 }
 0x405   : > { %2479 = vrcp.f32 %v1391_v12 }
 0x406   : > { %v2474_v17 = vpop.eup %2473 }
 0x407   : > { %v1435_v41 = vmul.f32 %v2474_v17, %v3090_v31 }
 0x408   : > { %v1393_v21 = vpop.xlane.xlu1 %1392 }
 0x409   : > { %2481 = vrcp.f32 %v1393_v21  ;;  %v1492_v15 = vpack.c.bf16 %v1435_v41, %v1434_v49  ;;  %v1495_v41 = vld [vmem:[%s3626_s2 + $0x48] sm:$0xff] }
 0x40a   : > { %v2476_v13 = vpop.eup %2475 }
 0x40b   : > { %2243 = vmatprep.subr.bf16.mxu1 %v1492_v15  ;;  %v1432_v35 = vmul.f32 %v2476_v13, %v3094_v34 }
 0x40c   : > { %2244 = vmatpush3.bf16.xpose.msra.mxu1 %v1492_v15  ;;  %v1387_v43 = vpop.xlane.xlu1 %1386 }
 0x40d   : > { %2483 = vrcp.f32 %v1387_v43 }
 0x40e   : > { %v2478_v18 = vpop.eup %2477 }
 0x40f   : > { %v1433_v37 = vmul.f32 %v2478_v18, %v3099_v9  ;;  %v1496_v18 = vld [vmem:[%s3626_s2 + $0x50] sm:$0xff] }
 0x410   : > { %v1389_v19 = vpop.xlane.xlu1 %1388  ;;  %v1385_v55 = vpop.xlane.xlu0 %1384 }
 0x411   : > { %2485 = vrcp.f32 %v1389_v19  ;;  %v1491_v20 = vpack.c.bf16 %v1433_v37, %v1432_v35 }
 0x412   : > { %2487 = vrcp.f32 %v1385_v55  ;;  %v2480_v24 = vpop.eup %2479 }
 0x413   : > { %2245 = vmatprep.subr.bf16.mxu1 %v1491_v20  ;;  %v1430_v28 = vmul.f32 %v2480_v24, %v3103_v3 }
 0x414   : > { %2246 = vmatpush3.bf16.xpose.msra.mxu1 %v1491_v20  ;;  %v1383_v31 = vpop.xlane.xlu1 %1382  ;;  %v1494_v20 = vld [vmem:[%s3626_s2 + $0x40] sm:$0xff] }
 0x415   : > { %2489 = vrcp.f32 %v1383_v31 }
 0x416   : > { %v2482_v27 = vpop.eup %2481 }
 0x417   : > { %v1431_v33 = vmul.f32 %v2482_v27, %v3107_v48  ;;  %v1498_v27 = vld [vmem:[%s3626_s2 + $0x60] sm:$0xff] }
 0x418   : > { %v1379_v12 = vpop.xlane.xlu1 %1378  ;;  %v1381_v17 = vpop.xlane.xlu0 %1380 }
 0x419   : > { %2491 = vrcp.f32 %v1379_v12  ;;  %v1490_v34 = vpack.c.bf16 %v1431_v33, %v1430_v28  ;;  %v1500_v12 = vld [vmem:[%s3626_s2 + $0x70] sm:$0xff] }
 0x41a   : > { %2493 = vrcp.f32 %v1381_v17  ;;  %v2484_v9 = vpop.eup %2483 }
 0x41b   : > { %2247 = vmatprep.subr.bf16.mxu1 %v1490_v34  ;;  %v1428_v15 = vmul.f32 %v2484_v9, %v3111_v23 }
 0x41c   : > { %2248 = vmatpush3.bf16.xpose.msra.mxu1 %v1490_v34  ;;  %v1375_v49 = vpop.xlane.xlu1 %1374  ;;  %v1503_v34 = vld [vmem:[%s3626_s2 + $0x88] sm:$0xff] }
 0x41d   : > { %2495 = vrcp.f32 %v1375_v49  ;;  %v1502_v49 = vld [vmem:[%s3626_s2 + $0x80] sm:$0xff] }
 0x41e   : > { %v2486_v21 = vpop.eup %2485 }
 0x41f   : > { %v1429_v3 = vmul.f32 %v2486_v21, %v3114_v32  ;;  %v2488_v13 = vpop.eup %2487  ;;  %v1497_v32 = vld [vmem:[%s3626_s2 + $0x58] sm:$0xff]  ;;  %v1504_v21 = vld [vmem:[%s3626_s2 + $0x90] sm:$0xff] }
 0x420   : > { %1533 = vperm.xlu1 %2374, %v1495_v41   ;;  %v1377_v48 = vpop.xlane.xlu0 %1376  ;;  %v1427_v19 = vmul.f32 %v2488_v13, %v3117_v57  ;;  %v1499_v57 = vld [vmem:[%s3626_s2 + $0x68] sm:$0xff]  ;;  %v1508_v13 = vld [vmem:[%s3626_s2 + $0xb0] sm:$0xff] }
 0x421   : > { %2497 = vrcp.f32 %v1377_v48  ;;  %v1489_v43 = vpack.c.bf16 %v1429_v3, %v1428_v15  ;;  %v1506_v15 = vld [vmem:[%s3626_s2 + $0xa0] sm:$0xff]  ;;  %v1509_v3 = vld [vmem:[%s3626_s2 + $0xb8] sm:$0xff]  ;;  %v1511_v48 = vld [vmem:[%s3626_s2 + $0xc8] sm:$0xff] }
 0x422   : > { %v2490_v35 = vpop.eup %2489 }
 0x423   : > { %2249 = vmatprep.subr.bf16.mxu1 %v1489_v43  ;;  %v1426_v37 = vmul.f32 %v2490_v35, %v3123_v54  ;;  %v3641_v35 = vpack.c.bf16 %v3140_v16, %v3134_v14  ;;  %v3642_v14 = vpack.c.bf16 %v3150_v25, %v3147_v42  ;;  %v3643_v16 = vpack.c.bf16 %v3156_v36, %v3154_v58  ;;  %v1519_v42 = vld [vmem:[%s3626_s2 + $0x108] sm:$0xff]  ;;  %v1518_v25 = vld [vmem:[%s3626_s2 + $0x100] sm:$0xff] }
 0x424   : > { %1538 = vperm.xlu1 %2374, %v1496_v18   ;;  %2250 = vmatpush3.bf16.xpose.msra.mxu1 %v1489_v43  ;;  %v1510_v43 = vld [vmem:[%s3626_s2 + $0xc0] sm:$0xff]  ;;  %v3640_v18 = vpack.c.bf16 %v3125_v10, %v3119_v7  ;;  %v1515_v7 = vld [vmem:[%s3626_s2 + $0xe8] sm:$0xff]  ;;  %v3644_v58 = vpack.c.bf16 %v3162_v5, %v3160_v1  ;;  %v3645_v36 = vpack.c.bf16 %v3168_v62, %v3166_v26  ;;  %v1525_v1 = vld [vmem:[%s3626_s2 + $0x138] sm:$0xff] }
 0x425   : > { %v1488_v23 = vpack.c.bf16 %v1427_v19, %v1426_v37  ;;  %v1513_v37 = vld [vmem:[%s3626_s2 + $0xd8] sm:$0xff]  ;;  %v1512_v19 = vld [vmem:[%s3626_s2 + $0xd0] sm:$0xff]  ;;  %v1514_v10 = vld [vmem:[%s3626_s2 + $0xe0] sm:$0xff]  ;;  %v3646_v26 = vpack.c.bf16 %v3180_v61, %v3178_v59 }
 0x426   : > { %v2492_v55 = vpop.eup %2491  ;;  %v1523_v5 = vld [vmem:[%s3626_s2 + $0x128] sm:$0xff]  ;;  %v1522_v62 = vld [vmem:[%s3626_s2 + $0x120] sm:$0xff] }
 0x427   : > { %v2494_v24 = vpop.eup %2493  ;;  %2251 = vmatprep.subr.bf16.mxu1 %v1488_v23  ;;  %v1424_v31 = vmul.f32 %v2492_v55, %v3130_v11  ;;  %v1501_v11 = vld [vmem:[%s3626_s2 + $0x78] sm:$0xff]  ;;  %v3647_v61 = vld [vmem:[#allocation10_spill] sm:$0xff]  ;;  %v3650_v59 = vld [vmem:[#allocation11_spill] sm:$0xff] }
 0x428   : > { %1543 = vperm.xlu1 %2374, %v1497_v32   ;;  %v1425_v54 = vmul.f32 %v2494_v24, %v3132_v6  ;;  %v1516_v32 = vld [vmem:[%s3626_s2 + $0xf0] sm:$0xff]  ;;  %v1521_v55 = vld [vmem:[%s3626_s2 + $0x118] sm:$0xff]  ;;  %v3648_v2 = vpack.c.bf16 %v2914_v63, %v3647_v61 }
 0x429   : > { %1528 = vperm.xlu0 %2373, %v1494_v20   ;;  %v1520_v20 = vld [vmem:[%s3626_s2 + $0x110] sm:$0xff] }
 0x42a   : > { %v1487_v28 = vpack.c.bf16 %v1425_v54, %v1424_v31  ;;  %v2496_v33 = vpop.eup %2495  ;;  %v1524_v24 = vld [vmem:[%s3626_s2 + $0x130] sm:$0xff] }
 0x42b   : > { %v1422_v9 = vmul.f32 %v2496_v33, %v3138_v47  ;;  %v1507_v47 = vld [vmem:[%s3626_s2 + $0xa8] sm:$0xff] }
 0x42c   : > { %1553 = vperm.xlu1 %2374, %v1499_v57   ;;  %2252 = vmatpush3.bf16.xpose.msra.mxu1 %v1488_v23  ;;  %v1517_v23 = vld [vmem:[%s3626_s2 + $0xf8] sm:$0xff] }
 0x42d   : > { %1548 = vperm.xlu0 %2373, %v1498_v27   ;;  %2253 = vmatprep.subr.bf16.mxu1 %v1487_v28 }
 0x42e   : > { %v2498_v6 = vpop.eup %2497 }
 0x42f   : > { %v1423_v17 = vmul.f32 %v2498_v6, %v3145_v60  ;;  %v1505_v60 = vld [vmem:[%s3626_s2 + $0x98] sm:$0xff] }
 0x430   : > { %1563 = vperm.xlu1 %2374, %v1501_v11  }
 0x431   : > { %1558 = vperm.xlu0 %2373, %v1500_v12   ;;  %v1486_v41 = vpack.c.bf16 %v1423_v17, %v1422_v9 }
 0x434   : > { %1573 = vperm.xlu1 %2374, %v1503_v34   ;;  %2254 = vmatpush3.bf16.xpose.msra.mxu1 %v1487_v28 }
 0x435   : > { %1568 = vperm.xlu0 %2373, %v1502_v49   ;;  %2255 = vmatprep.subr.bf16.mxu1 %v1486_v41 }
 0x438   : > { %1583 = vperm.xlu1 %2374, %v1505_v60  }
 0x439   : > { %1578 = vperm.xlu0 %2373, %v1504_v21  }
 0x43c   : > { %1593 = vperm.xlu1 %2374, %v1507_v47   ;;  %2256 = vmatpush3.bf16.xpose.msra.mxu1 %v1486_v41 }
 0x43d   : > { %1588 = vperm.xlu0 %2373, %v1506_v15  }
 0x440   : > { %1603 = vperm.xlu1 %2374, %v1509_v3  }
 0x441   : > { %1598 = vperm.xlu0 %2373, %v1508_v13  }
 0x442   : > { %v306_v53 = vpop.trf.xlu1 }
 0x443   : > { %2258 = vmatmul.mubr.bf16.vlgmr.msra.gmra.mxu1 %v3640_v18 }
 0x444   : > { %1613 = vperm.xlu1 %2374, %v1511_v48   ;;  %2261 = vmatprep.mubr.bf16.mxu1 %v3641_v35 }
 0x445   : > { %1608 = vperm.xlu0 %2373, %v1510_v43  }
 0x446   : > { %v3403_v4 = vpop.trf.xlu1 }
 0x448   : > { %1623 = vperm.xlu1 %2374, %v1513_v37  }
 0x449   : > { %1618 = vperm.xlu0 %2373, %v1512_v19  }
 0x44a   : > { %v308_v51 = vpop.trf.xlu1 }
 0x44b   : > { %2262 = vmatmul.mubr.bf16.gmra.mxu1 %v3642_v14 }
 0x44c   : > { %1633 = vperm.xlu1 %2374, %v1515_v7   ;;  %2265 = vmatprep.mubr.bf16.mxu1 %v3643_v16  ;;  %v3463_v16 = vstv %s1003_s10 }
 0x44d   : > { %1628 = vperm.xlu0 %2373, %v1514_v10  }
 0x450   : > { %1643 = vperm.xlu1 %2374, %v1517_v23  }
 0x451   : > { %1638 = vperm.xlu0 %2373, %v1516_v32  }
 0x453   : > { %2266 = vmatmul.mubr.bf16.gmra.mxu1 %v3644_v58 }
 0x454   : > { %1653 = vperm.xlu1 %2374, %v1519_v42   ;;  %2269 = vmatprep.mubr.bf16.mxu1 %v3645_v36 }
 0x455   : > { %1648 = vperm.xlu0 %2373, %v1518_v25  }
 0x458   : > { %1663 = vperm.xlu1 %2374, %v1521_v55  }
 0x459   : > { %1658 = vperm.xlu0 %2373, %v1520_v20  }
 0x45b   : > { %2270 = vmatmul.mubr.bf16.gmra.mxu1 %v1477_v22  ;;  %v3651_v22 = vpack.c.bf16 %v3649_v8, %v3650_v59 }
 0x45c   : > { %1673 = vperm.xlu1 %2374, %v1523_v5   ;;  %2273 = vmatprep.mubr.bf16.mxu1 %v3646_v26 }
 0x45d   : > { %1668 = vperm.xlu0 %2373, %v1522_v62  }
 0x460   : > { %1683 = vperm.xlu1 %2374, %v1525_v1  }
 0x461   : > { %1678 = vperm.xlu0 %2373, %v1524_v24  }
 0x463   : > { %2274 = vmatmul.mubr.bf16.gmra.mxu1 %v1479_v0  ;;  %v3405_v0 = vpop.trf.xlu0 }
 0x464   : > { %2277 = vmatprep.mubr.bf16.mxu1 %v1480_v56  ;;  %v309_v56 = vpop.trf.xlu1 }
 0x467   : > { %v3407_v52 = vpop.trf.xlu0 }
 0x468   : > { %v3411_v46 = vpop.trf.xlu1 }
 0x46b   : > { %2278 = vmatmul.mubr.bf16.gmra.mxu1 %v1481_v50  ;;  %v3409_v45 = vpop.trf.xlu0 }
 0x46c   : > { %2281 = vmatprep.mubr.bf16.mxu1 %v1482_v44  ;;  %v3415_v63 = vpop.trf.xlu1 }
 0x46f   : > { %v3413_v50 = vpop.trf.xlu0 }
 0x470   : > { %v3419_v40 = vpop.trf.xlu1 }
 0x473   : > { %2282 = vmatmul.mubr.bf16.gmra.mxu1 %v1483_v38  ;;  %v3417_v39 = vpop.trf.xlu0 }
 0x474   : > { %2285 = vmatprep.mubr.bf16.mxu1 %v3648_v2  ;;  %v3423_v29 = vpop.trf.xlu1 }
 0x477   : > { %v3421_v44 = vpop.trf.xlu0 }
 0x478   : > { %v3427_v38 = vpop.trf.xlu1 }
 0x47b   : > { %2286 = vmatmul.mubr.bf16.gmra.mxu1 %v3651_v22  ;;  %v3425_v30 = vpop.trf.xlu0 }
 0x47c   : > { %v3431_v54 = vpop.trf.xlu1 }
 0x47f   : > { %v3429_v31 = vpop.trf.xlu0 }
 0x480   : > { %v3435_v27 = vpop.trf.xlu1 }
 0x483   : > { %v3433_v57 = vpop.trf.xlu0 }
 0x484   : > { %v3439_v33 = vpop.trf.xlu1 }
 0x487   : > { %v3437_v28 = vpop.trf.xlu0 }
 0x488   : > { %v3443_v6 = vpop.trf.xlu1 }
 0x48b   : > { %v3441_v11 = vpop.trf.xlu0 }
 0x48c   : > { %v3447_v17 = vpop.trf.xlu1 }
 0x48f   : > { %v3445_v12 = vpop.trf.xlu0 }
 0x490   : > { %v3451_v9 = vpop.trf.xlu1 }
 0x493   : > { %v3449_v34 = vpop.trf.xlu0 }
 0x494   : > { %v3455_v41 = vpop.trf.xlu1 }
 0x497   : > { %v3453_v49 = vpop.trf.xlu0 }
 0x49b   : > { %v3457_v60 = vpop.trf.xlu0  ;;  %v1534_v21 = vpop.permute.xlu1 %1533 }
 0x49f   : > { %v3459_v47 = vpop.trf.xlu0  ;;  %v1539_v15 = vpop.permute.xlu1 %1538 }
 0x4a3   : > { %v1544_v13 = vpop.permute.xlu1 %1543 }
 0x4a4   : > { %v1529_v3 = vpop.permute.xlu0 %1528 }
 0x4a7   : > { %v1554_v43 = vpop.permute.xlu1 %1553 }
 0x4a8   : > { %v1549_v48 = vpop.permute.xlu0 %1548 }
 0x4ab   : > { %v1564_v35 = vpop.permute.xlu1 %1563 }
 0x4ac   : > { %v1559_v18 = vpop.permute.xlu0 %1558 }
 0x4af   : > { %v3461_v19 = vpop.permute.xlu1 %1573 }
 0x4b0   : > { %v1569_v37 = vpop.permute.xlu0 %1568 }
 0x4b3   : > { %v1584_v10 = vpop.permute.xlu1 %1583 }
 0x4b4   : > { %v1579_v7 = vpop.permute.xlu0 %1578 }
 0x4b7   : > { %v3469_v62 = vpop.permute.xlu1 %1593 }
 0x4b8   : > { %v3465_v32 = vpop.permute.xlu0 %1588 }
 0x4bc   : > { %v1599_v2 = vpop.permute.xlu0 %1598 }
 0x503   : > { %v2259_v14 = vpop.f32.mrf.mxu1 }
 0x504   : > { %v1729_v23 = vadd.f32 %v2259_v14, %v1539_v15  ;;  %v1604_v14 = vpop.permute.xlu1 %1603 }
 0x505   : > { %v1720_v42 = vpop.f32.mrf.mxu1 }
 0x506   : > { %v1882_v25 = vmul.f32 %v3463_v16, %v1729_v23  ;;  %v1721_v58 = vadd.f32 %v1720_v42, %v1529_v3 }
 0x507   : > { %v2260_v36 = vpop.f32.mrf.mxu1 }
 0x508   : > { %v1914_v55 = vadd.f32 %v1882_v25, %v308_v51  ;;  %v1880_v20 = vmul.f32 %v3463_v16, %v1721_v58  ;;  %v1732_v5 = vadd.f32 %v2260_v36, %v1544_v13  ;;  %v1609_v25 = vpop.permute.xlu0 %1608 }
 0x509   : > { %v1723_v26 = vpop.f32.mrf.mxu1 }
 0x50a   : > { %1946 = vst [vmem:[%s3473_s11 + $0x10] sm:$0xff] %v1914_v55  ;;  %v1912_v1 = vadd.f32 %v1880_v20, %v306_v53  ;;  %v1883_v24 = vmul.f32 %v3463_v16, %v1732_v5  ;;  %v1724_v61 = vadd.f32 %v1723_v26, %v1534_v21  ;;  %v1614_v5 = vpop.permute.xlu1 %1613 }
 0x50b   : > { %v2263_v8 = vpop.f32.mrf.mxu1 }
 0x50c   : > { %1944 = vst [vmem:[%s3473_s11] sm:$0xff] %v1912_v1  ;;  %v1915_v59 = vadd.f32 %v1883_v24, %v309_v56  ;;  %v1881_v22 = vmul.f32 %v3463_v16, %v1724_v61  ;;  %v1745_v51 = vadd.f32 %v2263_v8, %v1559_v18  ;;  %v1619_v24 = vpop.permute.xlu0 %1618 }
 0x50d   : > { %v1736_v15 = vpop.f32.mrf.mxu1 }
 0x50e   : > { %1947 = vst [vmem:[%s3473_s11 + $0x18] sm:$0xff] %v1915_v59  ;;  %v1913_v3 = vadd.f32 %v1881_v22, %v3403_v4  ;;  %v1886_v13 = vmul.f32 %v3463_v16, %v1745_v51  ;;  %v1737_v53 = vadd.f32 %v1736_v15, %v1549_v48  ;;  %v1624_v51 = vpop.permute.xlu1 %1623 }
 0x50f   : > { %v2264_v23 = vpop.f32.mrf.mxu1 }
 0x510   : > { %1945 = vst [vmem:[%s3473_s11 + $0x8] sm:$0xff] %v1913_v3  ;;  %v1918_v21 = vadd.f32 %v1886_v13, %v3419_v40  ;;  %v1884_v56 = vmul.f32 %v3463_v16, %v1737_v53  ;;  %v1748_v42 = vadd.f32 %v2264_v23, %v1564_v35  ;;  %v1629_v13 = vpop.permute.xlu0 %1628 }
 0x511   : > { %v1739_v58 = vpop.f32.mrf.mxu1 }
 0x512   : > { %1950 = vst [vmem:[%s3473_s11 + $0x30] sm:$0xff] %v1918_v21  ;;  %v1916_v18 = vadd.f32 %v1884_v56, %v3411_v46  ;;  %v1887_v4 = vmul.f32 %v3463_v16, %v1748_v42  ;;  %v1740_v36 = vadd.f32 %v1739_v58, %v1554_v43  ;;  %v1634_v42 = vpop.permute.xlu1 %1633 }
 0x513   : > { %v2267_v55 = vpop.f32.mrf.mxu1 }
 0x514   : > { %1948 = vst [vmem:[%s3473_s11 + $0x20] sm:$0xff] %v1916_v18  ;;  %v1919_v48 = vadd.f32 %v1887_v4, %v3423_v29  ;;  %v1885_v40 = vmul.f32 %v3463_v16, %v1740_v36  ;;  %v1761_v20 = vadd.f32 %v2267_v55, %v1579_v7  ;;  %v1639_v4 = vpop.permute.xlu0 %1638 }
 0x515   : > { %v1752_v26 = vpop.f32.mrf.mxu1 }
 0x516   : > { %1951 = vst [vmem:[%s3473_s11 + $0x38] sm:$0xff] %v1919_v48  ;;  %v1917_v35 = vadd.f32 %v1885_v40, %v3415_v63  ;;  %v1890_v46 = vmul.f32 %v3463_v16, %v1761_v20  ;;  %v1753_v1 = vadd.f32 %v1752_v26, %v1569_v37  ;;  %v1644_v20 = vpop.permute.xlu1 %1643 }
 0x517   : > { %v2268_v61 = vpop.f32.mrf.mxu1 }
 0x518   : > { %1949 = vst [vmem:[%s3473_s11 + $0x28] sm:$0xff] %v1917_v35  ;;  %v1922_v43 = vadd.f32 %v1890_v46, %v3435_v27  ;;  %v1888_v29 = vmul.f32 %v3463_v16, %v1753_v1  ;;  %v1764_v8 = vadd.f32 %v2268_v61, %v1584_v10  ;;  %v1649_v46 = vpop.permute.xlu0 %1648 }
 0x519   : > { %v1755_v59 = vpop.f32.mrf.mxu1 }
 0x51a   : > { %1954 = vst [vmem:[%s3473_s11 + $0x50] sm:$0xff] %v1922_v43  ;;  %v1920_v7 = vadd.f32 %v1888_v29, %v3427_v38  ;;  %v1891_v63 = vmul.f32 %v3463_v16, %v1764_v8  ;;  %v1756_v22 = vadd.f32 %v1755_v59, %v3461_v19  ;;  %v1654_v8 = vpop.permute.xlu1 %1653 }
 0x51b   : > { %v2271_v37 = vpop.f32.mrf.mxu1 }
 0x51c   : > { %1952 = vst [vmem:[%s3473_s11 + $0x40] sm:$0xff] %v1920_v7  ;;  %v1923_v15 = vadd.f32 %v1891_v63, %v3439_v33  ;;  %v1889_v27 = vmul.f32 %v3463_v16, %v1756_v22  ;;  %v1777_v3 = vadd.f32 %v2271_v37, %v1599_v2  ;;  %v1659_v22 = vpop.permute.xlu0 %1658 }
 0x51d   : > { %v1768_v10 = vpop.f32.mrf.mxu1 }
 0x51e   : > { %1955 = vst [vmem:[%s3473_s11 + $0x58] sm:$0xff] %v1923_v15  ;;  %v1921_v53 = vadd.f32 %v1889_v27, %v3431_v54  ;;  %v1894_v38 = vmul.f32 %v3463_v16, %v1777_v3  ;;  %v1769_v23 = vadd.f32 %v1768_v10, %v3465_v32  ;;  %v1664_v10 = vpop.permute.xlu1 %1663 }
 0x51f   : > { %v2272_v19 = vpop.f32.mrf.mxu1 }
 0x520   : > { %1953 = vst [vmem:[%s3473_s11 + $0x48] sm:$0xff] %v1921_v53  ;;  %v1926_v21 = vadd.f32 %v1894_v38, %v3451_v9  ;;  %v1892_v33 = vmul.f32 %v3463_v16, %v1769_v23  ;;  %v1780_v56 = vadd.f32 %v2272_v19, %v1604_v14  ;;  %v1669_v23 = vpop.permute.xlu0 %1668 }
 0x521   : > { %v1771_v2 = vpop.f32.mrf.mxu1 }
 0x522   : > { %1958 = vst [vmem:[%s3473_s11 + $0x70] sm:$0xff] %v1926_v21  ;;  %v1924_v58 = vadd.f32 %v1892_v33, %v3443_v6  ;;  %v1895_v54 = vmul.f32 %v3463_v16, %v1780_v56  ;;  %v1772_v18 = vadd.f32 %v1771_v2, %v3469_v62 }
 0x523   : > { %v2275_v32 = vpop.f32.mrf.mxu1 }
 0x524   : > { %1956 = vst [vmem:[%s3473_s11 + $0x60] sm:$0xff] %v1924_v58  ;;  %v1927_v36 = vadd.f32 %v1895_v54, %v3455_v41  ;;  %v1893_v9 = vmul.f32 %v3463_v16, %v1772_v18  ;;  %v1793_v55 = vadd.f32 %v2275_v32, %v1619_v24  ;;  %v1674_v58 = vpop.permute.xlu1 %1673  ;;  %v1679_v32 = vpop.permute.xlu0 %1678 }
 0x525   : > { %v1784_v14 = vpop.f32.mrf.mxu1 }
 0x526   : > { %1959 = vst [vmem:[%s3473_s11 + $0x78] sm:$0xff] %v1927_v36  ;;  %v1925_v48 = vadd.f32 %v1893_v9, %v3447_v17  ;;  %v1898_v6 = vmul.f32 %v3463_v16, %v1793_v55  ;;  %v1785_v40 = vadd.f32 %v1784_v14, %v1609_v25 }
 0x527   : > { %v2276_v26 = vpop.f32.mrf.mxu1 }
 0x528   : > { %1957 = vst [vmem:[%s3473_s11 + $0x68] sm:$0xff] %v1925_v48  ;;  %v1930_v62 = vadd.f32 %v1898_v6, %v3409_v45  ;;  %v1896_v41 = vmul.f32 %v3463_v16, %v1785_v40  ;;  %v1796_v35 = vadd.f32 %v2276_v26, %v1624_v51  ;;  %v1684_v40 = vpop.permute.xlu1 %1683 }
 0x529   : > { %v1787_v1 = vpop.f32.mrf.mxu1 }
 0x52a   : > { %1962 = vst [vmem:[%s3473_s11 + $0x90] sm:$0xff] %v1930_v62  ;;  %v1928_v24 = vadd.f32 %v1896_v41, %v3405_v0  ;;  %v1899_v17 = vmul.f32 %v3463_v16, %v1796_v35  ;;  %v1788_v61 = vadd.f32 %v1787_v1, %v1614_v5 }
 0x52b   : > { %v2279_v43 = vpop.f32.mrf.mxu1 }
 0x52c   : > { %1960 = vst [vmem:[%s3473_s11 + $0x80] sm:$0xff] %v1928_v24  ;;  %v1931_v25 = vadd.f32 %v1899_v17, %v3413_v50  ;;  %v1897_v45 = vmul.f32 %v3463_v16, %v1788_v61  ;;  %v1809_v29 = vadd.f32 %v2279_v43, %v1639_v4 }
 0x52d   : > { %v1800_v59 = vpop.f32.mrf.mxu1 }
 0x52e   : > { %1963 = vst [vmem:[%s3473_s11 + $0x98] sm:$0xff] %v1931_v25  ;;  %v1929_v7 = vadd.f32 %v1897_v45, %v3407_v52  ;;  %v1902_v0 = vmul.f32 %v3463_v16, %v1809_v29  ;;  %v1801_v63 = vadd.f32 %v1800_v59, %v1629_v13 }
 0x52f   : > { %v2280_v51 = vpop.f32.mrf.mxu1 }
 0x530   : > { %1961 = vst [vmem:[%s3473_s11 + $0x88] sm:$0xff] %v1929_v7  ;;  %v1934_v5 = vadd.f32 %v1902_v0, %v3425_v30  ;;  %v1900_v50 = vmul.f32 %v3463_v16, %v1801_v63  ;;  %v1812_v37 = vadd.f32 %v2280_v51, %v1644_v20 }
 0x531   : > { %v1803_v15 = vpop.f32.mrf.mxu1 }
 0x532   : > { %1966 = vst [vmem:[%s3473_s11 + $0xb0] sm:$0xff] %v1934_v5  ;;  %v1932_v27 = vadd.f32 %v1900_v50, %v3417_v39  ;;  %v1903_v52 = vmul.f32 %v3463_v16, %v1812_v37  ;;  %v1804_v3 = vadd.f32 %v1803_v15, %v1634_v42 }
 0x533   : > { %v2283_v53 = vpop.f32.mrf.mxu1 }
 0x534   : > { %1964 = vst [vmem:[%s3473_s11 + $0xa0] sm:$0xff] %v1932_v27  ;;  %v1935_v13 = vadd.f32 %v1903_v52, %v3429_v31  ;;  %v1901_v30 = vmul.f32 %v3463_v16, %v1804_v3  ;;  %v1825_v38 = vadd.f32 %v2283_v53, %v1659_v22 }
 0x535   : > { %v1816_v19 = vpop.f32.mrf.mxu1 }
 0x536   : > { %1967 = vst [vmem:[%s3473_s11 + $0xb8] sm:$0xff] %v1935_v13  ;;  %v1933_v21 = vadd.f32 %v1901_v30, %v3421_v44  ;;  %v1906_v39 = vmul.f32 %v3463_v16, %v1825_v38  ;;  %v1817_v33 = vadd.f32 %v1816_v19, %v1649_v46 }
 0x537   : > { %v2284_v56 = vpop.f32.mrf.mxu1 }
 0x538   : > { %1965 = vst [vmem:[%s3473_s11 + $0xa8] sm:$0xff] %v1933_v21  ;;  %v1938_v42 = vadd.f32 %v1906_v39, %v3441_v11  ;;  %v1904_v31 = vmul.f32 %v3463_v16, %v1817_v33  ;;  %v1828_v2 = vadd.f32 %v2284_v56, %v1664_v10 }
 0x539   : > { %v1819_v54 = vpop.f32.mrf.mxu1 }
 0x53a   : > { %1970 = vst [vmem:[%s3473_s11 + $0xd0] sm:$0xff] %v1938_v42  ;;  %v1936_v18 = vadd.f32 %v1904_v31, %v3433_v57  ;;  %v1907_v44 = vmul.f32 %v3463_v16, %v1828_v2  ;;  %v1820_v4 = vadd.f32 %v1819_v54, %v1654_v8 }
 0x53b   : > { %v2287_v36 = vpop.f32.mrf.mxu1 }
 0x53c   : > { %1968 = vst [vmem:[%s3473_s11 + $0xc0] sm:$0xff] %v1936_v18  ;;  %v1939_v9 = vadd.f32 %v1907_v44, %v3445_v12  ;;  %v1905_v11 = vmul.f32 %v3463_v16, %v1820_v4  ;;  %v1841_v55 = vadd.f32 %v2287_v36, %v1679_v32 }
 0x53d   : > { %v1832_v14 = vpop.f32.mrf.mxu1 }
 0x53e   : > { %1971 = vst [vmem:[%s3473_s11 + $0xd8] sm:$0xff] %v1939_v9  ;;  %v1937_v48 = vadd.f32 %v1905_v11, %v3437_v28  ;;  %v1910_v57 = vmul.f32 %v3463_v16, %v1841_v55  ;;  %v1833_v6 = vadd.f32 %v1832_v14, %v1669_v23 }
 0x53f   : > { %v2288_v20 = vpop.f32.mrf.mxu1 }
 0x540   : > { %1969 = vst [vmem:[%s3473_s11 + $0xc8] sm:$0xff] %v1937_v48  ;;  %v1942_v26 = vadd.f32 %v1910_v57, %v3457_v60  ;;  %v1908_v12 = vmul.f32 %v3463_v16, %v1833_v6  ;;  %v1844_v62 = vadd.f32 %v2288_v20, %v1684_v40 }
 0x541   : > { %v1835_v41 = vpop.f32.mrf.mxu1 }
 0x542   : > { %1974 = vst [vmem:[%s3473_s11 + $0xf0] sm:$0xff] %v1942_v26  ;;  %v1940_v35 = vadd.f32 %v1908_v12, %v3449_v34  ;;  %v1911_v28 = vmul.f32 %v3463_v16, %v1844_v62  ;;  %v1836_v46 = vadd.f32 %v1835_v41, %v1674_v58 }
 0x544   : > { %1972 = vst [vmem:[%s3473_s11 + $0xe0] sm:$0xff] %v1940_v35  ;;  %v1943_v1 = vadd.f32 %v1911_v28, %v3459_v47  ;;  %v1909_v60 = vmul.f32 %v3463_v16, %v1836_v46 }
 0x546   : > { %1975 = vst [vmem:[%s3473_s11 + $0xf8] sm:$0xff] %v1943_v1  ;;  %v1941_v34 = vadd.f32 %v1909_v60, %v3453_v49 }
 0x548   : > { %1973 = vst [vmem:[%s3473_s11 + $0xe8] sm:$0xff] %v1941_v34 }
 0x549   : > { %2548 = shalt.err (!%p2545_p6)
}
 0x54a   : > { %s2549_s26 = scalar_lea.hbm %s3571_s15, 4096  ;;  %s2553_s8 = scalar_lea.hbm %s3628_s4, 8192 }
 0x54b   : > { %p2550_p7 = scmp.ne.s32.totalorder %s3571_s15, %s2549_s26  ;;  %p2554_p13 = scmp.lt.s32.totalorder %s3571_s15, %s3628_s4 }
 0x54c   : > { %p2555_p2 = scmp.lt.s32.totalorder %s2553_s8, %s2549_s26 }
 0x54d   : > { %p2551_p10 = pnand %p2550_p7, %p2703_p9 }
 0x54e   : > { %p2556_p8 = por %p2555_p2, %p2554_p13 }
 0x54f   : > { %p2552_p4 = pneg %p2551_p10 }
 0x551   : > { %p2557_p12 = pnand %p2556_p8, %p2552_p4 }
 0x553   : > { %2560 = shalt.err (!%p2557_p12)
}
 0x554   : > { %s2622_s11 = smov 128   ;;  %s2623_s7 = smov 8  }
 0x555   : > { %2307 = dma.vmem_to_hbm [thread:$0]  (%p2703_p9), %s3573_s12, 4096, %s3571_s15, %s1977_s20, %s2622_s11, %s2622_s11, %s2623_s7  }
 0x556 PF: > { %s2005_s13 = sand.u32 1, %s2595_s17   ;;  %p3652_p0 = scmp.ge.s32.totalorder %s2615_s22, 2 }
 0x557   : > { %s2006_s14 = scalar_lea.sflag [#allocation6], %s2005_s13 }
 0x558   : > { %p2314_p1 = pnand %p3652_p0, %p2710_p11 }
 0x55a   : > { %p2315_p3 = pneg %p2314_p1 }
 0x55c   : > { %2590 = dma.done.wait (%p2315_p3), %s2006_s14, 4096  }
 0x55d   : > { %2592 = vsyncadd (%p2315_p3), %s2006_s14, 4294963200  ;;  %s21_s22 = sadd.s32 1, %s2615_s22   ;;  %s3653_s17 = smov %s2599_s18 }
 0x55e   : > { %p18_p5 = scmp.ge.s32.totalorder %s21_s22, 4   ;;  %s3654_s18 = smov %s2603_s19 }
 0x55f   : > { %s3655_s19 = smov %s2708_s30  ;;  %s3656_s20 = smov %s2611_s21 }
 0x560   : > { %s3657_s21 = smov %s3659_s24  ;;  %20 = sbr.rel (!%p18_p5) target bundleno = 8 (0x8), region = 93 }
 0x565   :  { %2011 = vsyncpa [#allocation5], 1 }
 0x566   :  { %2013 = vsyncpa [#allocation5 + $0x1], 1 }
 0x567   :  { %2014 = vsyncpa [#allocation6], 1 }
 0x568   :  { %2016 = vsyncpa [#allocation6 + $0x1], 1 }

// kernel: tpu_custom_call.1
= control target key start
LH: loop header
LB: loop body
LE: loop exit
PB: predicated region body
PF: predicated region fallthrough
CT: control target
= control target key end

     0   :  { %s3624_s0 = inlined_call_operand.hbm [shape: f32[2,128,256], index: 0, kind: input, shape index: {}]   ;;  %s3625_s1 = inlined_call_operand.vmem [shape: bf16[320,256], index: 1, kind: input, shape index: {}]   ;;  %s3626_s2 = inlined_call_operand.vmem [shape: f32[320,1], index: 2, kind: input, shape index: {}]   ;;  %s3627_s3 = inlined_call_operand.<no memory space> [shape: f32[1,1], index: 3, kind: input, shape index: {}]   ;;  %s3628_s4 = inlined_call_operand.hbm [shape: f32[2,256,128], index: 4, kind: output, shape index: {}]  }
   0x1   :  { %9 = sst [smem:[#allocation3]] %s3627_s3 }
   0x2   :  { %10 = vsyncpa [#allocation5], 0 }
   0x3   :  { %12 = vsyncpa [#allocation5 + $0x1], 0 }
   0x4   :  { %13 = vsyncpa [#allocation6], 0 }
   0x5   :  { %15 = vsyncpa [#allocation6 + $0x1], 0  ;;  %s2652_s17 = smov 0   ;;  %s2654_s18 = smov 0  }
   0x6   :  { %s2656_s19 = smov 0   ;;  %s2658_s20 = smov 0  }
   0x7   :  { %s2660_s21 = smov 0   ;;  %s2662_s22 = smov 0  }
   0x8 LB: > { %s2091_s3 = sadd.s32 4294967295, %s2615_s22   ;;  %s2092_s23 = sadd.s32 4294967294, %s2615_s22   ;;  %s2615_s22 = sphi %s2662_s22, %s21_s22   ;;  %s2611_s21 = sphi %s2660_s21, %s3657_s21   ;;  %s2607_s20 = sphi %s2658_s20, %s3656_s20   ;;  %s2603_s19 = sphi %s2656_s19, %s3655_s19   ;;  %s2599_s18 = sphi %s2654_s18, %s3654_s18   ;;  %s2595_s17 = sphi %s2652_s17, %s3653_s17  }
   0x9   : > { %s33_s24 = sadd.s32 1, %s2611_s21  ;;  %s42_s25 = sadd.s32 1, %s2603_s19 }
   0xa   : > { %p35_p0 = scmp.ge.s32.totalorder %s33_s24, 2  ;;  %p49_p1 = scmp.ne.s32.totalorder %s2603_s19, %s2599_s18 }
   0xb   : > { %p50_p2 = scmp.eq.s32.totalorder %s2615_s22, 0  ;;  %p55_p3 = scmp.ne.s32.totalorder %s2599_s18, %s2595_s17 }
   0xc   : > { %s3659_s24 = smov (%p35_p0, %s33_s24), 0  ;;  %p56_p5 = scmp.eq.s32.totalorder %s2091_s3, 0 }
   0xd   : > { %p2693_p4 = por %p50_p2, %p49_p1  ;;  %s37_s27 = ssub.s32 %s2611_s21, %s3659_s24 }
   0xe   : > { %p147_p6 = scmp.eq.s32.totalorder %s2091_s3, 1  ;;  %p40_p7 = scmp.eq.s32.totalorder %s37_s27, 0 }
   0xf   : > { %p2699_p8 = por %p56_p5, %p55_p3  ;;  %p153_p10 = scmp.eq.s32.totalorder %s2092_s23, 1 }
  0x10   : > { %p2703_p9 = por %p147_p6, %p49_p1  ;;  %p2317_p13 = scmp.lt.s32.totalorder %s2615_s22, 2 }
  0x11   : > { %s2708_s30 = scalar_select %p40_p7, %s2603_s19, %s42_s25  }
  0x12   : > { %p2710_p11 = por %p153_p10, %p55_p3  ;;  %s188_s6 = sand.u32 1, %s2603_s19  }
  0x13   : > { %s2096_s7 = sshll.u32 %s188_s6, 8  ;;  %s2163_s8 = sshll.u32 %s2611_s21, 12 }
  0x14   : > { %s200_s11 = scalar_lea.hbm %s3624_s0, %s2163_s8  ;;  %s192_s12 = scalar_lea.vmem [#allocation4], %s2096_s7 }
  0x15   : > { %s201_s13 = sshll.u32 %s192_s12, 4  ;;  %p2723_p0 = pnand %p2317_p13, %p2693_p4  ;;  %s202_s13 = int_to_ptr.vmem [resolvable:$true] %s201_s13 }
  0x16   : > { %p2099_p1 = scmp.ge.s32.totalorder %s2615_s22, 1  ;;  %s189_s15 = scalar_lea.sflag [#allocation5], %s188_s6 }
  0x17   : > { %p2509_p2 = pneg %p2723_p0  ;;  %s2520_s16 = scalar_lea.vmem %s202_s13, 4096 }
  0x18   : > { %p2521_p3 = scmp.ne.s32.totalorder %s202_s13, %s2520_s16  ;;  %s2617_s3 = smov [#allocation4]  }
  0x19   : > { %s2525_s23 = sshll.u32 %s2617_s3, 4  ;;  %s2526_s23 = int_to_ptr.vmem [resolvable:$false] %s2525_s23 }
  0x1a   : > { %p2523_p5 = pnand %p2521_p3, %p2509_p2  ;;  %s2527_s25 = scalar_lea.vmem %s2526_s23, 8192 }
  0x1b   : > { %p2528_p7 = scmp.lt.s32.totalorder %s202_s13, %s2526_s23  ;;  %p2529_p10 = scmp.lt.s32.totalorder %s2527_s25, %s2520_s16 }
  0x1c   : > { %p2524_p6 = pneg %p2523_p5 }
  0x1d   : > { %p2530_p12 = por %p2529_p10, %p2528_p7 }
  0x1f   : > { %p2531_p4 = pnand %p2530_p12, %p2524_p6 }
  0x21   : > { %2534 = shalt.err (!%p2531_p4)
}
  0x22   : > { %s2618_s26 = smov 256   ;;  %s2619_s27 = smov 16  }
  0x23   : > { %2312 = dma.hbm_to_vmem [thread:$0]  (!%p2723_p0), %s200_s11, 4096, %s202_s13, %s189_s15, %s2618_s26, %s2618_s26, %s2619_s27  }
  0x24   : > { %p209_p13 = scmp.lt.s32.totalorder %s2615_s22, 3 }
  0x26   : > { %p210_p2 = pnand %p2099_p1, %p209_p13 }
  0x28   : > { %213 = sbr.rel (%p210_p2) target bundleno = 1366 (0x556), region = 36 }
  0x2d   : > { %s2736_s6 = sand.u32 1, %s2599_s18  }
  0x2e   : > { %s2100_s7 = sshll.u32 %s2736_s6, 8  ;;  %s216_s8 = scalar_lea.sflag [#allocation5], %s2736_s6 }
  0x2f   : > { %s2742_s9 = scalar_lea.vmem [#allocation4], %s2100_s7 }
  0x30   : > { %2586 = dma.done.wait (%p2699_p8), %s216_s8, 4096  }
  0x31   : > { %2588 = vsyncadd (%p2699_p8), %s216_s8, 4294963200  ;;  %v2620_v0 = vmov 0   ;;  %v286_v1 = vld [vmem:[%s2742_s9 + $0xe8] sm:$0xff]  ;;  %v288_v2 = vld [vmem:[%s2742_s9 + $0xf8] sm:$0xff]  ;;  %vm1100_vm0 = vcmask 261120   ;;  %s1003_s10 = sld [smem:[#allocation3]] }
  0x32   : > { %2374 = vset.pattern.permute.xlu1 %v2620_v0  ;;  %2373 = vset.pattern.permute.xlu0 %v2620_v0  ;;  %v285_v3 = vld [vmem:[%s2742_s9 + $0xe0] sm:$0xff]  ;;  %v526_v4 = vpack.c.bf16 %v288_v2, %v286_v1  ;;  %v287_v5 = vld [vmem:[%s2742_s9 + $0xf0] sm:$0xff]  ;;  %v282_v6 = vld [vmem:[%s2742_s9 + $0xc8] sm:$0xff]  ;;  %s3473_s11 = scalar_lea.vmem [#allocation7], %s2100_s7  ;;  %s2164_s7 = sshll.u32 %s2607_s20, 12 }
  0x33   : > { %v284_v7 = vld [vmem:[%s2742_s9 + $0xd8] sm:$0xff]  ;;  %v525_v8 = vpack.c.bf16 %v287_v5, %v285_v3  ;;  %v281_v10 = vld [vmem:[%s2742_s9 + $0xc0] sm:$0xff]  ;;  %v283_v11 = vld [vmem:[%s2742_s9 + $0xd0] sm:$0xff]  ;;  %s1990_s12 = sshll.u32 %s3473_s11, 4  ;;  %s3571_s15 = scalar_lea.hbm %s3628_s4, %s2164_s7  ;;  %s3573_s12 = int_to_ptr.vmem [resolvable:$true] %s1990_s12 }
  0x34   : > { %v524_v9 = vpack.c.bf16 %v284_v7, %v282_v6  ;;  %727 = vmatprep.subr.bf16.mxu0 %v526_v4  ;;  %2289 = vmatprep.subr.bf16.mxu1 %v526_v4  ;;  %v2757_v12 = vld [vmem:[%s2742_s9 + $0xa8] sm:$0xff]  ;;  %v2760_v13 = vld [vmem:[%s2742_s9 + $0xb8] sm:$0xff]  ;;  %v523_v14 = vpack.c.bf16 %v283_v11, %v281_v10  ;;  %v2768_v17 = vld [vmem:[%s2742_s9 + $0xa0] sm:$0xff]  ;;  %s1977_s20 = scalar_lea.sflag [#allocation6], %s2736_s6  ;;  %s2535_s16 = scalar_lea.vmem %s3573_s12, 4096 }
  0x35   : > { %728 = vmatpush1.bf16.xpose.msra.mxu0 %v525_v8  ;;  %2297 = vmatpush1.bf16.xpose.msra.mxu1 %v525_v8  ;;  %v522_v15 = vpack.c.bf16 %v2760_v13, %v2757_v12  ;;  %v2377_v16 = vld [vmem:[%s3625_s1 + $0x4] ss:$8 sps:$4 sm:$0xff]   ;;  %v2771_v18 = vld [vmem:[%s2742_s9 + $0xb0] sm:$0xff]  ;;  %v2777_v20 = vld [vmem:[%s2742_s9 + $0x98] sm:$0xff]  ;;  %p2536_p8 = scmp.ne.s32.totalorder %s3573_s12, %s2535_s16  ;;  %s2621_s3 = smov [#allocation7]  }
  0x36   : > { %729 = vmatprep.subr.bf16.mxu0 %v524_v9  ;;  %2290 = vmatprep.subr.bf16.mxu1 %v524_v9  ;;  %v2774_v19 = vld [vmem:[%s2742_s9 + $0x88] sm:$0xff]  ;;  %v521_v21 = vpack.c.bf16 %v2771_v18, %v2768_v17  ;;  %v1042_v22 = vld [vmem:[%s3626_s2 + $0x30] sm:$0xff]  ;;  %v1040_v23 = vld [vmem:[%s3626_s2 + $0x20] sm:$0xff]  ;;  %s2539_s23 = sshll.u32 %s2621_s3, 4  ;;  %s2540_s23 = int_to_ptr.vmem [resolvable:$false] %s2539_s23 }
  0x37   : > { %759 = vmatprep.mubr.bf16.mxu0 %v2377_v16  ;;  %v520_v24 = vpack.c.bf16 %v2777_v20, %v2774_v19  ;;  %1056 = vperm.xlu1 %2374, %v1042_v22   ;;  %v1043_v25 = vld [vmem:[%s3626_s2 + $0x38] sm:$0xff]  ;;  %v1041_v26 = vld [vmem:[%s3626_s2 + $0x28] sm:$0xff]  ;;  %v2796_v27 = vld [vmem:[%s2742_s9 + $0x80] sm:$0xff]  ;;  %p2537_p12 = pnand %p2536_p8, %p2703_p9  ;;  %s2541_s25 = scalar_lea.vmem %s2540_s23, 8192 }
  0x38   : > { %1046 = vperm.xlu0 %2373, %v1040_v23   ;;  %v2799_v28 = vld [vmem:[%s2742_s9 + $0x90] sm:$0xff]  ;;  %v2802_v29 = vld [vmem:[%s2742_s9 + $0x68] sm:$0xff]  ;;  %v2805_v30 = vld [vmem:[%s2742_s9 + $0x78] sm:$0xff]  ;;  %p2542_p1 = scmp.lt.s32.totalorder %s3573_s12, %s2540_s23  ;;  %p2543_p3 = scmp.lt.s32.totalorder %s2541_s25, %s2535_s16 }
  0x39   : > { %v1010_v31 = vld [vmem:[%s3626_s2 + $0x10] sm:$0xff]  ;;  %v1011_v32 = vld [vmem:[%s3626_s2 + $0x18] sm:$0xff]  ;;  %v519_v33 = vpack.c.bf16 %v2799_v28, %v2796_v27  ;;  %v1008_v34 = vld [vmem:[%s3626_s2] sm:$0xff]  ;;  %v518_v35 = vpack.c.bf16 %v2805_v30, %v2802_v29  ;;  %p2538_p0 = pneg %p2537_p12 }
  0x3a   : > { %v1009_v36 = vld [vmem:[%s3626_s2 + $0x8] sm:$0xff]  ;;  %v2824_v37 = vld [vmem:[%s2742_s9 + $0x60] sm:$0xff]  ;;  %v2827_v38 = vld [vmem:[%s2742_s9 + $0x70] sm:$0xff]  ;;  %p2544_p5 = por %p2543_p3, %p2542_p1 }
  0x3b   : > { %1061 = vperm.xlu1 %2374, %v1043_v25   ;;  %v2830_v39 = vld [vmem:[%s2742_s9 + $0x48] sm:$0xff]  ;;  %v2833_v40 = vld [vmem:[%s2742_s9 + $0x58] sm:$0xff]  ;;  %v517_v41 = vpack.c.bf16 %v2827_v38, %v2824_v37  ;;  %v2840_v43 = vld [vmem:[%s2742_s9 + $0x40] sm:$0xff] }
  0x3c   : > { %1051 = vperm.xlu0 %2373, %v1041_v26   ;;  %v516_v42 = vpack.c.bf16 %v2833_v40, %v2830_v39  ;;  %v2843_v44 = vld [vmem:[%s2742_s9 + $0x50] sm:$0xff]  ;;  %v2846_v45 = vld [vmem:[%s2742_s9 + $0x28] sm:$0xff]  ;;  %v2849_v46 = vld [vmem:[%s2742_s9 + $0x38] sm:$0xff]  ;;  %p2545_p6 = pnand %p2544_p5, %p2538_p0 }
  0x3d   : > { %730 = vmatpush1.bf16.xpose.msra.mxu0 %v523_v14  ;;  %2298 = vmatpush1.bf16.xpose.msra.mxu1 %v523_v14  ;;  %v515_v47 = vpack.c.bf16 %v2843_v44, %v2840_v43  ;;  %v514_v48 = vpack.c.bf16 %v2849_v46, %v2846_v45  ;;  %v2856_v49 = vld [vmem:[%s2742_s9 + $0x20] sm:$0xff]  ;;  %v2859_v50 = vld [vmem:[%s2742_s9 + $0x30] sm:$0xff]  ;;  %v2862_v51 = vld [vmem:[%s2742_s9 + $0x8] sm:$0xff] }
  0x3e   : > { %731 = vmatprep.subr.bf16.mxu0 %v522_v15  ;;  %2291 = vmatprep.subr.bf16.mxu1 %v522_v15  ;;  %v2865_v52 = vld [vmem:[%s2742_s9 + $0x18] sm:$0xff]  ;;  %v513_v53 = vpack.c.bf16 %v2859_v50, %v2856_v49  ;;  %v2872_v55 = vld [vmem:[%s2742_s9] sm:$0xff]  ;;  %v2875_v56 = vld [vmem:[%s2742_s9 + $0x10] sm:$0xff] }
  0x3f   : > { %1024 = vperm.xlu1 %2374, %v1010_v31   ;;  %v512_v54 = vpack.c.bf16 %v2865_v52, %v2862_v51  ;;  %v511_v57 = vpack.c.bf16 %v2875_v56, %v2872_v55  ;;  %v2375_v58 = vld [vmem:[%s3625_s1] ss:$8 sps:$4 sm:$0xff]   ;;  %v2378_v59 = vld [vmem:[%s3625_s1 + $0x14] ss:$8 sps:$4 sm:$0xff]   ;;  %v2380_v60 = vld [vmem:[%s3625_s1 + $0x10] ss:$8 sps:$4 sm:$0xff]  }
  0x40   : > { %1029 = vperm.xlu0 %2373, %v1011_v32   ;;  %v2381_v61 = vld [vmem:[%s3625_s1 + $0x24] ss:$8 sps:$4 sm:$0xff]   ;;  %v2383_v62 = vld [vmem:[%s3625_s1 + $0x20] ss:$8 sps:$4 sm:$0xff]   ;;  %v2384_v63 = vld [vmem:[%s3625_s1 + $0x34] ss:$8 sps:$4 sm:$0xff]  }
  0x41   : > { %v2386_v0 = vld [vmem:[%s3625_s1 + $0x30] ss:$8 sps:$4 sm:$0xff]   ;;  %v2389_v1 = vld [vmem:[%s3625_s1 + $0x124] ss:$8 sps:$4 sm:$0xff]   ;;  %v2387_v2 = vld [vmem:[%s3625_s1 + $0x120] ss:$8 sps:$4 sm:$0xff]  }
  0x42   : > { %903 = vmatprep.mubr.bf16.mxu1 %v2389_v1  ;;  %v2390_v3 = vld [vmem:[%s3625_s1 + $0x134] ss:$8 sps:$4 sm:$0xff]   ;;  %v2392_v4 = vld [vmem:[%s3625_s1 + $0x130] ss:$8 sps:$4 sm:$0xff]  }
  0x43   : > { %1014 = vperm.xlu1 %2374, %v1008_v34  }
  0x44   : > { %1019 = vperm.xlu0 %2373, %v1009_v36  }
  0x45   : > { %732 = vmatpush1.bf16.xpose.msra.mxu0 %v521_v21  ;;  %2299 = vmatpush1.bf16.xpose.msra.mxu1 %v521_v21 }
  0x46   : > { %733 = vmatprep.subr.bf16.mxu0 %v520_v24  ;;  %2292 = vmatprep.subr.bf16.mxu1 %v520_v24 }
  0x4d   : > { %734 = vmatpush1.bf16.xpose.msra.mxu0 %v519_v33  ;;  %2300 = vmatpush1.bf16.xpose.msra.mxu1 %v519_v33 }
  0x4e   : > { %735 = vmatprep.subr.bf16.mxu0 %v518_v35  ;;  %2293 = vmatprep.subr.bf16.mxu1 %v518_v35 }
  0x55   : > { %736 = vmatpush1.bf16.xpose.msra.mxu0 %v517_v41  ;;  %2301 = vmatpush1.bf16.xpose.msra.mxu1 %v517_v41 }
  0x56   : > { %737 = vmatprep.subr.bf16.mxu0 %v516_v42  ;;  %2294 = vmatprep.subr.bf16.mxu1 %v516_v42 }
  0x5d   : > { %738 = vmatpush1.bf16.xpose.msra.mxu0 %v515_v47  ;;  %2302 = vmatpush1.bf16.xpose.msra.mxu1 %v515_v47 }
  0x5e   : > { %739 = vmatprep.subr.bf16.mxu0 %v514_v48  ;;  %2295 = vmatprep.subr.bf16.mxu1 %v514_v48 }
  0x65   : > { %740 = vmatpush1.bf16.xpose.msra.mxu0 %v513_v53  ;;  %2303 = vmatpush1.bf16.xpose.msra.mxu1 %v513_v53 }
  0x66   : > { %741 = vmatprep.subr.bf16.mxu0 %v512_v54  ;;  %2296 = vmatprep.subr.bf16.mxu1 %v512_v54 }
  0x6d   : > { %742 = vmatpush1.bf16.xpose.msra.mxu0 %v511_v57  ;;  %2304 = vmatpush1.bf16.xpose.msra.mxu1 %v511_v57 }
  0x74   : > { %760 = vmatmul.mubr.bf16.vlgmr.msra.gmra.mxu0 %v2375_v58  ;;  %904 = vmatmul.mubr.bf16.vlgmr.msra.gmra.mxu1 %v2387_v2 }
  0x75   : > { %767 = vmatprep.mubr.bf16.mxu0 %v2378_v59  ;;  %911 = vmatprep.mubr.bf16.mxu1 %v2390_v3 }
  0x7c   : > { %768 = vmatmul.mubr.bf16.gmra.mxu0 %v2380_v60  ;;  %912 = vmatmul.mubr.bf16.gmra.mxu1 %v2392_v4 }
  0x7d   : > { %775 = vmatprep.mubr.bf16.mxu0 %v2381_v61 }
  0x84   : > { %776 = vmatmul.mubr.bf16.gmra.mxu0 %v2383_v62 }
  0x85   : > { %783 = vmatprep.mubr.bf16.mxu0 %v2384_v63 }
  0x8c   : > { %784 = vmatmul.mubr.bf16.gmra.mxu0 %v2386_v0 }
  0xb2   : > { %v1057_v6 = vpop.permute.xlu1 %1056 }
  0xb3   : > { %v1047_v5 = vpop.permute.xlu0 %1046 }
  0xb6   : > { %v1062_v10 = vpop.permute.xlu1 %1061 }
  0xb7   : > { %v1052_v8 = vpop.permute.xlu0 %1051 }
  0xba   : > { %v1025_v21 = vpop.permute.xlu1 %1024 }
  0xbb   : > { %v1030_v15 = vpop.permute.xlu0 %1029 }
  0xbe   : > { %v1015_v32 = vpop.permute.xlu1 %1014 }
  0xbf   : > { %v1020_v25 = vpop.permute.xlu0 %1019 }
 0x134   : > { %v761_v7 = vpop.f32.mrf.mxu0  ;;  %v2912_v61 = vpop.f32.mrf.mxu1 }
 0x135   : > { %v1032_v41 = vadd.f32 %v1015_v32, %v761_v7  ;;  %3637 = vst [vmem:[#allocation10_spill] sm:$0xff] %v2912_v61 }
 0x136   : > { %v763_v9 = vpop.f32.mrf.mxu0  ;;  %v907_v62 = vpop.f32.mrf.mxu1 }
 0x138   : > { %v764_v11 = vpop.f32.mrf.mxu0  ;;  %v2914_v63 = vpop.f32.mrf.mxu1 }
 0x139   : > { %v1033_v34 = vadd.f32 %v1020_v25, %v764_v11 }
 0x13a   : > { %v766_v14 = vpop.f32.mrf.mxu0  ;;  %v910_v1 = vpop.f32.mrf.mxu1 }
 0x13c   : > { %v769_v16 = vpop.f32.mrf.mxu0  ;;  %v2918_v2 = vpop.f32.mrf.mxu1 }
 0x13d   : > { %v1034_v31 = vadd.f32 %v1025_v21, %v769_v16  ;;  %3638 = vst [vmem:[#allocation11_spill] sm:$0xff] %v2918_v2 }
 0x13e   : > { %v771_v22 = vpop.f32.mrf.mxu0  ;;  %v915_v3 = vpop.f32.mrf.mxu1 }
 0x140   : > { %v772_v23 = vpop.f32.mrf.mxu0  ;;  %v2920_v4 = vpop.f32.mrf.mxu1 }
 0x141   : > { %v1035_v24 = vadd.f32 %v1030_v15, %v772_v23  ;;  %3639 = vst [vmem:[#allocation12_spill] sm:$0xff] %v2920_v4 }
 0x142   : > { %v774_v26 = vpop.f32.mrf.mxu0 }
 0x143   : > { %2209 = vmatprep.subr.mxu1 %v1035_v24 }
 0x144   : > { %v777_v33 = vpop.f32.mrf.mxu0  ;;  %2210 = vmatpush3.msra.mxu1 %v1035_v24 }
 0x145   : > { %v1064_v35 = vadd.f32 %v1047_v5, %v777_v33  ;;  %2211 = vmatprep.subr.mxu1 %v1034_v31  ;;  %v2393_v33 = vld [vmem:[%s3625_s1 + $0x44] ss:$8 sps:$4 sm:$0xff]  }
 0x146   : > { %v779_v36 = vpop.f32.mrf.mxu0  ;;  %2212 = vmatpush3.msra.mxu1 %v1034_v31  ;;  %791 = vmatprep.mubr.bf16.mxu0 %v2393_v33  ;;  %v2420_v33 = vld [vmem:[%s3625_s1 + $0xd4] ss:$8 sps:$4 sm:$0xff]  }
 0x147   : > { %2213 = vmatprep.subr.mxu1 %v1033_v34  ;;  %1068 = vxpose.xlu0.b32.start [1/4] (short) %v1064_v35, 128 }
 0x148   : > { %v780_v42 = vpop.f32.mrf.mxu0  ;;  %2214 = vmatpush3.msra.mxu1 %v1033_v34  ;;  %v2395_v34 = vld [vmem:[%s3625_s1 + $0x40] ss:$8 sps:$4 sm:$0xff]  }
 0x149   : > { %v1065_v47 = vadd.f32 %v1052_v8, %v780_v42  ;;  %2215 = vmatprep.subr.mxu1 %v1032_v41  ;;  %792 = vmatmul.mubr.bf16.gmra.mxu0 %v2395_v34  ;;  %v2422_v34 = vld [vmem:[%s3625_s1 + $0xd0] ss:$8 sps:$4 sm:$0xff]  }
 0x14a   : > { %v782_v48 = vpop.f32.mrf.mxu0  ;;  %2216 = vmatpush3.msra.mxu1 %v1032_v41 }
 0x14b   : > { %1069 = vxpose.xlu0.b32.cont [2/4] (short) %v1065_v47, 128 }
 0x14c   : > { %v785_v53 = vpop.f32.mrf.mxu0 }
 0x14d   : > { %v1066_v54 = vadd.f32 %v1057_v6, %v785_v53  ;;  %v918_v6 = vpop.f32.mrf.mxu1 }
 0x14e   : > { %v787_v57 = vpop.f32.mrf.mxu0 }
 0x14f   : > { %1070 = vxpose.xlu0.b32.cont [3/4] (short) %v1066_v54, 128 }
 0x150   : > { %v788_v58 = vpop.f32.mrf.mxu0 }
 0x151   : > { %v1067_v59 = vadd.f32 %v1062_v10, %v788_v58 }
 0x152   : > { %v790_v60 = vpop.f32.mrf.mxu0 }
 0x153   : > { %1071 = vxpose.xlu0.b32.end [4/4] (short) %v1067_v59, 128 }
 0x1c3   : > { %v1084_v7 = vpop.trf.xlu0 }
 0x1c4   : > { %2217 = vmatprep.mubr.msk.f32.mxu1 %vm1100_vm0, %v1084_v7  ;;  %v2396_v7 = vld [vmem:[%s3625_s1 + $0x54] ss:$8 sps:$4 sm:$0xff]  }
 0x1c5   : > { %799 = vmatprep.mubr.bf16.mxu0 %v2396_v7  ;;  %v2423_v7 = vld [vmem:[%s3625_s1 + $0xe4] ss:$8 sps:$4 sm:$0xff]  }
 0x1c7   : > { %v1085_v8 = vpop.trf.xlu0 }
 0x1c8   : > { %2218 = vmatmul.mubr.msk.f32.vlgmr.msra.gmra.mxu1 %vm1100_vm0, %v1085_v8  ;;  %v2398_v8 = vld [vmem:[%s3625_s1 + $0x50] ss:$8 sps:$4 sm:$0xff]  }
 0x1c9   : > { %800 = vmatmul.mubr.bf16.gmra.mxu0 %v2398_v8  ;;  %v2425_v8 = vld [vmem:[%s3625_s1 + $0xe0] ss:$8 sps:$4 sm:$0xff]  }
 0x1cb   : > { %v1086_v9 = vpop.trf.xlu0 }
 0x1cc   : > { %2220 = vmatprep.mubr.msk.f32.mxu1 %vm1100_vm0, %v1086_v9  ;;  %v2399_v9 = vld [vmem:[%s3625_s1 + $0x64] ss:$8 sps:$4 sm:$0xff]  }
 0x1cd   : > { %807 = vmatprep.mubr.bf16.mxu0 %v2399_v9  ;;  %v2426_v9 = vld [vmem:[%s3625_s1 + $0xf4] ss:$8 sps:$4 sm:$0xff]  }
 0x1cf   : > { %v1087_v10 = vpop.trf.xlu0 }
 0x1d0   : > { %2221 = vmatmul.mubr.msk.f32.gmra.mxu1 %vm1100_vm0, %v1087_v10  ;;  %v2401_v10 = vld [vmem:[%s3625_s1 + $0x60] ss:$8 sps:$4 sm:$0xff]  }
 0x1d1   : > { %808 = vmatmul.mubr.bf16.gmra.mxu0 %v2401_v10  ;;  %v2428_v10 = vld [vmem:[%s3625_s1 + $0xf0] ss:$8 sps:$4 sm:$0xff]  }
 0x1d3   : > { %v1088_v11 = vpop.trf.xlu0 }
 0x1d4   : > { %2223 = vmatprep.mubr.msk.f32.mxu1 %vm1100_vm0, %v1088_v11  ;;  %v2402_v11 = vld [vmem:[%s3625_s1 + $0x74] ss:$8 sps:$4 sm:$0xff]  }
 0x1d5   : > { %815 = vmatprep.mubr.bf16.mxu0 %v2402_v11  ;;  %v2429_v11 = vld [vmem:[%s3625_s1 + $0x104] ss:$8 sps:$4 sm:$0xff]  }
 0x1d7   : > { %v1089_v14 = vpop.trf.xlu0 }
 0x1d8   : > { %2224 = vmatmul.mubr.msk.f32.gmra.mxu1 %vm1100_vm0, %v1089_v14  ;;  %v2404_v14 = vld [vmem:[%s3625_s1 + $0x70] ss:$8 sps:$4 sm:$0xff]  }
 0x1d9   : > { %816 = vmatmul.mubr.bf16.gmra.mxu0 %v2404_v14  ;;  %v2431_v14 = vld [vmem:[%s3625_s1 + $0x100] ss:$8 sps:$4 sm:$0xff]  }
 0x1db   : > { %v1090_v15 = vpop.trf.xlu0 }
 0x1dc   : > { %2226 = vmatprep.mubr.msk.f32.mxu1 %vm1100_vm0, %v1090_v15  ;;  %v2405_v15 = vld [vmem:[%s3625_s1 + $0x84] ss:$8 sps:$4 sm:$0xff]  }
 0x1dd   : > { %823 = vmatprep.mubr.bf16.mxu0 %v2405_v15  ;;  %v2432_v15 = vld [vmem:[%s3625_s1 + $0x114] ss:$8 sps:$4 sm:$0xff]  }
 0x1df   : > { %v1091_v16 = vpop.trf.xlu0 }
 0x1e0   : > { %2227 = vmatmul.mubr.msk.f32.gmra.mxu1 %vm1100_vm0, %v1091_v16  ;;  %v2407_v16 = vld [vmem:[%s3625_s1 + $0x80] ss:$8 sps:$4 sm:$0xff]  }
 0x1e1   : > { %824 = vmatmul.mubr.bf16.gmra.mxu0 %v2407_v16  ;;  %v2434_v16 = vld [vmem:[%s3625_s1 + $0x110] ss:$8 sps:$4 sm:$0xff]  }
 0x1e3   : > { %v1092_v21 = vpop.trf.xlu0 }
 0x1e4   : > { %2229 = vmatprep.mubr.msk.f32.mxu1 %vm1100_vm0, %v1092_v21  ;;  %v2408_v21 = vld [vmem:[%s3625_s1 + $0x94] ss:$8 sps:$4 sm:$0xff]  }
 0x1e5   : > { %831 = vmatprep.mubr.bf16.mxu0 %v2408_v21 }
 0x1e7   : > { %v1093_v22 = vpop.trf.xlu0 }
 0x1e8   : > { %2230 = vmatmul.mubr.msk.f32.gmra.mxu1 %vm1100_vm0, %v1093_v22  ;;  %v2410_v22 = vld [vmem:[%s3625_s1 + $0x90] ss:$8 sps:$4 sm:$0xff]  }
 0x1e9   : > { %832 = vmatmul.mubr.bf16.gmra.mxu0 %v2410_v22 }
 0x1eb   : > { %v1094_v23 = vpop.trf.xlu0 }
 0x1ec   : > { %2232 = vmatprep.mubr.msk.f32.mxu1 %vm1100_vm0, %v1094_v23  ;;  %v2411_v23 = vld [vmem:[%s3625_s1 + $0xa4] ss:$8 sps:$4 sm:$0xff]  }
 0x1ed   : > { %839 = vmatprep.mubr.bf16.mxu0 %v2411_v23 }
 0x1ef   : > { %v1095_v24 = vpop.trf.xlu0 }
 0x1f0   : > { %2233 = vmatmul.mubr.msk.f32.gmra.mxu1 %vm1100_vm0, %v1095_v24  ;;  %v2413_v24 = vld [vmem:[%s3625_s1 + $0xa0] ss:$8 sps:$4 sm:$0xff]  }
 0x1f1   : > { %840 = vmatmul.mubr.bf16.gmra.mxu0 %v2413_v24 }
 0x1f3   : > { %v1096_v25 = vpop.trf.xlu0 }
 0x1f4   : > { %2235 = vmatprep.mubr.msk.f32.mxu1 %vm1100_vm0, %v1096_v25  ;;  %v2414_v25 = vld [vmem:[%s3625_s1 + $0xb4] ss:$8 sps:$4 sm:$0xff]  }
 0x1f5   : > { %847 = vmatprep.mubr.bf16.mxu0 %v2414_v25 }
 0x1f7   : > { %v1097_v26 = vpop.trf.xlu0 }
 0x1f8   : > { %2236 = vmatmul.mubr.msk.f32.gmra.mxu1 %vm1100_vm0, %v1097_v26  ;;  %v2416_v26 = vld [vmem:[%s3625_s1 + $0xb0] ss:$8 sps:$4 sm:$0xff]  }
 0x1f9   : > { %848 = vmatmul.mubr.bf16.gmra.mxu0 %v2416_v26 }
 0x1fb   : > { %v1098_v31 = vpop.trf.xlu0 }
 0x1fc   : > { %2238 = vmatprep.mubr.msk.f32.mxu1 %vm1100_vm0, %v1098_v31  ;;  %v2417_v31 = vld [vmem:[%s3625_s1 + $0xc4] ss:$8 sps:$4 sm:$0xff]  }
 0x1fd   : > { %855 = vmatprep.mubr.bf16.mxu0 %v2417_v31 }
 0x1ff   : > { %v1099_v32 = vpop.trf.xlu0 }
 0x200   : > { %2239 = vmatmul.mubr.msk.f32.gmra.mxu1 %vm1100_vm0, %v1099_v32  ;;  %v2419_v32 = vld [vmem:[%s3625_s1 + $0xc0] ss:$8 sps:$4 sm:$0xff]  }
 0x201   : > { %856 = vmatmul.mubr.bf16.gmra.mxu0 %v2419_v32 }
 0x202   : > { %863 = vmatprep.mubr.bf16.mxu0 %v2420_v33 }
 0x209   : > { %864 = vmatmul.mubr.bf16.gmra.mxu0 %v2422_v34 }
 0x20a   : > { %871 = vmatprep.mubr.bf16.mxu0 %v2423_v7 }
 0x211   : > { %872 = vmatmul.mubr.bf16.gmra.mxu0 %v2425_v8 }
 0x212   : > { %879 = vmatprep.mubr.bf16.mxu0 %v2426_v9 }
 0x219   : > { %880 = vmatmul.mubr.bf16.gmra.mxu0 %v2428_v10 }
 0x21a   : > { %887 = vmatprep.mubr.bf16.mxu0 %v2429_v11 }
 0x221   : > { %888 = vmatmul.mubr.bf16.gmra.mxu0 %v2431_v14 }
 0x222   : > { %895 = vmatprep.mubr.bf16.mxu0 %v2432_v15 }
 0x229   : > { %896 = vmatmul.mubr.bf16.gmra.mxu0 %v2434_v16 }
 0x288   : > { %v2946_v35 = vpop.f32.mrf.mxu1 }
 0x28a   : > { %v2948_v36 = vpop.f32.mrf.mxu1 }
 0x290   : > { %v2950_v41 = vpop.f32.mrf.mxu1 }
 0x292   : > { %v2952_v42 = vpop.f32.mrf.mxu1 }
 0x298   : > { %v2954_v47 = vpop.f32.mrf.mxu1 }
 0x29a   : > { %v2956_v48 = vpop.f32.mrf.mxu1 }
 0x2a0   : > { %v2958_v53 = vpop.f32.mrf.mxu1 }
 0x2a2   : > { %v2960_v54 = vpop.f32.mrf.mxu1 }
 0x2a8   : > { %v2962_v57 = vpop.f32.mrf.mxu1 }
 0x2aa   : > { %v2964_v58 = vpop.f32.mrf.mxu1 }
 0x2b0   : > { %v2966_v59 = vpop.f32.mrf.mxu1 }
 0x2b2   : > { %v2968_v60 = vpop.f32.mrf.mxu1 }
 0x2b8   : > { %v2970_v62 = vpop.f32.mrf.mxu1 }
 0x2b9   : > { %1320 = vmax.xlane.f32.xlu0 %v2970_v62 }
 0x2ba   : > { %v2973_v1 = vpop.f32.mrf.mxu1 }
 0x2c0   : > { %v2975_v3 = vpop.f32.mrf.mxu1 }
 0x2c2   : > { %v2977_v6 = vpop.f32.mrf.mxu1 }
 0x2c3   : > { %1322 = vmax.xlane.f32.xlu1 %v2977_v6 }
 0x2c7   : > { %1324 = vmax.xlane.f32.xlu1 %v2975_v3 }
 0x2cb   : > { %1318 = vmax.xlane.f32.xlu1 %v2973_v1 }
 0x2cf   : > { %1314 = vmax.xlane.f32.xlu1 %v2968_v60 }
 0x2d3   : > { %1316 = vmax.xlane.f32.xlu1 %v2966_v59 }
 0x2d7   : > { %1310 = vmax.xlane.f32.xlu1 %v2964_v58 }
 0x2db   : > { %1312 = vmax.xlane.f32.xlu1 %v2962_v57 }
 0x2df   : > { %1306 = vmax.xlane.f32.xlu1 %v2960_v54 }
 0x2e3   : > { %1308 = vmax.xlane.f32.xlu1 %v2958_v53 }
 0x2e7   : > { %1302 = vmax.xlane.f32.xlu1 %v2956_v48 }
 0x2eb   : > { %1304 = vmax.xlane.f32.xlu1 %v2954_v47 }
 0x2ef   : > { %1298 = vmax.xlane.f32.xlu1 %v2952_v42 }
 0x2f3   : > { %1300 = vmax.xlane.f32.xlu1 %v2950_v41 }
 0x2f7   : > { %1294 = vmax.xlane.f32.xlu1 %v2948_v36 }
 0x2fb   : > { %1296 = vmax.xlane.f32.xlu1 %v2946_v35 }
 0x342   : > { %v1321_v33 = vpop.xlane.xlu0 %1320 }
 0x343   : > { %v1339_v7 = vsub.f32 %v2970_v62, %v1321_v33 }
 0x345   : > { %v1368_v10 = vmul.f32 1.442695, %v1339_v7 }
 0x34c   : > { %v1323_v21 = vpop.xlane.xlu1 %1322 }
 0x34d   : > { %v1340_v23 = vsub.f32 %v2977_v6, %v1323_v21 }
 0x34f   : > { %v1370_v31 = vmul.f32 1.442695, %v1340_v23 }
 0x350   : > { %v1325_v22 = vpop.xlane.xlu1 %1324 }
 0x351   : > { %v1341_v24 = vsub.f32 %v2975_v3, %v1325_v22 }
 0x353   : > { %v1372_v25 = vmul.f32 1.442695, %v1341_v24 }
 0x354   : > { %v1319_v26 = vpop.xlane.xlu1 %1318 }
 0x355   : > { %2435 = vpow2.f32 %v1372_v25  ;;  %v1338_v32 = vsub.f32 %v2973_v1, %v1319_v26 }
 0x356   : > { %2437 = vpow2.f32 %v1370_v31 }
 0x357   : > { %v1366_v8 = vmul.f32 1.442695, %v1338_v32 }
 0x358   : > { %v1315_v34 = vpop.xlane.xlu1 %1314 }
 0x359   : > { %2439 = vpow2.f32 %v1366_v8  ;;  %v1336_v11 = vsub.f32 %v2968_v60, %v1315_v34 }
 0x35a   : > { %2441 = vpow2.f32 %v1368_v10 }
 0x35b   : > { %v1362_v3 = vmul.f32 1.442695, %v1336_v11 }
 0x35c   : > { %v1317_v9 = vpop.xlane.xlu1 %1316 }
 0x35d   : > { %v1337_v14 = vsub.f32 %v2966_v59, %v1317_v9  ;;  %2443 = vpow2.f32 %v1362_v3 }
 0x35f   : > { %v1364_v16 = vmul.f32 1.442695, %v1337_v14 }
 0x360   : > { %v1311_v6 = vpop.xlane.xlu1 %1310 }
 0x361   : > { %v1334_v62 = vsub.f32 %v2964_v58, %v1311_v6  ;;  %2445 = vpow2.f32 %v1364_v16  ;;  %v793_v16 = vpop.f32.mrf.mxu0 }
 0x362   : > { %v3078_v15 = vpop.eup %2435 }
 0x363   : > { %1404 = vadd.xlane.f32.xlu1 %v3078_v15  ;;  %v3082_v21 = vpop.eup %2437  ;;  %v1358_v60 = vmul.f32 1.442695, %v1334_v62 }
 0x364   : > { %v1313_v1 = vpop.xlane.xlu1 %1312 }
 0x365   : > { %v1335_v23 = vsub.f32 %v2962_v57, %v1313_v1  ;;  %2447 = vpow2.f32 %v1358_v60  ;;  %v795_v60 = vpop.f32.mrf.mxu0 }
 0x366   : > { %v3086_v24 = vpop.eup %2439 }
 0x367   : > { %1402 = vadd.xlane.f32.xlu1 %v3082_v21  ;;  %v1360_v25 = vmul.f32 1.442695, %v1335_v23  ;;  %v3090_v31 = vpop.eup %2441 }
 0x368   : > { %v1307_v22 = vpop.xlane.xlu1 %1306 }
 0x369   : > { %v1332_v26 = vsub.f32 %v2960_v54, %v1307_v22  ;;  %2449 = vpow2.f32 %v1360_v25 }
 0x36a   : > { %v3094_v34 = vpop.eup %2443 }
 0x36b   : > { %1398 = vadd.xlane.f32.xlu1 %v3086_v24  ;;  %v1354_v33 = vmul.f32 1.442695, %v1332_v26 }
 0x36c   : > { %v1309_v59 = vpop.xlane.xlu1 %1308 }
 0x36d   : > { %v1333_v58 = vsub.f32 %v2958_v53, %v1309_v59  ;;  %2451 = vpow2.f32 %v1354_v33  ;;  %v796_v59 = vpop.f32.mrf.mxu0 }
 0x36e   : > { %v3099_v9 = vpop.eup %2445  ;;  %v1470_v26 = vpack.c.bf16 %v796_v59, %v793_v16 }
 0x36f   : > { %1400 = vadd.xlane.f32.xlu1 %v3090_v31  ;;  %v1356_v57 = vmul.f32 1.442695, %v1333_v58  ;;  %v798_v58 = vpop.f32.mrf.mxu0 }
 0x370   : > { %v1303_v32 = vpop.xlane.xlu1 %1302  ;;  %2257 = vmatprep.mubr.bf16.mxu1 %v1470_v26 }
 0x371   : > { %v1330_v8 = vsub.f32 %v2956_v48, %v1303_v32  ;;  %2453 = vpow2.f32 %v1356_v57 }
 0x372   : > { %v3103_v3 = vpop.eup %2447 }
 0x373   : > { %1394 = vadd.xlane.f32.xlu1 %v3094_v34  ;;  %v1350_v11 = vmul.f32 1.442695, %v1330_v8 }
 0x374   : > { %v1305_v7 = vpop.xlane.xlu1 %1304 }
 0x375   : > { %v1331_v54 = vsub.f32 %v2954_v47, %v1305_v7  ;;  %v3119_v7 = vpop.f32.mrf.mxu0 }
 0x376   : > { %v3107_v48 = vpop.eup %2449 }
 0x377   : > { %v1352_v10 = vmul.f32 1.442695, %v1331_v54  ;;  %1396 = vadd.xlane.f32.xlu1 %v3099_v9  ;;  %v803_v8 = vpop.f32.mrf.mxu0 }
 0x378   : > { %v1299_v53 = vpop.xlane.xlu1 %1298 }
 0x379   : > { %2455 = vpow2.f32 %v1352_v10  ;;  %v1328_v6 = vsub.f32 %v2952_v42, %v1299_v53  ;;  %v3125_v10 = vpop.f32.mrf.mxu0 }
 0x37a   : > { %2457 = vpow2.f32 %v1350_v11  ;;  %v3111_v23 = vpop.eup %2451 }
 0x37b   : > { %1390 = vadd.xlane.f32.xlu1 %v3103_v3  ;;  %v1346_v14 = vmul.f32 1.442695, %v1328_v6  ;;  %v806_v53 = vpop.f32.mrf.mxu0 }
 0x37c   : > { %v1301_v1 = vpop.xlane.xlu1 %1300 }
 0x37d   : > { %v1329_v47 = vsub.f32 %v2950_v41, %v1301_v1  ;;  %2459 = vpow2.f32 %v1346_v14  ;;  %v3134_v14 = vpop.f32.mrf.mxu0 }
 0x37e   : > { %v3114_v32 = vpop.eup %2453 }
 0x37f   : > { %v1348_v62 = vmul.f32 1.442695, %v1329_v47  ;;  %1392 = vadd.xlane.f32.xlu1 %v3107_v48  ;;  %v811_v1 = vpop.f32.mrf.mxu0 }
 0x380   : > { %v1295_v22 = vpop.xlane.xlu1 %1294 }
 0x381   : > { %2461 = vpow2.f32 %v1348_v62  ;;  %v1326_v42 = vsub.f32 %v2948_v36, %v1295_v22  ;;  %v3140_v16 = vpop.f32.mrf.mxu0 }
 0x383   : > { %v1342_v25 = vmul.f32 1.442695, %v1326_v42  ;;  %1386 = vadd.xlane.f32.xlu1 %v3111_v23  ;;  %v814_v22 = vpop.f32.mrf.mxu0 }
 0x384   : > { %v1297_v41 = vpop.xlane.xlu1 %1296 }
 0x385   : > { %2463 = vpow2.f32 %v1342_v25  ;;  %v1327_v33 = vsub.f32 %v2946_v35, %v1297_v41  ;;  %v3147_v42 = vpop.f32.mrf.mxu0 }
 0x386   : > { %v3117_v57 = vpop.eup %2455 }
 0x387   : > { %v1344_v36 = vmul.f32 1.442695, %v1327_v33  ;;  %1384 = vadd.xlane.f32.xlu0 %v3117_v57  ;;  %1388 = vadd.xlane.f32.xlu1 %v3114_v32  ;;  %v3123_v54 = vpop.eup %2457  ;;  %v819_v59 = vpop.f32.mrf.mxu0 }
 0x389   : > { %2465 = vpow2.f32 %v1344_v36  ;;  %v3150_v25 = vpop.f32.mrf.mxu0 }
 0x38a   : > { %v3130_v11 = vpop.eup %2459 }
 0x38b   : > { %1382 = vadd.xlane.f32.xlu1 %v3123_v54  ;;  %v822_v41 = vpop.f32.mrf.mxu0 }
 0x38d   : > { %v3154_v58 = vpop.f32.mrf.mxu0 }
 0x38e   : > { %v3132_v6 = vpop.eup %2461 }
 0x38f   : > { %1380 = vadd.xlane.f32.xlu0 %v3132_v6  ;;  %1378 = vadd.xlane.f32.xlu1 %v3130_v11  ;;  %v827_v33 = vpop.f32.mrf.mxu0 }
 0x391   : > { %v3156_v36 = vpop.f32.mrf.mxu0 }
 0x392   : > { %v3138_v47 = vpop.eup %2463 }
 0x393   : > { %1374 = vadd.xlane.f32.xlu1 %v3138_v47  ;;  %v830_v53 = vpop.f32.mrf.mxu0 }
 0x395   : > { %v3160_v1 = vpop.f32.mrf.mxu0 }
 0x396   : > { %v3145_v60 = vpop.eup %2465 }
 0x397   : > { %1376 = vadd.xlane.f32.xlu0 %v3145_v60  ;;  %v835_v22 = vpop.f32.mrf.mxu0 }
 0x399   : > { %v3162_v5 = vpop.f32.mrf.mxu0 }
 0x39b   : > { %v838_v0 = vpop.f32.mrf.mxu0 }
 0x39d   : > { %v3166_v26 = vpop.f32.mrf.mxu0 }
 0x39f   : > { %v843_v41 = vpop.f32.mrf.mxu0 }
 0x3a1   : > { %v3168_v62 = vpop.f32.mrf.mxu0 }
 0x3a3   : > { %v846_v35 = vpop.f32.mrf.mxu0 }
 0x3a5   : > { %v3172_v8 = vpop.f32.mrf.mxu0 }
 0x3a7   : > { %v851_v53 = vpop.f32.mrf.mxu0 }
 0x3a9   : > { %v3174_v2 = vpop.f32.mrf.mxu0 }
 0x3aa   : > { %v1477_v22 = vpack.c.bf16 %v3174_v2, %v3172_v8  ;;  %v3649_v8 = vld [vmem:[#allocation12_spill] sm:$0xff] }
 0x3ab   : > { %v854_v4 = vpop.f32.mrf.mxu0 }
 0x3ad   : > { %v3178_v59 = vpop.f32.mrf.mxu0 }
 0x3af   : > { %v859_v0 = vpop.f32.mrf.mxu0 }
 0x3b1   : > { %v3180_v61 = vpop.f32.mrf.mxu0 }
 0x3b3   : > { %v862_v35 = vpop.f32.mrf.mxu0 }
 0x3b5   : > { %v3186_v53 = vpop.f32.mrf.mxu0 }
 0x3b7   : > { %v867_v33 = vpop.f32.mrf.mxu0 }
 0x3b9   : > { %v3190_v4 = vpop.f32.mrf.mxu0 }
 0x3ba   : > { %v1479_v0 = vpack.c.bf16 %v3190_v4, %v3186_v53 }
 0x3bb   : > { %v870_v41 = vpop.f32.mrf.mxu0 }
 0x3c4   : > { %322 = vxpose.xlu0.b32.start [1/16] %v2862_v51, 128  ;;  %v3196_v51 = vpop.f32.mrf.mxu0 }
 0x3c6   : > { %290 = vxpose.xlu1.b32.start [1/16] %v2872_v55, 128  ;;  %v875_v55 = vpop.f32.mrf.mxu0 }
 0x3c8   : > { %323 = vxpose.xlu0.b32.cont [2/16] %v2865_v52, 128  ;;  %v3200_v52 = vpop.f32.mrf.mxu0 }
 0x3ca   : > { %291 = vxpose.xlu1.b32.cont [2/16] %v2875_v56, 128  ;;  %v1480_v56 = vpack.c.bf16 %v3200_v52, %v3196_v51  ;;  %v878_v33 = vpop.f32.mrf.mxu0 }
 0x3cb   : > { %v2500_v33 = vld [vmem:[%s2742_s9 + $0xc0] sm:$0xff] }
 0x3cc   : > { %324 = vxpose.xlu0.b32.cont [3/16] %v2846_v45, 128  ;;  %v3206_v45 = vpop.f32.mrf.mxu0 }
 0x3ce   : > { %292 = vxpose.xlu1.b32.cont [3/16] %v2856_v49, 128  ;;  %v883_v49 = vpop.f32.mrf.mxu0 }
 0x3cf   : > { %v2502_v49 = vld [vmem:[%s2742_s9 + $0xd0] sm:$0xff] }
 0x3d0   : > { %325 = vxpose.xlu0.b32.cont [4/16] %v2849_v46, 128  ;;  %v3210_v46 = vpop.f32.mrf.mxu0 }
 0x3d2   : > { %293 = vxpose.xlu1.b32.cont [4/16] %v2859_v50, 128  ;;  %v1481_v50 = vpack.c.bf16 %v3210_v46, %v3206_v45  ;;  %v886_v41 = vpop.f32.mrf.mxu0 }
 0x3d3   : > { %v2503_v41 = vld [vmem:[%s2742_s9 + $0xe8] sm:$0xff] }
 0x3d4   : > { %326 = vxpose.xlu0.b32.cont [5/16] %v2830_v39, 128  ;;  %v3216_v39 = vpop.f32.mrf.mxu0 }
 0x3d6   : > { %294 = vxpose.xlu1.b32.cont [5/16] %v2840_v43, 128  ;;  %v891_v43 = vpop.f32.mrf.mxu0 }
 0x3d8   : > { %327 = vxpose.xlu0.b32.cont [6/16] %v2833_v40, 128  ;;  %v3220_v40 = vpop.f32.mrf.mxu0 }
 0x3da   : > { %295 = vxpose.xlu1.b32.cont [6/16] %v2843_v44, 128  ;;  %v1482_v44 = vpack.c.bf16 %v3220_v40, %v3216_v39  ;;  %v894_v35 = vpop.f32.mrf.mxu0 }
 0x3db   : > { %v2504_v35 = vld [vmem:[%s2742_s9 + $0xe0] sm:$0xff] }
 0x3dc   : > { %328 = vxpose.xlu0.b32.cont [7/16] %v2802_v29, 128  ;;  %v3226_v29 = vpop.f32.mrf.mxu0 }
 0x3de   : > { %296 = vxpose.xlu1.b32.cont [7/16] %v2824_v37, 128  ;;  %v899_v37 = vpop.f32.mrf.mxu0 }
 0x3e0   : > { %329 = vxpose.xlu0.b32.cont [8/16] %v2805_v30, 128  ;;  %v3230_v30 = vpop.f32.mrf.mxu0 }
 0x3e2   : > { %297 = vxpose.xlu1.b32.cont [8/16] %v2827_v38, 128  ;;  %v1483_v38 = vpack.c.bf16 %v3230_v30, %v3226_v29  ;;  %v902_v55 = vpop.f32.mrf.mxu0 }
 0x3e3   : > { %v2505_v55 = vld [vmem:[%s2742_s9 + $0xf8] sm:$0xff] }
 0x3e4   : > { %330 = vxpose.xlu0.b32.cont [9/16] %v2774_v19, 128 }
 0x3e6   : > { %298 = vxpose.xlu1.b32.cont [9/16] %v2796_v27, 128  ;;  %v2499_v27 = vld [vmem:[%s2742_s9 + $0xc8] sm:$0xff] }
 0x3e8   : > { %331 = vxpose.xlu0.b32.cont [10/16] %v2777_v20, 128 }
 0x3ea   : > { %299 = vxpose.xlu1.b32.cont [10/16] %v2799_v28, 128 }
 0x3ec   : > { %332 = vxpose.xlu0.b32.cont [11/16] %v2757_v12, 128  ;;  %v1405_v19 = vpop.xlane.xlu1 %1404  ;;  %v2501_v12 = vld [vmem:[%s2742_s9 + $0xd8] sm:$0xff] }
 0x3ed   : > { %2467 = vrcp.f32 %v1405_v19 }
 0x3ee   : > { %300 = vxpose.xlu1.b32.cont [11/16] %v2768_v17, 128 }
 0x3f0   : > { %333 = vxpose.xlu0.b32.cont [12/16] %v2760_v13, 128  ;;  %v1403_v20 = vpop.xlane.xlu1 %1402 }
 0x3f1   : > { %2469 = vrcp.f32 %v1403_v20 }
 0x3f2   : > { %301 = vxpose.xlu1.b32.cont [12/16] %v2771_v18, 128 }
 0x3f4   : > { %334 = vxpose.xlu0.b32.cont [13/16] %v2499_v27, 128  ;;  %v1399_v28 = vpop.xlane.xlu1 %1398 }
 0x3f5   : > { %2471 = vrcp.f32 %v1399_v28  ;;  %v2506_v28 = vld [vmem:[%s2742_s9 + $0xf0] sm:$0xff] }
 0x3f6   : > { %302 = vxpose.xlu1.b32.cont [13/16] %v2500_v33, 128 }
 0x3f8   : > { %335 = vxpose.xlu0.b32.cont [14/16] %v2501_v12, 128  ;;  %v1401_v17 = vpop.xlane.xlu1 %1400 }
 0x3f9   : > { %2473 = vrcp.f32 %v1401_v17 }
 0x3fa   : > { %303 = vxpose.xlu1.b32.cont [14/16] %v2502_v49, 128  ;;  %v2468_v13 = vpop.eup %2467 }
 0x3fb   : > { %v1437_v19 = vmul.f32 %v2468_v13, %v3078_v15 }
 0x3fc   : > { %336 = vxpose.xlu0.b32.cont [15/16] %v2503_v41, 128  ;;  %v1395_v43 = vpop.xlane.xlu1 %1394 }
 0x3fd   : > { %2475 = vrcp.f32 %v1395_v43 }
 0x3fe   : > { %v2470_v18 = vpop.eup %2469  ;;  %304 = vxpose.xlu1.b32.cont [15/16] %v2504_v35, 128 }
 0x3ff   : > { %v1436_v37 = vmul.f32 %v2470_v18, %v3082_v21 }
 0x400   : > { %337 = vxpose.xlu0.b32.end [16/16] %v2505_v55, 128  ;;  %v1397_v20 = vpop.xlane.xlu1 %1396 }
 0x401   : > { %2477 = vrcp.f32 %v1397_v20  ;;  %v1493_v27 = vpack.c.bf16 %v1437_v19, %v1436_v37 }
 0x402   : > { %305 = vxpose.xlu1.b32.end [16/16] %v2506_v28, 128  ;;  %v2472_v33 = vpop.eup %2471 }
 0x403   : > { %2241 = vmatprep.subr.bf16.mxu1 %v1493_v27  ;;  %v1434_v49 = vmul.f32 %v2472_v33, %v3086_v24 }
 0x404   : > { %2242 = vmatpush3.bf16.xpose.msra.mxu1 %v1493_v27  ;;  %v1391_v12 = vpop.xlane.xlu1 %1390 }
 0x405   : > { %2479 = vrcp.f32 %v1391_v12 }
 0x406   : > { %v2474_v17 = vpop.eup %2473 }
 0x407   : > { %v1435_v41 = vmul.f32 %v2474_v17, %v3090_v31 }
 0x408   : > { %v1393_v21 = vpop.xlane.xlu1 %1392 }
 0x409   : > { %2481 = vrcp.f32 %v1393_v21  ;;  %v1492_v15 = vpack.c.bf16 %v1435_v41, %v1434_v49  ;;  %v1495_v41 = vld [vmem:[%s3626_s2 + $0x48] sm:$0xff] }
 0x40a   : > { %v2476_v13 = vpop.eup %2475 }
 0x40b   : > { %2243 = vmatprep.subr.bf16.mxu1 %v1492_v15  ;;  %v1432_v35 = vmul.f32 %v2476_v13, %v3094_v34 }
 0x40c   : > { %2244 = vmatpush3.bf16.xpose.msra.mxu1 %v1492_v15  ;;  %v1387_v43 = vpop.xlane.xlu1 %1386 }
 0x40d   : > { %2483 = vrcp.f32 %v1387_v43 }
 0x40e   : > { %v2478_v18 = vpop.eup %2477 }
 0x40f   : > { %v1433_v37 = vmul.f32 %v2478_v18, %v3099_v9  ;;  %v1496_v18 = vld [vmem:[%s3626_s2 + $0x50] sm:$0xff] }
 0x410   : > { %v1389_v19 = vpop.xlane.xlu1 %1388  ;;  %v1385_v55 = vpop.xlane.xlu0 %1384 }
 0x411   : > { %2485 = vrcp.f32 %v1389_v19  ;;  %v1491_v20 = vpack.c.bf16 %v1433_v37, %v1432_v35 }
 0x412   : > { %2487 = vrcp.f32 %v1385_v55  ;;  %v2480_v24 = vpop.eup %2479 }
 0x413   : > { %2245 = vmatprep.subr.bf16.mxu1 %v1491_v20  ;;  %v1430_v28 = vmul.f32 %v2480_v24, %v3103_v3 }
 0x414   : > { %2246 = vmatpush3.bf16.xpose.msra.mxu1 %v1491_v20  ;;  %v1383_v31 = vpop.xlane.xlu1 %1382  ;;  %v1494_v20 = vld [vmem:[%s3626_s2 + $0x40] sm:$0xff] }
 0x415   : > { %2489 = vrcp.f32 %v1383_v31 }
 0x416   : > { %v2482_v27 = vpop.eup %2481 }
 0x417   : > { %v1431_v33 = vmul.f32 %v2482_v27, %v3107_v48  ;;  %v1498_v27 = vld [vmem:[%s3626_s2 + $0x60] sm:$0xff] }
 0x418   : > { %v1379_v12 = vpop.xlane.xlu1 %1378  ;;  %v1381_v17 = vpop.xlane.xlu0 %1380 }
 0x419   : > { %2491 = vrcp.f32 %v1379_v12  ;;  %v1490_v34 = vpack.c.bf16 %v1431_v33, %v1430_v28  ;;  %v1500_v12 = vld [vmem:[%s3626_s2 + $0x70] sm:$0xff] }
 0x41a   : > { %2493 = vrcp.f32 %v1381_v17  ;;  %v2484_v9 = vpop.eup %2483 }
 0x41b   : > { %2247 = vmatprep.subr.bf16.mxu1 %v1490_v34  ;;  %v1428_v15 = vmul.f32 %v2484_v9, %v3111_v23 }
 0x41c   : > { %2248 = vmatpush3.bf16.xpose.msra.mxu1 %v1490_v34  ;;  %v1375_v49 = vpop.xlane.xlu1 %1374  ;;  %v1503_v34 = vld [vmem:[%s3626_s2 + $0x88] sm:$0xff] }
 0x41d   : > { %2495 = vrcp.f32 %v1375_v49  ;;  %v1502_v49 = vld [vmem:[%s3626_s2 + $0x80] sm:$0xff] }
 0x41e   : > { %v2486_v21 = vpop.eup %2485 }
 0x41f   : > { %v1429_v3 = vmul.f32 %v2486_v21, %v3114_v32  ;;  %v2488_v13 = vpop.eup %2487  ;;  %v1497_v32 = vld [vmem:[%s3626_s2 + $0x58] sm:$0xff]  ;;  %v1504_v21 = vld [vmem:[%s3626_s2 + $0x90] sm:$0xff] }
 0x420   : > { %1533 = vperm.xlu1 %2374, %v1495_v41   ;;  %v1377_v48 = vpop.xlane.xlu0 %1376  ;;  %v1427_v19 = vmul.f32 %v2488_v13, %v3117_v57  ;;  %v1499_v57 = vld [vmem:[%s3626_s2 + $0x68] sm:$0xff]  ;;  %v1508_v13 = vld [vmem:[%s3626_s2 + $0xb0] sm:$0xff] }
 0x421   : > { %2497 = vrcp.f32 %v1377_v48  ;;  %v1489_v43 = vpack.c.bf16 %v1429_v3, %v1428_v15  ;;  %v1506_v15 = vld [vmem:[%s3626_s2 + $0xa0] sm:$0xff]  ;;  %v1509_v3 = vld [vmem:[%s3626_s2 + $0xb8] sm:$0xff]  ;;  %v1511_v48 = vld [vmem:[%s3626_s2 + $0xc8] sm:$0xff] }
 0x422   : > { %v2490_v35 = vpop.eup %2489 }
 0x423   : > { %2249 = vmatprep.subr.bf16.mxu1 %v1489_v43  ;;  %v1426_v37 = vmul.f32 %v2490_v35, %v3123_v54  ;;  %v3641_v35 = vpack.c.bf16 %v3140_v16, %v3134_v14  ;;  %v3642_v14 = vpack.c.bf16 %v3150_v25, %v3147_v42  ;;  %v3643_v16 = vpack.c.bf16 %v3156_v36, %v3154_v58  ;;  %v1519_v42 = vld [vmem:[%s3626_s2 + $0x108] sm:$0xff]  ;;  %v1518_v25 = vld [vmem:[%s3626_s2 + $0x100] sm:$0xff] }
 0x424   : > { %1538 = vperm.xlu1 %2374, %v1496_v18   ;;  %2250 = vmatpush3.bf16.xpose.msra.mxu1 %v1489_v43  ;;  %v1510_v43 = vld [vmem:[%s3626_s2 + $0xc0] sm:$0xff]  ;;  %v3640_v18 = vpack.c.bf16 %v3125_v10, %v3119_v7  ;;  %v1515_v7 = vld [vmem:[%s3626_s2 + $0xe8] sm:$0xff]  ;;  %v3644_v58 = vpack.c.bf16 %v3162_v5, %v3160_v1  ;;  %v3645_v36 = vpack.c.bf16 %v3168_v62, %v3166_v26  ;;  %v1525_v1 = vld [vmem:[%s3626_s2 + $0x138] sm:$0xff] }
 0x425   : > { %v1488_v23 = vpack.c.bf16 %v1427_v19, %v1426_v37  ;;  %v1513_v37 = vld [vmem:[%s3626_s2 + $0xd8] sm:$0xff]  ;;  %v1512_v19 = vld [vmem:[%s3626_s2 + $0xd0] sm:$0xff]  ;;  %v1514_v10 = vld [vmem:[%s3626_s2 + $0xe0] sm:$0xff]  ;;  %v3646_v26 = vpack.c.bf16 %v3180_v61, %v3178_v59 }
 0x426   : > { %v2492_v55 = vpop.eup %2491  ;;  %v1523_v5 = vld [vmem:[%s3626_s2 + $0x128] sm:$0xff]  ;;  %v1522_v62 = vld [vmem:[%s3626_s2 + $0x120] sm:$0xff] }
 0x427   : > { %v2494_v24 = vpop.eup %2493  ;;  %2251 = vmatprep.subr.bf16.mxu1 %v1488_v23  ;;  %v1424_v31 = vmul.f32 %v2492_v55, %v3130_v11  ;;  %v1501_v11 = vld [vmem:[%s3626_s2 + $0x78] sm:$0xff]  ;;  %v3647_v61 = vld [vmem:[#allocation10_spill] sm:$0xff]  ;;  %v3650_v59 = vld [vmem:[#allocation11_spill] sm:$0xff] }
 0x428   : > { %1543 = vperm.xlu1 %2374, %v1497_v32   ;;  %v1425_v54 = vmul.f32 %v2494_v24, %v3132_v6  ;;  %v1516_v32 = vld [vmem:[%s3626_s2 + $0xf0] sm:$0xff]  ;;  %v1521_v55 = vld [vmem:[%s3626_s2 + $0x118] sm:$0xff]  ;;  %v3648_v2 = vpack.c.bf16 %v2914_v63, %v3647_v61 }
 0x429   : > { %1528 = vperm.xlu0 %2373, %v1494_v20   ;;  %v1520_v20 = vld [vmem:[%s3626_s2 + $0x110] sm:$0xff] }
 0x42a   : > { %v1487_v28 = vpack.c.bf16 %v1425_v54, %v1424_v31  ;;  %v2496_v33 = vpop.eup %2495  ;;  %v1524_v24 = vld [vmem:[%s3626_s2 + $0x130] sm:$0xff] }
 0x42b   : > { %v1422_v9 = vmul.f32 %v2496_v33, %v3138_v47  ;;  %v1507_v47 = vld [vmem:[%s3626_s2 + $0xa8] sm:$0xff] }
 0x42c   : > { %1553 = vperm.xlu1 %2374, %v1499_v57   ;;  %2252 = vmatpush3.bf16.xpose.msra.mxu1 %v1488_v23  ;;  %v1517_v23 = vld [vmem:[%s3626_s2 + $0xf8] sm:$0xff] }
 0x42d   : > { %1548 = vperm.xlu0 %2373, %v1498_v27   ;;  %2253 = vmatprep.subr.bf16.mxu1 %v1487_v28 }
 0x42e   : > { %v2498_v6 = vpop.eup %2497 }
 0x42f   : > { %v1423_v17 = vmul.f32 %v2498_v6, %v3145_v60  ;;  %v1505_v60 = vld [vmem:[%s3626_s2 + $0x98] sm:$0xff] }
 0x430   : > { %1563 = vperm.xlu1 %2374, %v1501_v11  }
 0x431   : > { %1558 = vperm.xlu0 %2373, %v1500_v12   ;;  %v1486_v41 = vpack.c.bf16 %v1423_v17, %v1422_v9 }
 0x434   : > { %1573 = vperm.xlu1 %2374, %v1503_v34   ;;  %2254 = vmatpush3.bf16.xpose.msra.mxu1 %v1487_v28 }
 0x435   : > { %1568 = vperm.xlu0 %2373, %v1502_v49   ;;  %2255 = vmatprep.subr.bf16.mxu1 %v1486_v41 }
 0x438   : > { %1583 = vperm.xlu1 %2374, %v1505_v60  }
 0x439   : > { %1578 = vperm.xlu0 %2373, %v1504_v21  }
 0x43c   : > { %1593 = vperm.xlu1 %2374, %v1507_v47   ;;  %2256 = vmatpush3.bf16.xpose.msra.mxu1 %v1486_v41 }
 0x43d   : > { %1588 = vperm.xlu0 %2373, %v1506_v15  }
 0x440   : > { %1603 = vperm.xlu1 %2374, %v1509_v3  }
 0x441   : > { %1598 = vperm.xlu0 %2373, %v1508_v13  }
 0x442   : > { %v306_v53 = vpop.trf.xlu1 }
 0x443   : > { %2258 = vmatmul.mubr.bf16.vlgmr.msra.gmra.mxu1 %v3640_v18 }
 0x444   : > { %1613 = vperm.xlu1 %2374, %v1511_v48   ;;  %2261 = vmatprep.mubr.bf16.mxu1 %v3641_v35 }
 0x445   : > { %1608 = vperm.xlu0 %2373, %v1510_v43  }
 0x446   : > { %v3403_v4 = vpop.trf.xlu1 }
 0x448   : > { %1623 = vperm.xlu1 %2374, %v1513_v37  }
 0x449   : > { %1618 = vperm.xlu0 %2373, %v1512_v19  }
 0x44a   : > { %v308_v51 = vpop.trf.xlu1 }
 0x44b   : > { %2262 = vmatmul.mubr.bf16.gmra.mxu1 %v3642_v14 }
 0x44c   : > { %1633 = vperm.xlu1 %2374, %v1515_v7   ;;  %2265 = vmatprep.mubr.bf16.mxu1 %v3643_v16  ;;  %v3463_v16 = vstv %s1003_s10 }
 0x44d   : > { %1628 = vperm.xlu0 %2373, %v1514_v10  }
 0x450   : > { %1643 = vperm.xlu1 %2374, %v1517_v23  }
 0x451   : > { %1638 = vperm.xlu0 %2373, %v1516_v32  }
 0x453   : > { %2266 = vmatmul.mubr.bf16.gmra.mxu1 %v3644_v58 }
 0x454   : > { %1653 = vperm.xlu1 %2374, %v1519_v42   ;;  %2269 = vmatprep.mubr.bf16.mxu1 %v3645_v36 }
 0x455   : > { %1648 = vperm.xlu0 %2373, %v1518_v25  }
 0x458   : > { %1663 = vperm.xlu1 %2374, %v1521_v55  }
 0x459   : > { %1658 = vperm.xlu0 %2373, %v1520_v20  }
 0x45b   : > { %2270 = vmatmul.mubr.bf16.gmra.mxu1 %v1477_v22  ;;  %v3651_v22 = vpack.c.bf16 %v3649_v8, %v3650_v59 }
 0x45c   : > { %1673 = vperm.xlu1 %2374, %v1523_v5   ;;  %2273 = vmatprep.mubr.bf16.mxu1 %v3646_v26 }
 0x45d   : > { %1668 = vperm.xlu0 %2373, %v1522_v62  }
 0x460   : > { %1683 = vperm.xlu1 %2374, %v1525_v1  }
 0x461   : > { %1678 = vperm.xlu0 %2373, %v1524_v24  }
 0x463   : > { %2274 = vmatmul.mubr.bf16.gmra.mxu1 %v1479_v0  ;;  %v3405_v0 = vpop.trf.xlu0 }
 0x464   : > { %2277 = vmatprep.mubr.bf16.mxu1 %v1480_v56  ;;  %v309_v56 = vpop.trf.xlu1 }
 0x467   : > { %v3407_v52 = vpop.trf.xlu0 }
 0x468   : > { %v3411_v46 = vpop.trf.xlu1 }
 0x46b   : > { %2278 = vmatmul.mubr.bf16.gmra.mxu1 %v1481_v50  ;;  %v3409_v45 = vpop.trf.xlu0 }
 0x46c   : > { %2281 = vmatprep.mubr.bf16.mxu1 %v1482_v44  ;;  %v3415_v63 = vpop.trf.xlu1 }
 0x46f   : > { %v3413_v50 = vpop.trf.xlu0 }
 0x470   : > { %v3419_v40 = vpop.trf.xlu1 }
 0x473   : > { %2282 = vmatmul.mubr.bf16.gmra.mxu1 %v1483_v38  ;;  %v3417_v39 = vpop.trf.xlu0 }
 0x474   : > { %2285 = vmatprep.mubr.bf16.mxu1 %v3648_v2  ;;  %v3423_v29 = vpop.trf.xlu1 }
 0x477   : > { %v3421_v44 = vpop.trf.xlu0 }
 0x478   : > { %v3427_v38 = vpop.trf.xlu1 }
 0x47b   : > { %2286 = vmatmul.mubr.bf16.gmra.mxu1 %v3651_v22  ;;  %v3425_v30 = vpop.trf.xlu0 }
 0x47c   : > { %v3431_v54 = vpop.trf.xlu1 }
 0x47f   : > { %v3429_v31 = vpop.trf.xlu0 }
 0x480   : > { %v3435_v27 = vpop.trf.xlu1 }
 0x483   : > { %v3433_v57 = vpop.trf.xlu0 }
 0x484   : > { %v3439_v33 = vpop.trf.xlu1 }
 0x487   : > { %v3437_v28 = vpop.trf.xlu0 }
 0x488   : > { %v3443_v6 = vpop.trf.xlu1 }
 0x48b   : > { %v3441_v11 = vpop.trf.xlu0 }
 0x48c   : > { %v3447_v17 = vpop.trf.xlu1 }
 0x48f   : > { %v3445_v12 = vpop.trf.xlu0 }
 0x490   : > { %v3451_v9 = vpop.trf.xlu1 }
 0x493   : > { %v3449_v34 = vpop.trf.xlu0 }
 0x494   : > { %v3455_v41 = vpop.trf.xlu1 }
 0x497   : > { %v3453_v49 = vpop.trf.xlu0 }
 0x49b   : > { %v3457_v60 = vpop.trf.xlu0  ;;  %v1534_v21 = vpop.permute.xlu1 %1533 }
 0x49f   : > { %v3459_v47 = vpop.trf.xlu0  ;;  %v1539_v15 = vpop.permute.xlu1 %1538 }
 0x4a3   : > { %v1544_v13 = vpop.permute.xlu1 %1543 }
 0x4a4   : > { %v1529_v3 = vpop.permute.xlu0 %1528 }
 0x4a7   : > { %v1554_v43 = vpop.permute.xlu1 %1553 }
 0x4a8   : > { %v1549_v48 = vpop.permute.xlu0 %1548 }
 0x4ab   : > { %v1564_v35 = vpop.permute.xlu1 %1563 }
 0x4ac   : > { %v1559_v18 = vpop.permute.xlu0 %1558 }
 0x4af   : > { %v3461_v19 = vpop.permute.xlu1 %1573 }
 0x4b0   : > { %v1569_v37 = vpop.permute.xlu0 %1568 }
 0x4b3   : > { %v1584_v10 = vpop.permute.xlu1 %1583 }
 0x4b4   : > { %v1579_v7 = vpop.permute.xlu0 %1578 }
 0x4b7   : > { %v3469_v62 = vpop.permute.xlu1 %1593 }
 0x4b8   : > { %v3465_v32 = vpop.permute.xlu0 %1588 }
 0x4bc   : > { %v1599_v2 = vpop.permute.xlu0 %1598 }
 0x503   : > { %v2259_v14 = vpop.f32.mrf.mxu1 }
 0x504   : > { %v1729_v23 = vadd.f32 %v2259_v14, %v1539_v15  ;;  %v1604_v14 = vpop.permute.xlu1 %1603 }
 0x505   : > { %v1720_v42 = vpop.f32.mrf.mxu1 }
 0x506   : > { %v1882_v25 = vmul.f32 %v3463_v16, %v1729_v23  ;;  %v1721_v58 = vadd.f32 %v1720_v42, %v1529_v3 }
 0x507   : > { %v2260_v36 = vpop.f32.mrf.mxu1 }
 0x508   : > { %v1914_v55 = vadd.f32 %v1882_v25, %v308_v51  ;;  %v1880_v20 = vmul.f32 %v3463_v16, %v1721_v58  ;;  %v1732_v5 = vadd.f32 %v2260_v36, %v1544_v13  ;;  %v1609_v25 = vpop.permute.xlu0 %1608 }
 0x509   : > { %v1723_v26 = vpop.f32.mrf.mxu1 }
 0x50a   : > { %1946 = vst [vmem:[%s3473_s11 + $0x10] sm:$0xff] %v1914_v55  ;;  %v1912_v1 = vadd.f32 %v1880_v20, %v306_v53  ;;  %v1883_v24 = vmul.f32 %v3463_v16, %v1732_v5  ;;  %v1724_v61 = vadd.f32 %v1723_v26, %v1534_v21  ;;  %v1614_v5 = vpop.permute.xlu1 %1613 }
 0x50b   : > { %v2263_v8 = vpop.f32.mrf.mxu1 }
 0x50c   : > { %1944 = vst [vmem:[%s3473_s11] sm:$0xff] %v1912_v1  ;;  %v1915_v59 = vadd.f32 %v1883_v24, %v309_v56  ;;  %v1881_v22 = vmul.f32 %v3463_v16, %v1724_v61  ;;  %v1745_v51 = vadd.f32 %v2263_v8, %v1559_v18  ;;  %v1619_v24 = vpop.permute.xlu0 %1618 }
 0x50d   : > { %v1736_v15 = vpop.f32.mrf.mxu1 }
 0x50e   : > { %1947 = vst [vmem:[%s3473_s11 + $0x18] sm:$0xff] %v1915_v59  ;;  %v1913_v3 = vadd.f32 %v1881_v22, %v3403_v4  ;;  %v1886_v13 = vmul.f32 %v3463_v16, %v1745_v51  ;;  %v1737_v53 = vadd.f32 %v1736_v15, %v1549_v48  ;;  %v1624_v51 = vpop.permute.xlu1 %1623 }
 0x50f   : > { %v2264_v23 = vpop.f32.mrf.mxu1 }
 0x510   : > { %1945 = vst [vmem:[%s3473_s11 + $0x8] sm:$0xff] %v1913_v3  ;;  %v1918_v21 = vadd.f32 %v1886_v13, %v3419_v40  ;;  %v1884_v56 = vmul.f32 %v3463_v16, %v1737_v53  ;;  %v1748_v42 = vadd.f32 %v2264_v23, %v1564_v35  ;;  %v1629_v13 = vpop.permute.xlu0 %1628 }
 0x511   : > { %v1739_v58 = vpop.f32.mrf.mxu1 }
 0x512   : > { %1950 = vst [vmem:[%s3473_s11 + $0x30] sm:$0xff] %v1918_v21  ;;  %v1916_v18 = vadd.f32 %v1884_v56, %v3411_v46  ;;  %v1887_v4 = vmul.f32 %v3463_v16, %v1748_v42  ;;  %v1740_v36 = vadd.f32 %v1739_v58, %v1554_v43  ;;  %v1634_v42 = vpop.permute.xlu1 %1633 }
 0x513   : > { %v2267_v55 = vpop.f32.mrf.mxu1 }
 0x514   : > { %1948 = vst [vmem:[%s3473_s11 + $0x20] sm:$0xff] %v1916_v18  ;;  %v1919_v48 = vadd.f32 %v1887_v4, %v3423_v29  ;;  %v1885_v40 = vmul.f32 %v3463_v16, %v1740_v36  ;;  %v1761_v20 = vadd.f32 %v2267_v55, %v1579_v7  ;;  %v1639_v4 = vpop.permute.xlu0 %1638 }
 0x515   : > { %v1752_v26 = vpop.f32.mrf.mxu1 }
 0x516   : > { %1951 = vst [vmem:[%s3473_s11 + $0x38] sm:$0xff] %v1919_v48  ;;  %v1917_v35 = vadd.f32 %v1885_v40, %v3415_v63  ;;  %v1890_v46 = vmul.f32 %v3463_v16, %v1761_v20  ;;  %v1753_v1 = vadd.f32 %v1752_v26, %v1569_v37  ;;  %v1644_v20 = vpop.permute.xlu1 %1643 }
 0x517   : > { %v2268_v61 = vpop.f32.mrf.mxu1 }
 0x518   : > { %1949 = vst [vmem:[%s3473_s11 + $0x28] sm:$0xff] %v1917_v35  ;;  %v1922_v43 = vadd.f32 %v1890_v46, %v3435_v27  ;;  %v1888_v29 = vmul.f32 %v3463_v16, %v1753_v1  ;;  %v1764_v8 = vadd.f32 %v2268_v61, %v1584_v10  ;;  %v1649_v46 = vpop.permute.xlu0 %1648 }
 0x519   : > { %v1755_v59 = vpop.f32.mrf.mxu1 }
 0x51a   : > { %1954 = vst [vmem:[%s3473_s11 + $0x50] sm:$0xff] %v1922_v43  ;;  %v1920_v7 = vadd.f32 %v1888_v29, %v3427_v38  ;;  %v1891_v63 = vmul.f32 %v3463_v16, %v1764_v8  ;;  %v1756_v22 = vadd.f32 %v1755_v59, %v3461_v19  ;;  %v1654_v8 = vpop.permute.xlu1 %1653 }
 0x51b   : > { %v2271_v37 = vpop.f32.mrf.mxu1 }
 0x51c   : > { %1952 = vst [vmem:[%s3473_s11 + $0x40] sm:$0xff] %v1920_v7  ;;  %v1923_v15 = vadd.f32 %v1891_v63, %v3439_v33  ;;  %v1889_v27 = vmul.f32 %v3463_v16, %v1756_v22  ;;  %v1777_v3 = vadd.f32 %v2271_v37, %v1599_v2  ;;  %v1659_v22 = vpop.permute.xlu0 %1658 }
 0x51d   : > { %v1768_v10 = vpop.f32.mrf.mxu1 }
 0x51e   : > { %1955 = vst [vmem:[%s3473_s11 + $0x58] sm:$0xff] %v1923_v15  ;;  %v1921_v53 = vadd.f32 %v1889_v27, %v3431_v54  ;;  %v1894_v38 = vmul.f32 %v3463_v16, %v1777_v3  ;;  %v1769_v23 = vadd.f32 %v1768_v10, %v3465_v32  ;;  %v1664_v10 = vpop.permute.xlu1 %1663 }
 0x51f   : > { %v2272_v19 = vpop.f32.mrf.mxu1 }
 0x520   : > { %1953 = vst [vmem:[%s3473_s11 + $0x48] sm:$0xff] %v1921_v53  ;;  %v1926_v21 = vadd.f32 %v1894_v38, %v3451_v9  ;;  %v1892_v33 = vmul.f32 %v3463_v16, %v1769_v23  ;;  %v1780_v56 = vadd.f32 %v2272_v19, %v1604_v14  ;;  %v1669_v23 = vpop.permute.xlu0 %1668 }
 0x521   : > { %v1771_v2 = vpop.f32.mrf.mxu1 }
 0x522   : > { %1958 = vst [vmem:[%s3473_s11 + $0x70] sm:$0xff] %v1926_v21  ;;  %v1924_v58 = vadd.f32 %v1892_v33, %v3443_v6  ;;  %v1895_v54 = vmul.f32 %v3463_v16, %v1780_v56  ;;  %v1772_v18 = vadd.f32 %v1771_v2, %v3469_v62 }
 0x523   : > { %v2275_v32 = vpop.f32.mrf.mxu1 }
 0x524   : > { %1956 = vst [vmem:[%s3473_s11 + $0x60] sm:$0xff] %v1924_v58  ;;  %v1927_v36 = vadd.f32 %v1895_v54, %v3455_v41  ;;  %v1893_v9 = vmul.f32 %v3463_v16, %v1772_v18  ;;  %v1793_v55 = vadd.f32 %v2275_v32, %v1619_v24  ;;  %v1674_v58 = vpop.permute.xlu1 %1673  ;;  %v1679_v32 = vpop.permute.xlu0 %1678 }
 0x525   : > { %v1784_v14 = vpop.f32.mrf.mxu1 }
 0x526   : > { %1959 = vst [vmem:[%s3473_s11 + $0x78] sm:$0xff] %v1927_v36  ;;  %v1925_v48 = vadd.f32 %v1893_v9, %v3447_v17  ;;  %v1898_v6 = vmul.f32 %v3463_v16, %v1793_v55  ;;  %v1785_v40 = vadd.f32 %v1784_v14, %v1609_v25 }
 0x527   : > { %v2276_v26 = vpop.f32.mrf.mxu1 }
 0x528   : > { %1957 = vst [vmem:[%s3473_s11 + $0x68] sm:$0xff] %v1925_v48  ;;  %v1930_v62 = vadd.f32 %v1898_v6, %v3409_v45  ;;  %v1896_v41 = vmul.f32 %v3463_v16, %v1785_v40  ;;  %v1796_v35 = vadd.f32 %v2276_v26, %v1624_v51  ;;  %v1684_v40 = vpop.permute.xlu1 %1683 }
 0x529   : > { %v1787_v1 = vpop.f32.mrf.mxu1 }
 0x52a   : > { %1962 = vst [vmem:[%s3473_s11 + $0x90] sm:$0xff] %v1930_v62  ;;  %v1928_v24 = vadd.f32 %v1896_v41, %v3405_v0  ;;  %v1899_v17 = vmul.f32 %v3463_v16, %v1796_v35  ;;  %v1788_v61 = vadd.f32 %v1787_v1, %v1614_v5 }
 0x52b   : > { %v2279_v43 = vpop.f32.mrf.mxu1 }
 0x52c   : > { %1960 = vst [vmem:[%s3473_s11 + $0x80] sm:$0xff] %v1928_v24  ;;  %v1931_v25 = vadd.f32 %v1899_v17, %v3413_v50  ;;  %v1897_v45 = vmul.f32 %v3463_v16, %v1788_v61  ;;  %v1809_v29 = vadd.f32 %v2279_v43, %v1639_v4 }
 0x52d   : > { %v1800_v59 = vpop.f32.mrf.mxu1 }
 0x52e   : > { %1963 = vst [vmem:[%s3473_s11 + $0x98] sm:$0xff] %v1931_v25  ;;  %v1929_v7 = vadd.f32 %v1897_v45, %v3407_v52  ;;  %v1902_v0 = vmul.f32 %v3463_v16, %v1809_v29  ;;  %v1801_v63 = vadd.f32 %v1800_v59, %v1629_v13 }
 0x52f   : > { %v2280_v51 = vpop.f32.mrf.mxu1 }
 0x530   : > { %1961 = vst [vmem:[%s3473_s11 + $0x88] sm:$0xff] %v1929_v7  ;;  %v1934_v5 = vadd.f32 %v1902_v0, %v3425_v30  ;;  %v1900_v50 = vmul.f32 %v3463_v16, %v1801_v63  ;;  %v1812_v37 = vadd.f32 %v2280_v51, %v1644_v20 }
 0x531   : > { %v1803_v15 = vpop.f32.mrf.mxu1 }
 0x532   : > { %1966 = vst [vmem:[%s3473_s11 + $0xb0] sm:$0xff] %v1934_v5  ;;  %v1932_v27 = vadd.f32 %v1900_v50, %v3417_v39  ;;  %v1903_v52 = vmul.f32 %v3463_v16, %v1812_v37  ;;  %v1804_v3 = vadd.f32 %v1803_v15, %v1634_v42 }
 0x533   : > { %v2283_v53 = vpop.f32.mrf.mxu1 }
 0x534   : > { %1964 = vst [vmem:[%s3473_s11 + $0xa0] sm:$0xff] %v1932_v27  ;;  %v1935_v13 = vadd.f32 %v1903_v52, %v3429_v31  ;;  %v1901_v30 = vmul.f32 %v3463_v16, %v1804_v3  ;;  %v1825_v38 = vadd.f32 %v2283_v53, %v1659_v22 }
 0x535   : > { %v1816_v19 = vpop.f32.mrf.mxu1 }
 0x536   : > { %1967 = vst [vmem:[%s3473_s11 + $0xb8] sm:$0xff] %v1935_v13  ;;  %v1933_v21 = vadd.f32 %v1901_v30, %v3421_v44  ;;  %v1906_v39 = vmul.f32 %v3463_v16, %v1825_v38  ;;  %v1817_v33 = vadd.f32 %v1816_v19, %v1649_v46 }
 0x537   : > { %v2284_v56 = vpop.f32.mrf.mxu1 }
 0x538   : > { %1965 = vst [vmem:[%s3473_s11 + $0xa8] sm:$0xff] %v1933_v21  ;;  %v1938_v42 = vadd.f32 %v1906_v39, %v3441_v11  ;;  %v1904_v31 = vmul.f32 %v3463_v16, %v1817_v33  ;;  %v1828_v2 = vadd.f32 %v2284_v56, %v1664_v10 }
 0x539   : > { %v1819_v54 = vpop.f32.mrf.mxu1 }
 0x53a   : > { %1970 = vst [vmem:[%s3473_s11 + $0xd0] sm:$0xff] %v1938_v42  ;;  %v1936_v18 = vadd.f32 %v1904_v31, %v3433_v57  ;;  %v1907_v44 = vmul.f32 %v3463_v16, %v1828_v2  ;;  %v1820_v4 = vadd.f32 %v1819_v54, %v1654_v8 }
 0x53b   : > { %v2287_v36 = vpop.f32.mrf.mxu1 }
 0x53c   : > { %1968 = vst [vmem:[%s3473_s11 + $0xc0] sm:$0xff] %v1936_v18  ;;  %v1939_v9 = vadd.f32 %v1907_v44, %v3445_v12  ;;  %v1905_v11 = vmul.f32 %v3463_v16, %v1820_v4  ;;  %v1841_v55 = vadd.f32 %v2287_v36, %v1679_v32 }
 0x53d   : > { %v1832_v14 = vpop.f32.mrf.mxu1 }
 0x53e   : > { %1971 = vst [vmem:[%s3473_s11 + $0xd8] sm:$0xff] %v1939_v9  ;;  %v1937_v48 = vadd.f32 %v1905_v11, %v3437_v28  ;;  %v1910_v57 = vmul.f32 %v3463_v16, %v1841_v55  ;;  %v1833_v6 = vadd.f32 %v1832_v14, %v1669_v23 }
 0x53f   : > { %v2288_v20 = vpop.f32.mrf.mxu1 }
 0x540   : > { %1969 = vst [vmem:[%s3473_s11 + $0xc8] sm:$0xff] %v1937_v48  ;;  %v1942_v26 = vadd.f32 %v1910_v57, %v3457_v60  ;;  %v1908_v12 = vmul.f32 %v3463_v16, %v1833_v6  ;;  %v1844_v62 = vadd.f32 %v2288_v20, %v1684_v40 }
 0x541   : > { %v1835_v41 = vpop.f32.mrf.mxu1 }
 0x542   : > { %1974 = vst [vmem:[%s3473_s11 + $0xf0] sm:$0xff] %v1942_v26  ;;  %v1940_v35 = vadd.f32 %v1908_v12, %v3449_v34  ;;  %v1911_v28 = vmul.f32 %v3463_v16, %v1844_v62  ;;  %v1836_v46 = vadd.f32 %v1835_v41, %v1674_v58 }
 0x544   : > { %1972 = vst [vmem:[%s3473_s11 + $0xe0] sm:$0xff] %v1940_v35  ;;  %v1943_v1 = vadd.f32 %v1911_v28, %v3459_v47  ;;  %v1909_v60 = vmul.f32 %v3463_v16, %v1836_v46 }
 0x546   : > { %1975 = vst [vmem:[%s3473_s11 + $0xf8] sm:$0xff] %v1943_v1  ;;  %v1941_v34 = vadd.f32 %v1909_v60, %v3453_v49 }
 0x548   : > { %1973 = vst [vmem:[%s3473_s11 + $0xe8] sm:$0xff] %v1941_v34 }
 0x549   : > { %2548 = shalt.err (!%p2545_p6)
}
 0x54a   : > { %s2549_s26 = scalar_lea.hbm %s3571_s15, 4096  ;;  %s2553_s8 = scalar_lea.hbm %s3628_s4, 8192 }
 0x54b   : > { %p2550_p7 = scmp.ne.s32.totalorder %s3571_s15, %s2549_s26  ;;  %p2554_p13 = scmp.lt.s32.totalorder %s3571_s15, %s3628_s4 }
 0x54c   : > { %p2555_p2 = scmp.lt.s32.totalorder %s2553_s8, %s2549_s26 }
 0x54d   : > { %p2551_p10 = pnand %p2550_p7, %p2703_p9 }
 0x54e   : > { %p2556_p8 = por %p2555_p2, %p2554_p13 }
 0x54f   : > { %p2552_p4 = pneg %p2551_p10 }
 0x551   : > { %p2557_p12 = pnand %p2556_p8, %p2552_p4 }
 0x553   : > { %2560 = shalt.err (!%p2557_p12)
}
 0x554   : > { %s2622_s11 = smov 128   ;;  %s2623_s7 = smov 8  }
 0x555   : > { %2307 = dma.vmem_to_hbm [thread:$0]  (%p2703_p9), %s3573_s12, 4096, %s3571_s15, %s1977_s20, %s2622_s11, %s2622_s11, %s2623_s7  }
 0x556 PF: > { %s2005_s13 = sand.u32 1, %s2595_s17   ;;  %p3652_p0 = scmp.ge.s32.totalorder %s2615_s22, 2 }
 0x557   : > { %s2006_s14 = scalar_lea.sflag [#allocation6], %s2005_s13 }
 0x558   : > { %p2314_p1 = pnand %p3652_p0, %p2710_p11 }
 0x55a   : > { %p2315_p3 = pneg %p2314_p1 }
 0x55c   : > { %2590 = dma.done.wait (%p2315_p3), %s2006_s14, 4096  }
 0x55d   : > { %2592 = vsyncadd (%p2315_p3), %s2006_s14, 4294963200  ;;  %s21_s22 = sadd.s32 1, %s2615_s22   ;;  %s3653_s17 = smov %s2599_s18 }
 0x55e   : > { %p18_p5 = scmp.ge.s32.totalorder %s21_s22, 4   ;;  %s3654_s18 = smov %s2603_s19 }
 0x55f   : > { %s3655_s19 = smov %s2708_s30  ;;  %s3656_s20 = smov %s2611_s21 }
 0x560   : > { %s3657_s21 = smov %s3659_s24  ;;  %20 = sbr.rel (!%p18_p5) target bundleno = 8 (0x8), region = 93 }
 0x565   :  { %2011 = vsyncpa [#allocation5], 1 }
 0x566   :  { %2013 = vsyncpa [#allocation5 + $0x1], 1 }
 0x567   :  { %2014 = vsyncpa [#allocation6], 1 }
 0x568   :  { %2016 = vsyncpa [#allocation6 + $0x1], 1 }

</bundles_post_ra>
